<compile_context>
chip_gen: v7x
topology: tpu7x:2x2x1
jax: 0.10.0
libtpu: 0.0.40
codegen_flags: <defaults>
</compile_context>

<pallas_src>
import functools
import math

import numpy as np

import jax
import jax.numpy as jnp
from jax.experimental import pallas as pl
from jax.experimental.pallas import tpu as pltpu

_SQRT2 = math.sqrt(2.0)
_BN_EPS = 1e-5


def _gelu_exact(x):
    # nn.GELU() default: exact erf-based GELU, kept in f32.
    # TODO(synk): if v7x profiling shows VALU-bound, switch to tanh-approx GELU.
    return 0.5 * x * (1.0 + jax.lax.erf(x / _SQRT2))


# --------------------------- tap plan (host side) --------------------------- #
# conv3x3x3, padding=1, stride s in {1,2}: for output coord o and tap k the
# input coord is s*o + (k-1).  Writing k-1 = s*q + r (0 <= r < s), the read is
# parity plane r, within-plane coord o+q, valid iff 0 <= o+q < OutDim (even
# spatial dims required for s=2).  In the flat [C, N*Do*Ho*Wo] layout this is a
# constant column shift of q_d*Ho*Wo + q_h*Wo + q_w plus a per-column mask.

def _np_mask(q, n, do, ho, wo):
    dd, hh, ww = np.meshgrid(np.arange(do), np.arange(ho), np.arange(wo),
                             indexing="ij")
    valid = np.ones((do, ho, wo), dtype=bool)
    for coord, qq, ext in ((dd, q[0], do), (hh, q[1], ho), (ww, q[2], wo)):
        if qq > 0:
            valid &= coord < ext - qq
        elif qq < 0:
            valid &= coord >= -qq
    return np.broadcast_to(valid[None], (n, do, ho, wo)).reshape(-1)


def _build_tap_plan(stride, n, do, ho, wo, mask_rows, mask_cache):
    plan = []
    for kd in range(3):
        for kh in range(3):
            for kw in range(3):
                q, plane = [], 0
                for k in (kd, kh, kw):
                    j = k - 1
                    qq, r = (j, 0) if stride == 1 else divmod(j, 2)
                    q.append(qq)
                    plane = plane * 2 + r
                off = q[0] * ho * wo + q[1] * wo + q[2]
                if all(v == 0 for v in q):
                    midx = -1                      # trivially all-valid tap
                else:
                    key = tuple(q)
                    if key not in mask_cache:
                        mask_cache[key] = len(mask_rows)
                        mask_rows.append(_np_mask(q, n, do, ho, wo))
                    midx = mask_cache[key]
                plan.append((plane, off, midx))
    return tuple(plan)


# ------------------------------- Pallas kernel ------------------------------ #

def _shift_cols(x, off):
    # out[:, i] = x[:, (i + off) % M]   (wrapped columns are always masked)
    m = x.shape[1]
    o = off % m
    if o == 0:
        return x
    return jnp.concatenate([x[:, o:], x[:, :o]], axis=1)


def _fused_layer_kernel(*refs, cfg):
    x_ref, mask_ref = refs[0], refs[1]
    o_ref = refs[-1]
    cout = cfg["cout"]

    def conv27(planes, w_ref, plan):
        # sum_t  W_t @ shift(plane_t) * mask_t  with f32 accumulation (MXU bf16).
        acc = None
        for t, (pidx, off, midx) in enumerate(plan):
            xs = planes[pidx]
            if off != 0:
                xs = _shift_cols(xs, off)
            if midx >= 0:
                xs = xs * mask_ref[midx]           # (1, M) bf16 zero-pad mask
            c = jnp.dot(w_ref[t], xs, preferred_element_type=jnp.float32)
            acc = c if acc is None else acc + c
        return acc

    act = None                                     # f32 (Cout, M) activation
    ri = 2
    for b, blk in enumerate(cfg["blocks"]):
        w1_ref, bc_ref, w2_ref, b2_ref = refs[ri:ri + 4]
        ri += 4
        if b == 0:
            planes = [x_ref[p] for p in range(cfg["p0"])]
            plan = cfg["plan0"]
        else:
            planes = [act.astype(jnp.bfloat16)]
            plan = cfg["plan1"]

        acc = conv27(planes, w1_ref, plan)
        bc = bc_ref[...]
        if blk["downsample"]:
            # rows [0:Cout) = conv1, rows [Cout:2Cout) = stacked 1x1x1 shortcut
            y1 = acc[:cout] + bc[:cout]
            res = acc[cout:] + bc[cout:]
        else:
            y1 = acc + bc
            # identity residual: exact f32 activation for fused blocks.
            # TODO(synk): a non-downsample FIRST block (never built by ResLayer)
            # would add the bf16-rounded input instead of the exact f32 input.
            res = act if b > 0 else planes[0].astype(jnp.float32)

        y1 = _gelu_exact(y1)
        y2 = jnp.dot(w2_ref[...], y1.astype(jnp.bfloat16),
                     preferred_element_type=jnp.float32) + b2_ref[...]
        act = _gelu_exact(y2 + res)

    o_ref[...] = act.astype(o_ref.dtype)


# ------------------------------ kernel wrapper ------------------------------ #

_VMEM_CAP_CACHE = [None]


def _vmem_capacity_bytes():
    if _VMEM_CAP_CACHE[0] is None:
        try:
            cap = int(getattr(pltpu.get_tpu_info(), "vmem_capacity_bytes", 0) or 0)
        except Exception:
            cap = 0
        _VMEM_CAP_CACHE[0] = cap if cap > 0 else (64 << 20)  # v7x-conservative
    return _VMEM_CAP_CACHE[0]


def _make_planes(x_ncdhw, stride):
    # NCDHW f32 -> (P, Cin, M) bf16 parity planes (P = stride**3), M = N*Do*Ho*Wo.
    n, c, d, h, w = x_ncdhw.shape
    x_cm = jnp.transpose(x_ncdhw.astype(jnp.bfloat16), (1, 0, 2, 3, 4))
    if stride == 1:
        do, ho, wo = d, h, w
        planes = x_cm.reshape(1, c, n * d * h * w)
    else:
        assert stride == 2 and d % 2 == 0 and h % 2 == 0 and w % 2 == 0, (
            "stride-2 path requires even spatial dims")
        do, ho, wo = d // 2, h // 2, w // 2
        slabs = [x_cm[:, :, rd::2, rh::2, rw::2].reshape(c, n * do * ho * wo)
                 for rd in range(2) for rh in range(2) for rw in range(2)]
        planes = jnp.stack(slabs, axis=0)
    return planes, (do, ho, wo)


def _full_spec(arr):
    nd = arr.ndim
    return pl.BlockSpec(arr.shape, lambda i, _nd=nd: (0,) * _nd)


def res_layer_forward(x_ncdhw, blocks, stride):
    nb = len(blocks)
    n = x_ncdhw.shape[0]
    cout = blocks[0]["cout"]
    planes, (do, ho, wo) = _make_planes(x_ncdhw, stride)
    m = n * do * ho * wo

    mask_rows, cache = [], {}
    plan0 = _build_tap_plan(stride, n, do, ho, wo, mask_rows, cache)
    plan1 = plan0 if stride == 1 else (
        _build_tap_plan(1, n, do, ho, wo, mask_rows, cache) if nb > 1 else plan0)
    if not mask_rows:
        mask_rows.append(np.ones(m, dtype=bool))
    masks = jnp.asarray(np.stack(mask_rows)[:, None, :], dtype=jnp.bfloat16)

    args = [planes, masks]
    for p in blocks:
        args += [p["w1c"], p["bc"], p["w2"], p["b2"]]

    # Whole-layer-in-VMEM feasibility guard (coarse; ignores layout padding).
    est = sum(int(np.prod(a.shape)) * a.dtype.itemsize for a in args)
    est += cout * m * 4 + 2 * cout * m * 4 * 4
    est *= 2
    cap = _vmem_capacity_bytes()
    assert est < int(cap * 0.6), (
        "fused ResLayer working set does not fit VMEM; "
        "TODO(synk): column-tiled fallback with halos for large inputs")

    cfg = dict(cout=cout, p0=planes.shape[0], plan0=plan0, plan1=plan1,
               blocks=tuple(dict(downsample=p["downsample"]) for p in blocks))

    out_flat = pl.pallas_call(
        functools.partial(_fused_layer_kernel, cfg=cfg),
        out_shape=jax.ShapeDtypeStruct((cout, m), jnp.float32),
        grid=(1,),
        in_specs=[_full_spec(a) for a in args],
        out_specs=pl.BlockSpec((cout, m), lambda i: (0, 0)),
        compiler_params=pltpu.CompilerParams(
            dimension_semantics=("arbitrary",),
            vmem_limit_bytes=min(int(cap * 0.75), 96 << 20)),
    )(*args)

    out = out_flat.reshape(cout, n, do, ho, wo)
    return jnp.transpose(out, (1, 0, 2, 3, 4))            # -> NCDHW


# --------------------------- parameters & folding --------------------------- #

def _fold_conv_bn(w, bn, eps=_BN_EPS):
    scale = bn["gamma"] / jnp.sqrt(bn["var"] + eps)
    wf = w * scale[:, None, None, None, None]
    bias = bn["beta"] - bn["mean"] * scale
    return wf, bias


def fold_block(raw):
    cin, cout, ds = raw["cin"], raw["cout"], raw["downsample"]
    if not ds:
        assert cin == cout, "identity residual requires Cin == Cout"
    w1f, b1 = _fold_conv_bn(raw["conv1_w"], raw["bn1"])
    w2f, b2 = _fold_conv_bn(raw["conv2_w"], raw["bn2"])
    taps = [w1f[:, :, kd, kh, kw]
            for kd in range(3) for kh in range(3) for kw in range(3)]
    if ds:
        wdf, bd = _fold_conv_bn(raw["convd_w"], raw["bnd"])
        wd = wdf[:, :, 0, 0, 0]
        zero = jnp.zeros_like(wd)
        # stack the 1x1x1 stride-s shortcut under the CENTER tap (index 13).
        stacked = [jnp.concatenate([tw, wd if t == 13 else zero], axis=0)
                   for t, tw in enumerate(taps)]
        w1c = jnp.stack(stacked, axis=0)                   # (27, 2*Cout, Cin)
        bc = jnp.concatenate([b1, bd])[:, None]
    else:
        w1c = jnp.stack(taps, axis=0)                      # (27, Cout, Cin)
        bc = b1[:, None]
    return dict(cin=cin, cout=cout, downsample=ds,
                w1c=w1c.astype(jnp.bfloat16), bc=bc.astype(jnp.float32),
                w2=w2f[:, :, 0, 0, 0].astype(jnp.bfloat16),
                b2=b2[:, None].astype(jnp.float32))


def init_block_raw(key, cin, cout, downsample):
    ks = jax.random.split(key, 15)

    def bn(i0, i1, i2, i3):
        return dict(gamma=1.0 + 0.1 * jax.random.normal(ks[i0], (cout,), jnp.float32),
                    beta=0.1 * jax.random.normal(ks[i1], (cout,), jnp.float32),
                    mean=0.1 * jax.random.normal(ks[i2], (cout,), jnp.float32),
                    var=0.5 + jax.random.uniform(ks[i3], (cout,), jnp.float32))

    raw = dict(cin=cin, cout=cout, downsample=downsample,
               conv1_w=0.1 * jax.random.normal(ks[0], (cout, cin, 3, 3, 3), jnp.float32),
               bn1=bn(1, 2, 3, 4),
               conv2_w=0.1 * jax.random.normal(ks[5], (cout, cout, 1, 1, 1), jnp.float32),
               bn2=bn(6, 7, 8, 9))
    if downsample:
        raw["convd_w"] = 0.1 * jax.random.normal(ks[10], (cout, cin, 1, 1, 1), jnp.float32)
        raw["bnd"] = bn(11, 12, 13, 14)
    return raw


# ----------------------------- pure-JAX references -------------------------- #

def _conv_ndhwc(x, w_dhwio, stride, pad, bias, precision=None):
    y = jax.lax.conv_general_dilated(
        x, w_dhwio, window_strides=(stride,) * 3, padding=[(pad, pad)] * 3,
        dimension_numbers=("NDHWC", "DHWIO", "NDHWC"),
        preferred_element_type=jnp.float32, precision=precision)
    return y + bias


def _ref_fold(w, bn):
    wf, b = _fold_conv_bn(w, bn)
    return jnp.transpose(wf, (2, 3, 4, 1, 0)), b.reshape(1, 1, 1, 1, -1)


def ref_layer_matched(x_ncdhw, raw_blocks, stride):
    # Same precision policy as the kernel: bf16 conv operands, f32 accumulation,
    # f32 inter-block activations, exact-f32 identity residuals.
    xt = jnp.transpose(x_ncdhw, (0, 2, 3, 4, 1)).astype(jnp.float32)   # NDHWC
    for i, raw in enumerate(raw_blocks):
        s = stride if i == 0 else 1
        w1, b1 = _ref_fold(raw["conv1_w"], raw["bn1"])
        w2, b2 = _ref_fold(raw["conv2_w"], raw["bn2"])
        xb = xt.astype(jnp.bfloat16)
        y = _gelu_exact(_conv_ndhwc(xb, w1.astype(jnp.bfloat16), s, 1, b1))
        y = _conv_ndhwc(y.astype(jnp.bfloat16), w2.astype(jnp.bfloat16), 1, 0, b2)
        if raw["downsample"]:
            wd, bd = _ref_fold(raw["convd_w"], raw["bnd"])
            r = _conv_ndhwc(xb, wd.astype(jnp.bfloat16), s, 0, bd)
        else:
            r = xt
        xt = _gelu_exact(y + r)
    return jnp.transpose(xt, (0, 4, 1, 2, 3))


def ref_layer_f32(x_ncdhw, raw_blocks, stride):
    hp = jax.lax.Precision.HIGHEST
    xt = jnp.transpose(x_ncdhw, (0, 2, 3, 4, 1)).astype(jnp.float32)
    for i, raw in enumerate(raw_blocks):
        s = stride if i == 0 else 1
        w1, b1 = _ref_fold(raw["conv1_w"], raw["bn1"])
        w2, b2 = _ref_fold(raw["conv2_w"], raw["bn2"])
        y = _gelu_exact(_conv_ndhwc(xt, w1, s, 1, b1, hp))
        y = _conv_ndhwc(y, w2, 1, 0, b2, hp)
        if raw["downsample"]:
            wd, bd = _ref_fold(raw["convd_w"], raw["bnd"])
            r = _conv_ndhwc(xt, wd, s, 0, bd, hp)
        else:
            r = xt
        xt = _gelu_exact(y + r)
    return jnp.transpose(xt, (0, 4, 1, 2, 3))


# ---------------------------------- main ------------------------------------ #

if __name__ == "__main__":
    key = jax.random.PRNGKey(0)
    k_x, k_b0, k_rest = jax.random.split(key, 3)

    # ResLayer(in_channels=4, out_channels=8, n_blocks=2, stride=2)
    in_channels, out_channels, n_blocks, stride = 4, 8, 2, 2
    x = jax.random.normal(k_x, (2, in_channels, 8, 8, 8), jnp.float32)   # NCDHW

    raw_blocks = [init_block_raw(k_b0, in_channels, out_channels, downsample=True)]
    for kb in jax.random.split(k_rest, n_blocks - 1):
        raw_blocks.append(init_block_raw(kb, out_channels, out_channels,
                                         downsample=False))
    folded = [fold_block(r) for r in raw_blocks]

    # End-to-end fused forward: one pallas_call for the whole ResLayer.
    fwd = jax.jit(lambda xx: res_layer_forward(xx, folded, stride))
    out = jax.block_until_ready(fwd(x))
    assert out.shape == (2, out_channels, 4, 4, 4), out.shape

    # Matched-precision reference (bf16 operands / f32 accumulation); the only
    # divergence sources are accumulation order and bf16 re-rounding boundaries.
    ref_m = jax.block_until_ready(ref_layer_matched(x, raw_blocks, stride))
    err_m = float(jnp.max(jnp.abs(out - ref_m)))
    assert jnp.allclose(out, ref_m, rtol=2e-2, atol=2e-2), err_m

    # Loose drift bound vs. true (f32, HIGHEST precision) module semantics.
    ref32 = jax.block_until_ready(ref_layer_f32(x, raw_blocks, stride))
    err32 = float(jnp.max(jnp.abs(out - ref32)))
    assert jnp.allclose(out, ref32, rtol=1e-1, atol=1e-1), err32

    print("KERNEL_OK")
</pallas_src>

<mosaic_0001>
module attributes {stable_mosaic.version = 11 : i64} {
  func.func @_fused_layer_kernel(%arg0: i32, %arg1: memref<8x4x128xbf16, #tpu.memory_space<vmem>>, %arg2: memref<26x1x128xbf16, #tpu.memory_space<vmem>>, %arg3: memref<27x16x4xbf16, #tpu.memory_space<vmem>>, %arg4: memref<16x1xf32, #tpu.memory_space<vmem>>, %arg5: memref<8x8xbf16, #tpu.memory_space<vmem>>, %arg6: memref<8x1xf32, #tpu.memory_space<vmem>>, %arg7: memref<27x8x8xbf16, #tpu.memory_space<vmem>>, %arg8: memref<8x1xf32, #tpu.memory_space<vmem>>, %arg9: memref<8x8xbf16, #tpu.memory_space<vmem>>, %arg10: memref<8x1xf32, #tpu.memory_space<vmem>>, %arg11: memref<8x128xf32, #tpu.memory_space<vmem>>) attributes {dimension_semantics = [#tpu.dimension_semantics<arbitrary>], iteration_bounds = array<i64: 1>, scalar_prefetch = 0 : i64, scratch_operands = 0 : i64, tpu.core_type = #tpu.core_type<tc>, window_params = [{pipeline_mode = #tpu.pipeline_mode<synchronous>, transform_indices = @transform_0, window_bounds = array<i64: 8, 4, 128>}, {pipeline_mode = #tpu.pipeline_mode<synchronous>, transform_indices = @transform_1, window_bounds = array<i64: 26, 1, 128>}, {pipeline_mode = #tpu.pipeline_mode<synchronous>, transform_indices = @transform_2, window_bounds = array<i64: 27, 16, 4>}, {pipeline_mode = #tpu.pipeline_mode<synchronous>, transform_indices = @transform_3, window_bounds = array<i64: 16, 1>}, {pipeline_mode = #tpu.pipeline_mode<synchronous>, transform_indices = @transform_4, window_bounds = array<i64: 8, 8>}, {pipeline_mode = #tpu.pipeline_mode<synchronous>, transform_indices = @transform_5, window_bounds = array<i64: 8, 1>}, {pipeline_mode = #tpu.pipeline_mode<synchronous>, transform_indices = @transform_6, window_bounds = array<i64: 27, 8, 8>}, {pipeline_mode = #tpu.pipeline_mode<synchronous>, transform_indices = @transform_7, window_bounds = array<i64: 8, 1>}, {pipeline_mode = #tpu.pipeline_mode<synchronous>, transform_indices = @transform_8, window_bounds = array<i64: 8, 8>}, {pipeline_mode = #tpu.pipeline_mode<synchronous>, transform_indices = @transform_9, window_bounds = array<i64: 8, 1>}, {pipeline_mode = #tpu.pipeline_mode<synchronous>, transform_indices = @transform_10, window_bounds = array<i64: 8, 128>}]} {
    %c0 = arith.constant 0 : index
    %c0_0 = arith.constant 0 : index
    %c0_1 = arith.constant 0 : index
    %0 = vector.load %arg1[%c0, %c0_0, %c0_1] : memref<8x4x128xbf16, #tpu.memory_space<vmem>>, vector<1x4x128xbf16>
    %1 = vector.shape_cast %0 : vector<1x4x128xbf16> to vector<4x128xbf16>
    %c1 = arith.constant 1 : index
    %c0_2 = arith.constant 0 : index
    %c0_3 = arith.constant 0 : index
    %2 = vector.load %arg1[%c1, %c0_2, %c0_3] : memref<8x4x128xbf16, #tpu.memory_space<vmem>>, vector<1x4x128xbf16>
    %3 = vector.shape_cast %2 : vector<1x4x128xbf16> to vector<4x128xbf16>
    %c2 = arith.constant 2 : index
    %c0_4 = arith.constant 0 : index
    %c0_5 = arith.constant 0 : index
    %4 = vector.load %arg1[%c2, %c0_4, %c0_5] : memref<8x4x128xbf16, #tpu.memory_space<vmem>>, vector<1x4x128xbf16>
    %5 = vector.shape_cast %4 : vector<1x4x128xbf16> to vector<4x128xbf16>
    %c3 = arith.constant 3 : index
    %c0_6 = arith.constant 0 : index
    %c0_7 = arith.constant 0 : index
    %6 = vector.load %arg1[%c3, %c0_6, %c0_7] : memref<8x4x128xbf16, #tpu.memory_space<vmem>>, vector<1x4x128xbf16>
    %7 = vector.shape_cast %6 : vector<1x4x128xbf16> to vector<4x128xbf16>
    %c4 = arith.constant 4 : index
    %c0_8 = arith.constant 0 : index
    %c0_9 = arith.constant 0 : index
    %8 = vector.load %arg1[%c4, %c0_8, %c0_9] : memref<8x4x128xbf16, #tpu.memory_space<vmem>>, vector<1x4x128xbf16>
    %9 = vector.shape_cast %8 : vector<1x4x128xbf16> to vector<4x128xbf16>
    %c5 = arith.constant 5 : index
    %c0_10 = arith.constant 0 : index
    %c0_11 = arith.constant 0 : index
    %10 = vector.load %arg1[%c5, %c0_10, %c0_11] : memref<8x4x128xbf16, #tpu.memory_space<vmem>>, vector<1x4x128xbf16>
    %11 = vector.shape_cast %10 : vector<1x4x128xbf16> to vector<4x128xbf16>
    %c6 = arith.constant 6 : index
    %c0_12 = arith.constant 0 : index
    %c0_13 = arith.constant 0 : index
    %12 = vector.load %arg1[%c6, %c0_12, %c0_13] : memref<8x4x128xbf16, #tpu.memory_space<vmem>>, vector<1x4x128xbf16>
    %13 = vector.shape_cast %12 : vector<1x4x128xbf16> to vector<4x128xbf16>
    %c7 = arith.constant 7 : index
    %c0_14 = arith.constant 0 : index
    %c0_15 = arith.constant 0 : index
    %14 = vector.load %arg1[%c7, %c0_14, %c0_15] : memref<8x4x128xbf16, #tpu.memory_space<vmem>>, vector<1x4x128xbf16>
    %15 = vector.shape_cast %14 : vector<1x4x128xbf16> to vector<4x128xbf16>
    %16 = vector.extract_strided_slice %15 {offsets = [0, 107], sizes = [4, 21], strides = [1, 1]} : vector<4x128xbf16> to vector<4x21xbf16>
    %17 = vector.extract_strided_slice %15 {offsets = [0, 0], sizes = [4, 107], strides = [1, 1]} : vector<4x128xbf16> to vector<4x107xbf16>
    %18 = tpu.concatenate %16, %17 in 1 : vector<4x21xbf16>, vector<4x107xbf16> -> vector<4x128xbf16>
    %c0_16 = arith.constant 0 : index
    %c0_17 = arith.constant 0 : index
    %c0_18 = arith.constant 0 : index
    %19 = vector.load %arg2[%c0_16, %c0_17, %c0_18] : memref<26x1x128xbf16, #tpu.memory_space<vmem>>, vector<1x1x128xbf16>
    %20 = vector.shape_cast %19 : vector<1x1x128xbf16> to vector<1x128xbf16>
    %21 = vector.broadcast %20 : vector<1x128xbf16> to vector<4x128xbf16>
    %22 = arith.mulf %18, %21 : vector<4x128xbf16>
    %c0_19 = arith.constant 0 : index
    %c0_20 = arith.constant 0 : index
    %c0_21 = arith.constant 0 : index
    %23 = vector.load %arg3[%c0_19, %c0_20, %c0_21] : memref<27x16x4xbf16, #tpu.memory_space<vmem>>, vector<1x16x4xbf16>
    %24 = vector.shape_cast %23 : vector<1x16x4xbf16> to vector<16x4xbf16>
    %cst = arith.constant dense<0.000000e+00> : vector<16x128xf32>
    %25 = tpu.matmul %24, %22, %cst {dimension_numbers = #tpu.dot_dimension_numbers<[1], [0], [0], [1], [0, 0, 1, 1], [], []>} : vector<16x4xbf16>, vector<4x128xbf16>, vector<16x128xf32> -> vector<16x128xf32>
    %26 = vector.extract_strided_slice %13 {offsets = [0, 108], sizes = [4, 20], strides = [1, 1]} : vector<4x128xbf16> to vector<4x20xbf16>
    %27 = vector.extract_strided_slice %13 {offsets = [0, 0], sizes = [4, 108], strides = [1, 1]} : vector<4x128xbf16> to vector<4x108xbf16>
    %28 = tpu.concatenate %26, %27 in 1 : vector<4x20xbf16>, vector<4x108xbf16> -> vector<4x128xbf16>
    %c1_22 = arith.constant 1 : index
    %c0_23 = arith.constant 0 : index
    %c0_24 = arith.constant 0 : index
    %29 = vector.load %arg2[%c1_22, %c0_23, %c0_24] : memref<26x1x128xbf16, #tpu.memory_space<vmem>>, vector<1x1x128xbf16>
    %30 = vector.shape_cast %29 : vector<1x1x128xbf16> to vector<1x128xbf16>
    %31 = vector.broadcast %30 : vector<1x128xbf16> to vector<4x128xbf16>
    %32 = arith.mulf %28, %31 : vector<4x128xbf16>
    %c1_25 = arith.constant 1 : index
    %c0_26 = arith.constant 0 : index
    %c0_27 = arith.constant 0 : index
    %33 = vector.load %arg3[%c1_25, %c0_26, %c0_27] : memref<27x16x4xbf16, #tpu.memory_space<vmem>>, vector<1x16x4xbf16>
    %34 = vector.shape_cast %33 : vector<1x16x4xbf16> to vector<16x4xbf16>
    %cst_28 = arith.constant dense<0.000000e+00> : vector<16x128xf32>
    %35 = tpu.matmul %34, %32, %cst_28 {dimension_numbers = #tpu.dot_dimension_numbers<[1], [0], [0], [1], [0, 0, 1, 1], [], []>} : vector<16x4xbf16>, vector<4x128xbf16>, vector<16x128xf32> -> vector<16x128xf32>
    %36 = arith.addf %25, %35 : vector<16x128xf32>
    %37 = vector.extract_strided_slice %15 {offsets = [0, 108], sizes = [4, 20], strides = [1, 1]} : vector<4x128xbf16> to vector<4x20xbf16>
    %38 = vector.extract_strided_slice %15 {offsets = [0, 0], sizes = [4, 108], strides = [1, 1]} : vector<4x128xbf16> to vector<4x108xbf16>
    %39 = tpu.concatenate %37, %38 in 1 : vector<4x20xbf16>, vector<4x108xbf16> -> vector<4x128xbf16>
    %c1_29 = arith.constant 1 : index
    %c0_30 = arith.constant 0 : index
    %c0_31 = arith.constant 0 : index
    %40 = vector.load %arg2[%c1_29, %c0_30, %c0_31] : memref<26x1x128xbf16, #tpu.memory_space<vmem>>, vector<1x1x128xbf16>
    %41 = vector.shape_cast %40 : vector<1x1x128xbf16> to vector<1x128xbf16>
    %42 = vector.broadcast %41 : vector<1x128xbf16> to vector<4x128xbf16>
    %43 = arith.mulf %39, %42 : vector<4x128xbf16>
    %c2_32 = arith.constant 2 : index
    %c0_33 = arith.constant 0 : index
    %c0_34 = arith.constant 0 : index
    %44 = vector.load %arg3[%c2_32, %c0_33, %c0_34] : memref<27x16x4xbf16, #tpu.memory_space<vmem>>, vector<1x16x4xbf16>
    %45 = vector.shape_cast %44 : vector<1x16x4xbf16> to vector<16x4xbf16>
    %cst_35 = arith.constant dense<0.000000e+00> : vector<16x128xf32>
    %46 = tpu.matmul %45, %43, %cst_35 {dimension_numbers = #tpu.dot_dimension_numbers<[1], [0], [0], [1], [0, 0, 1, 1], [], []>} : vector<16x4xbf16>, vector<4x128xbf16>, vector<16x128xf32> -> vector<16x128xf32>
    %47 = arith.addf %36, %46 : vector<16x128xf32>
    %48 = vector.extract_strided_slice %11 {offsets = [0, 111], sizes = [4, 17], strides = [1, 1]} : vector<4x128xbf16> to vector<4x17xbf16>
    %49 = vector.extract_strided_slice %11 {offsets = [0, 0], sizes = [4, 111], strides = [1, 1]} : vector<4x128xbf16> to vector<4x111xbf16>
    %50 = tpu.concatenate %48, %49 in 1 : vector<4x17xbf16>, vector<4x111xbf16> -> vector<4x128xbf16>
    %c2_36 = arith.constant 2 : index
    %c0_37 = arith.constant 0 : index
    %c0_38 = arith.constant 0 : index
    %51 = vector.load %arg2[%c2_36, %c0_37, %c0_38] : memref<26x1x128xbf16, #tpu.memory_space<vmem>>, vector<1x1x128xbf16>
    %52 = vector.shape_cast %51 : vector<1x1x128xbf16> to vector<1x128xbf16>
    %53 = vector.broadcast %52 : vector<1x128xbf16> to vector<4x128xbf16>
    %54 = arith.mulf %50, %53 : vector<4x128xbf16>
    %c3_39 = arith.constant 3 : index
    %c0_40 = arith.constant 0 : index
    %c0_41 = arith.constant 0 : index
    %55 = vector.load %arg3[%c3_39, %c0_40, %c0_41] : memref<27x16x4xbf16, #tpu.memory_space<vmem>>, vector<1x16x4xbf16>
    %56 = vector.shape_cast %55 : vector<1x16x4xbf16> to vector<16x4xbf16>
    %cst_42 = arith.constant dense<0.000000e+00> : vector<16x128xf32>
    %57 = tpu.matmul %56, %54, %cst_42 {dimension_numbers = #tpu.dot_dimension_numbers<[1], [0], [0], [1], [0, 0, 1, 1], [], []>} : vector<16x4xbf16>, vector<4x128xbf16>, vector<16x128xf32> -> vector<16x128xf32>
    %58 = arith.addf %47, %57 : vector<16x128xf32>
    %59 = vector.extract_strided_slice %9 {offsets = [0, 112], sizes = [4, 16], strides = [1, 1]} : vector<4x128xbf16> to vector<4x16xbf16>
    %60 = vector.extract_strided_slice %9 {offsets = [0, 0], sizes = [4, 112], strides = [1, 1]} : vector<4x128xbf16> to vector<4x112xbf16>
    %61 = tpu.concatenate %59, %60 in 1 : vector<4x16xbf16>, vector<4x112xbf16> -> vector<4x128xbf16>
    %c3_43 = arith.constant 3 : index
    %c0_44 = arith.constant 0 : index
    %c0_45 = arith.constant 0 : index
    %62 = vector.load %arg2[%c3_43, %c0_44, %c0_45] : memref<26x1x128xbf16, #tpu.memory_space<vmem>>, vector<1x1x128xbf16>
    %63 = vector.shape_cast %62 : vector<1x1x128xbf16> to vector<1x128xbf16>
    %64 = vector.broadcast %63 : vector<1x128xbf16> to vector<4x128xbf16>
    %65 = arith.mulf %61, %64 : vector<4x128xbf16>
    %c4_46 = arith.constant 4 : index
    %c0_47 = arith.constant 0 : index
    %c0_48 = arith.constant 0 : index
    %66 = vector.load %arg3[%c4_46, %c0_47, %c0_48] : memref<27x16x4xbf16, #tpu.memory_space<vmem>>, vector<1x16x4xbf16>
    %67 = vector.shape_cast %66 : vector<1x16x4xbf16> to vector<16x4xbf16>
    %cst_49 = arith.constant dense<0.000000e+00> : vector<16x128xf32>
    %68 = tpu.matmul %67, %65, %cst_49 {dimension_numbers = #tpu.dot_dimension_numbers<[1], [0], [0], [1], [0, 0, 1, 1], [], []>} : vector<16x4xbf16>, vector<4x128xbf16>, vector<16x128xf32> -> vector<16x128xf32>
    %69 = arith.addf %58, %68 : vector<16x128xf32>
    %70 = vector.extract_strided_slice %11 {offsets = [0, 112], sizes = [4, 16], strides = [1, 1]} : vector<4x128xbf16> to vector<4x16xbf16>
    %71 = vector.extract_strided_slice %11 {offsets = [0, 0], sizes = [4, 112], strides = [1, 1]} : vector<4x128xbf16> to vector<4x112xbf16>
    %72 = tpu.concatenate %70, %71 in 1 : vector<4x16xbf16>, vector<4x112xbf16> -> vector<4x128xbf16>
    %c3_50 = arith.constant 3 : index
    %c0_51 = arith.constant 0 : index
    %c0_52 = arith.constant 0 : index
    %73 = vector.load %arg2[%c3_50, %c0_51, %c0_52] : memref<26x1x128xbf16, #tpu.memory_space<vmem>>, vector<1x1x128xbf16>
    %74 = vector.shape_cast %73 : vector<1x1x128xbf16> to vector<1x128xbf16>
    %75 = vector.broadcast %74 : vector<1x128xbf16> to vector<4x128xbf16>
    %76 = arith.mulf %72, %75 : vector<4x128xbf16>
    %c5_53 = arith.constant 5 : index
    %c0_54 = arith.constant 0 : index
    %c0_55 = arith.constant 0 : index
    %77 = vector.load %arg3[%c5_53, %c0_54, %c0_55] : memref<27x16x4xbf16, #tpu.memory_space<vmem>>, vector<1x16x4xbf16>
    %78 = vector.shape_cast %77 : vector<1x16x4xbf16> to vector<16x4xbf16>
    %cst_56 = arith.constant dense<0.000000e+00> : vector<16x128xf32>
    %79 = tpu.matmul %78, %76, %cst_56 {dimension_numbers = #tpu.dot_dimension_numbers<[1], [0], [0], [1], [0, 0, 1, 1], [], []>} : vector<16x4xbf16>, vector<4x128xbf16>, vector<16x128xf32> -> vector<16x128xf32>
    %80 = arith.addf %69, %79 : vector<16x128xf32>
    %81 = vector.extract_strided_slice %15 {offsets = [0, 111], sizes = [4, 17], strides = [1, 1]} : vector<4x128xbf16> to vector<4x17xbf16>
    %82 = vector.extract_strided_slice %15 {offsets = [0, 0], sizes = [4, 111], strides = [1, 1]} : vector<4x128xbf16> to vector<4x111xbf16>
    %83 = tpu.concatenate %81, %82 in 1 : vector<4x17xbf16>, vector<4x111xbf16> -> vector<4x128xbf16>
    %c2_57 = arith.constant 2 : index
    %c0_58 = arith.constant 0 : index
    %c0_59 = arith.constant 0 : index
    %84 = vector.load %arg2[%c2_57, %c0_58, %c0_59] : memref<26x1x128xbf16, #tpu.memory_space<vmem>>, vector<1x1x128xbf16>
    %85 = vector.shape_cast %84 : vector<1x1x128xbf16> to vector<1x128xbf16>
    %86 = vector.broadcast %85 : vector<1x128xbf16> to vector<4x128xbf16>
    %87 = arith.mulf %83, %86 : vector<4x128xbf16>
    %c6_60 = arith.constant 6 : index
    %c0_61 = arith.constant 0 : index
    %c0_62 = arith.constant 0 : index
    %88 = vector.load %arg3[%c6_60, %c0_61, %c0_62] : memref<27x16x4xbf16, #tpu.memory_space<vmem>>, vector<1x16x4xbf16>
    %89 = vector.shape_cast %88 : vector<1x16x4xbf16> to vector<16x4xbf16>
    %cst_63 = arith.constant dense<0.000000e+00> : vector<16x128xf32>
    %90 = tpu.matmul %89, %87, %cst_63 {dimension_numbers = #tpu.dot_dimension_numbers<[1], [0], [0], [1], [0, 0, 1, 1], [], []>} : vector<16x4xbf16>, vector<4x128xbf16>, vector<16x128xf32> -> vector<16x128xf32>
    %91 = arith.addf %80, %90 : vector<16x128xf32>
    %92 = vector.extract_strided_slice %13 {offsets = [0, 112], sizes = [4, 16], strides = [1, 1]} : vector<4x128xbf16> to vector<4x16xbf16>
    %93 = vector.extract_strided_slice %13 {offsets = [0, 0], sizes = [4, 112], strides = [1, 1]} : vector<4x128xbf16> to vector<4x112xbf16>
    %94 = tpu.concatenate %92, %93 in 1 : vector<4x16xbf16>, vector<4x112xbf16> -> vector<4x128xbf16>
    %c3_64 = arith.constant 3 : index
    %c0_65 = arith.constant 0 : index
    %c0_66 = arith.constant 0 : index
    %95 = vector.load %arg2[%c3_64, %c0_65, %c0_66] : memref<26x1x128xbf16, #tpu.memory_space<vmem>>, vector<1x1x128xbf16>
    %96 = vector.shape_cast %95 : vector<1x1x128xbf16> to vector<1x128xbf16>
    %97 = vector.broadcast %96 : vector<1x128xbf16> to vector<4x128xbf16>
    %98 = arith.mulf %94, %97 : vector<4x128xbf16>
    %c7_67 = arith.constant 7 : index
    %c0_68 = arith.constant 0 : index
    %c0_69 = arith.constant 0 : index
    %99 = vector.load %arg3[%c7_67, %c0_68, %c0_69] : memref<27x16x4xbf16, #tpu.memory_space<vmem>>, vector<1x16x4xbf16>
    %100 = vector.shape_cast %99 : vector<1x16x4xbf16> to vector<16x4xbf16>
    %cst_70 = arith.constant dense<0.000000e+00> : vector<16x128xf32>
    %101 = tpu.matmul %100, %98, %cst_70 {dimension_numbers = #tpu.dot_dimension_numbers<[1], [0], [0], [1], [0, 0, 1, 1], [], []>} : vector<16x4xbf16>, vector<4x128xbf16>, vector<16x128xf32> -> vector<16x128xf32>
    %102 = arith.addf %91, %101 : vector<16x128xf32>
    %103 = vector.extract_strided_slice %15 {offsets = [0, 112], sizes = [4, 16], strides = [1, 1]} : vector<4x128xbf16> to vector<4x16xbf16>
    %104 = vector.extract_strided_slice %15 {offsets = [0, 0], sizes = [4, 112], strides = [1, 1]} : vector<4x128xbf16> to vector<4x112xbf16>
    %105 = tpu.concatenate %103, %104 in 1 : vector<4x16xbf16>, vector<4x112xbf16> -> vector<4x128xbf16>
    %c3_71 = arith.constant 3 : index
    %c0_72 = arith.constant 0 : index
    %c0_73 = arith.constant 0 : index
    %106 = vector.load %arg2[%c3_71, %c0_72, %c0_73] : memref<26x1x128xbf16, #tpu.memory_space<vmem>>, vector<1x1x128xbf16>
    %107 = vector.shape_cast %106 : vector<1x1x128xbf16> to vector<1x128xbf16>
    %108 = vector.broadcast %107 : vector<1x128xbf16> to vector<4x128xbf16>
    %109 = arith.mulf %105, %108 : vector<4x128xbf16>
    %c8 = arith.constant 8 : index
    %c0_74 = arith.constant 0 : index
    %c0_75 = arith.constant 0 : index
    %110 = vector.load %arg3[%c8, %c0_74, %c0_75] : memref<27x16x4xbf16, #tpu.memory_space<vmem>>, vector<1x16x4xbf16>
    %111 = vector.shape_cast %110 : vector<1x16x4xbf16> to vector<16x4xbf16>
    %cst_76 = arith.constant dense<0.000000e+00> : vector<16x128xf32>
    %112 = tpu.matmul %111, %109, %cst_76 {dimension_numbers = #tpu.dot_dimension_numbers<[1], [0], [0], [1], [0, 0, 1, 1], [], []>} : vector<16x4xbf16>, vector<4x128xbf16>, vector<16x128xf32> -> vector<16x128xf32>
    %113 = arith.addf %102, %112 : vector<16x128xf32>
    %114 = vector.extract_strided_slice %7 {offsets = [0, 123], sizes = [4, 5], strides = [1, 1]} : vector<4x128xbf16> to vector<4x5xbf16>
    %115 = vector.extract_strided_slice %7 {offsets = [0, 0], sizes = [4, 123], strides = [1, 1]} : vector<4x128xbf16> to vector<4x123xbf16>
    %116 = tpu.concatenate %114, %115 in 1 : vector<4x5xbf16>, vector<4x123xbf16> -> vector<4x128xbf16>
    %c4_77 = arith.constant 4 : index
    %c0_78 = arith.constant 0 : index
    %c0_79 = arith.constant 0 : index
    %117 = vector.load %arg2[%c4_77, %c0_78, %c0_79] : memref<26x1x128xbf16, #tpu.memory_space<vmem>>, vector<1x1x128xbf16>
    %118 = vector.shape_cast %117 : vector<1x1x128xbf16> to vector<1x128xbf16>
    %119 = vector.broadcast %118 : vector<1x128xbf16> to vector<4x128xbf16>
    %120 = arith.mulf %116, %119 : vector<4x128xbf16>
    %c9 = arith.constant 9 : index
    %c0_80 = arith.constant 0 : index
    %c0_81 = arith.constant 0 : index
    %121 = vector.load %arg3[%c9, %c0_80, %c0_81] : memref<27x16x4xbf16, #tpu.memory_space<vmem>>, vector<1x16x4xbf16>
    %122 = vector.shape_cast %121 : vector<1x16x4xbf16> to vector<16x4xbf16>
    %cst_82 = arith.constant dense<0.000000e+00> : vector<16x128xf32>
    %123 = tpu.matmul %122, %120, %cst_82 {dimension_numbers = #tpu.dot_dimension_numbers<[1], [0], [0], [1], [0, 0, 1, 1], [], []>} : vector<16x4xbf16>, vector<4x128xbf16>, vector<16x128xf32> -> vector<16x128xf32>
    %124 = arith.addf %113, %123 : vector<16x128xf32>
    %125 = vector.extract_strided_slice %5 {offsets = [0, 124], sizes = [4, 4], strides = [1, 1]} : vector<4x128xbf16> to vector<4x4xbf16>
    %126 = vector.extract_strided_slice %5 {offsets = [0, 0], sizes = [4, 124], strides = [1, 1]} : vector<4x128xbf16> to vector<4x124xbf16>
    %127 = tpu.concatenate %125, %126 in 1 : vector<4x4xbf16>, vector<4x124xbf16> -> vector<4x128xbf16>
    %c5_83 = arith.constant 5 : index
    %c0_84 = arith.constant 0 : index
    %c0_85 = arith.constant 0 : index
    %128 = vector.load %arg2[%c5_83, %c0_84, %c0_85] : memref<26x1x128xbf16, #tpu.memory_space<vmem>>, vector<1x1x128xbf16>
    %129 = vector.shape_cast %128 : vector<1x1x128xbf16> to vector<1x128xbf16>
    %130 = vector.broadcast %129 : vector<1x128xbf16> to vector<4x128xbf16>
    %131 = arith.mulf %127, %130 : vector<4x128xbf16>
    %c10 = arith.constant 10 : index
    %c0_86 = arith.constant 0 : index
    %c0_87 = arith.constant 0 : index
    %132 = vector.load %arg3[%c10, %c0_86, %c0_87] : memref<27x16x4xbf16, #tpu.memory_space<vmem>>, vector<1x16x4xbf16>
    %133 = vector.shape_cast %132 : vector<1x16x4xbf16> to vector<16x4xbf16>
    %cst_88 = arith.constant dense<0.000000e+00> : vector<16x128xf32>
    %134 = tpu.matmul %133, %131, %cst_88 {dimension_numbers = #tpu.dot_dimension_numbers<[1], [0], [0], [1], [0, 0, 1, 1], [], []>} : vector<16x4xbf16>, vector<4x128xbf16>, vector<16x128xf32> -> vector<16x128xf32>
    %135 = arith.addf %124, %134 : vector<16x128xf32>
    %136 = vector.extract_strided_slice %7 {offsets = [0, 124], sizes = [4, 4], strides = [1, 1]} : vector<4x128xbf16> to vector<4x4xbf16>
    %137 = vector.extract_strided_slice %7 {offsets = [0, 0], sizes = [4, 124], strides = [1, 1]} : vector<4x128xbf16> to vector<4x124xbf16>
    %138 = tpu.concatenate %136, %137 in 1 : vector<4x4xbf16>, vector<4x124xbf16> -> vector<4x128xbf16>
    %c5_89 = arith.constant 5 : index
    %c0_90 = arith.constant 0 : index
    %c0_91 = arith.constant 0 : index
    %139 = vector.load %arg2[%c5_89, %c0_90, %c0_91] : memref<26x1x128xbf16, #tpu.memory_space<vmem>>, vector<1x1x128xbf16>
    %140 = vector.shape_cast %139 : vector<1x1x128xbf16> to vector<1x128xbf16>
    %141 = vector.broadcast %140 : vector<1x128xbf16> to vector<4x128xbf16>
    %142 = arith.mulf %138, %141 : vector<4x128xbf16>
    %c11 = arith.constant 11 : index
    %c0_92 = arith.constant 0 : index
    %c0_93 = arith.constant 0 : index
    %143 = vector.load %arg3[%c11, %c0_92, %c0_93] : memref<27x16x4xbf16, #tpu.memory_space<vmem>>, vector<1x16x4xbf16>
    %144 = vector.shape_cast %143 : vector<1x16x4xbf16> to vector<16x4xbf16>
    %cst_94 = arith.constant dense<0.000000e+00> : vector<16x128xf32>
    %145 = tpu.matmul %144, %142, %cst_94 {dimension_numbers = #tpu.dot_dimension_numbers<[1], [0], [0], [1], [0, 0, 1, 1], [], []>} : vector<16x4xbf16>, vector<4x128xbf16>, vector<16x128xf32> -> vector<16x128xf32>
    %146 = arith.addf %135, %145 : vector<16x128xf32>
    %147 = vector.extract_strided_slice %3 {offsets = [0, 127], sizes = [4, 1], strides = [1, 1]} : vector<4x128xbf16> to vector<4x1xbf16>
    %148 = vector.extract_strided_slice %3 {offsets = [0, 0], sizes = [4, 127], strides = [1, 1]} : vector<4x128xbf16> to vector<4x127xbf16>
    %149 = tpu.concatenate %147, %148 in 1 : vector<4x1xbf16>, vector<4x127xbf16> -> vector<4x128xbf16>
    %c6_95 = arith.constant 6 : index
    %c0_96 = arith.constant 0 : index
    %c0_97 = arith.constant 0 : index
    %150 = vector.load %arg2[%c6_95, %c0_96, %c0_97] : memref<26x1x128xbf16, #tpu.memory_space<vmem>>, vector<1x1x128xbf16>
    %151 = vector.shape_cast %150 : vector<1x1x128xbf16> to vector<1x128xbf16>
    %152 = vector.broadcast %151 : vector<1x128xbf16> to vector<4x128xbf16>
    %153 = arith.mulf %149, %152 : vector<4x128xbf16>
    %c12 = arith.constant 12 : index
    %c0_98 = arith.constant 0 : index
    %c0_99 = arith.constant 0 : index
    %154 = vector.load %arg3[%c12, %c0_98, %c0_99] : memref<27x16x4xbf16, #tpu.memory_space<vmem>>, vector<1x16x4xbf16>
    %155 = vector.shape_cast %154 : vector<1x16x4xbf16> to vector<16x4xbf16>
    %cst_100 = arith.constant dense<0.000000e+00> : vector<16x128xf32>
    %156 = tpu.matmul %155, %153, %cst_100 {dimension_numbers = #tpu.dot_dimension_numbers<[1], [0], [0], [1], [0, 0, 1, 1], [], []>} : vector<16x4xbf16>, vector<4x128xbf16>, vector<16x128xf32> -> vector<16x128xf32>
    %157 = arith.addf %146, %156 : vector<16x128xf32>
    %c13 = arith.constant 13 : index
    %c0_101 = arith.constant 0 : index
    %c0_102 = arith.constant 0 : index
    %158 = vector.load %arg3[%c13, %c0_101, %c0_102] : memref<27x16x4xbf16, #tpu.memory_space<vmem>>, vector<1x16x4xbf16>
    %159 = vector.shape_cast %158 : vector<1x16x4xbf16> to vector<16x4xbf16>
    %cst_103 = arith.constant dense<0.000000e+00> : vector<16x128xf32>
    %160 = tpu.matmul %159, %1, %cst_103 {dimension_numbers = #tpu.dot_dimension_numbers<[1], [0], [0], [1], [0, 0, 1, 1], [], []>} : vector<16x4xbf16>, vector<4x128xbf16>, vector<16x128xf32> -> vector<16x128xf32>
    %161 = arith.addf %157, %160 : vector<16x128xf32>
    %c14 = arith.constant 14 : index
    %c0_104 = arith.constant 0 : index
    %c0_105 = arith.constant 0 : index
    %162 = vector.load %arg3[%c14, %c0_104, %c0_105] : memref<27x16x4xbf16, #tpu.memory_space<vmem>>, vector<1x16x4xbf16>
    %163 = vector.shape_cast %162 : vector<1x16x4xbf16> to vector<16x4xbf16>
    %cst_106 = arith.constant dense<0.000000e+00> : vector<16x128xf32>
    %164 = tpu.matmul %163, %3, %cst_106 {dimension_numbers = #tpu.dot_dimension_numbers<[1], [0], [0], [1], [0, 0, 1, 1], [], []>} : vector<16x4xbf16>, vector<4x128xbf16>, vector<16x128xf32> -> vector<16x128xf32>
    %165 = arith.addf %161, %164 : vector<16x128xf32>
    %166 = vector.extract_strided_slice %7 {offsets = [0, 127], sizes = [4, 1], strides = [1, 1]} : vector<4x128xbf16> to vector<4x1xbf16>
    %167 = vector.extract_strided_slice %7 {offsets = [0, 0], sizes = [4, 127], strides = [1, 1]} : vector<4x128xbf16> to vector<4x127xbf16>
    %168 = tpu.concatenate %166, %167 in 1 : vector<4x1xbf16>, vector<4x127xbf16> -> vector<4x128xbf16>
    %c6_107 = arith.constant 6 : index
    %c0_108 = arith.constant 0 : index
    %c0_109 = arith.constant 0 : index
    %169 = vector.load %arg2[%c6_107, %c0_108, %c0_109] : memref<26x1x128xbf16, #tpu.memory_space<vmem>>, vector<1x1x128xbf16>
    %170 = vector.shape_cast %169 : vector<1x1x128xbf16> to vector<1x128xbf16>
    %171 = vector.broadcast %170 : vector<1x128xbf16> to vector<4x128xbf16>
    %172 = arith.mulf %168, %171 : vector<4x128xbf16>
    %c15 = arith.constant 15 : index
    %c0_110 = arith.constant 0 : index
    %c0_111 = arith.constant 0 : index
    %173 = vector.load %arg3[%c15, %c0_110, %c0_111] : memref<27x16x4xbf16, #tpu.memory_space<vmem>>, vector<1x16x4xbf16>
    %174 = vector.shape_cast %173 : vector<1x16x4xbf16> to vector<16x4xbf16>
    %cst_112 = arith.constant dense<0.000000e+00> : vector<16x128xf32>
    %175 = tpu.matmul %174, %172, %cst_112 {dimension_numbers = #tpu.dot_dimension_numbers<[1], [0], [0], [1], [0, 0, 1, 1], [], []>} : vector<16x4xbf16>, vector<4x128xbf16>, vector<16x128xf32> -> vector<16x128xf32>
    %176 = arith.addf %165, %175 : vector<16x128xf32>
    %c16 = arith.constant 16 : index
    %c0_113 = arith.constant 0 : index
    %c0_114 = arith.constant 0 : index
    %177 = vector.load %arg3[%c16, %c0_113, %c0_114] : memref<27x16x4xbf16, #tpu.memory_space<vmem>>, vector<1x16x4xbf16>
    %178 = vector.shape_cast %177 : vector<1x16x4xbf16> to vector<16x4xbf16>
    %cst_115 = arith.constant dense<0.000000e+00> : vector<16x128xf32>
    %179 = tpu.matmul %178, %5, %cst_115 {dimension_numbers = #tpu.dot_dimension_numbers<[1], [0], [0], [1], [0, 0, 1, 1], [], []>} : vector<16x4xbf16>, vector<4x128xbf16>, vector<16x128xf32> -> vector<16x128xf32>
    %180 = arith.addf %176, %179 : vector<16x128xf32>
    %c17 = arith.constant 17 : index
    %c0_116 = arith.constant 0 : index
    %c0_117 = arith.constant 0 : index
    %181 = vector.load %arg3[%c17, %c0_116, %c0_117] : memref<27x16x4xbf16, #tpu.memory_space<vmem>>, vector<1x16x4xbf16>
    %182 = vector.shape_cast %181 : vector<1x16x4xbf16> to vector<16x4xbf16>
    %cst_118 = arith.constant dense<0.000000e+00> : vector<16x128xf32>
    %183 = tpu.matmul %182, %7, %cst_118 {dimension_numbers = #tpu.dot_dimension_numbers<[1], [0], [0], [1], [0, 0, 1, 1], [], []>} : vector<16x4xbf16>, vector<4x128xbf16>, vector<16x128xf32> -> vector<16x128xf32>
    %184 = arith.addf %180, %183 : vector<16x128xf32>
    %185 = vector.extract_strided_slice %15 {offsets = [0, 123], sizes = [4, 5], strides = [1, 1]} : vector<4x128xbf16> to vector<4x5xbf16>
    %186 = vector.extract_strided_slice %15 {offsets = [0, 0], sizes = [4, 123], strides = [1, 1]} : vector<4x128xbf16> to vector<4x123xbf16>
    %187 = tpu.concatenate %185, %186 in 1 : vector<4x5xbf16>, vector<4x123xbf16> -> vector<4x128xbf16>
    %c4_119 = arith.constant 4 : index
    %c0_120 = arith.constant 0 : index
    %c0_121 = arith.constant 0 : index
    %188 = vector.load %arg2[%c4_119, %c0_120, %c0_121] : memref<26x1x128xbf16, #tpu.memory_space<vmem>>, vector<1x1x128xbf16>
    %189 = vector.shape_cast %188 : vector<1x1x128xbf16> to vector<1x128xbf16>
    %190 = vector.broadcast %189 : vector<1x128xbf16> to vector<4x128xbf16>
    %191 = arith.mulf %187, %190 : vector<4x128xbf16>
    %c18 = arith.constant 18 : index
    %c0_122 = arith.constant 0 : index
    %c0_123 = arith.constant 0 : index
    %192 = vector.load %arg3[%c18, %c0_122, %c0_123] : memref<27x16x4xbf16, #tpu.memory_space<vmem>>, vector<1x16x4xbf16>
    %193 = vector.shape_cast %192 : vector<1x16x4xbf16> to vector<16x4xbf16>
    %cst_124 = arith.constant dense<0.000000e+00> : vector<16x128xf32>
    %194 = tpu.matmul %193, %191, %cst_124 {dimension_numbers = #tpu.dot_dimension_numbers<[1], [0], [0], [1], [0, 0, 1, 1], [], []>} : vector<16x4xbf16>, vector<4x128xbf16>, vector<16x128xf32> -> vector<16x128xf32>
    %195 = arith.addf %184, %194 : vector<16x128xf32>
    %196 = vector.extract_strided_slice %13 {offsets = [0, 124], sizes = [4, 4], strides = [1, 1]} : vector<4x128xbf16> to vector<4x4xbf16>
    %197 = vector.extract_strided_slice %13 {offsets = [0, 0], sizes = [4, 124], strides = [1, 1]} : vector<4x128xbf16> to vector<4x124xbf16>
    %198 = tpu.concatenate %196, %197 in 1 : vector<4x4xbf16>, vector<4x124xbf16> -> vector<4x128xbf16>
    %c5_125 = arith.constant 5 : index
    %c0_126 = arith.constant 0 : index
    %c0_127 = arith.constant 0 : index
    %199 = vector.load %arg2[%c5_125, %c0_126, %c0_127] : memref<26x1x128xbf16, #tpu.memory_space<vmem>>, vector<1x1x128xbf16>
    %200 = vector.shape_cast %199 : vector<1x1x128xbf16> to vector<1x128xbf16>
    %201 = vector.broadcast %200 : vector<1x128xbf16> to vector<4x128xbf16>
    %202 = arith.mulf %198, %201 : vector<4x128xbf16>
    %c19 = arith.constant 19 : index
    %c0_128 = arith.constant 0 : index
    %c0_129 = arith.constant 0 : index
    %203 = vector.load %arg3[%c19, %c0_128, %c0_129] : memref<27x16x4xbf16, #tpu.memory_space<vmem>>, vector<1x16x4xbf16>
    %204 = vector.shape_cast %203 : vector<1x16x4xbf16> to vector<16x4xbf16>
    %cst_130 = arith.constant dense<0.000000e+00> : vector<16x128xf32>
    %205 = tpu.matmul %204, %202, %cst_130 {dimension_numbers = #tpu.dot_dimension_numbers<[1], [0], [0], [1], [0, 0, 1, 1], [], []>} : vector<16x4xbf16>, vector<4x128xbf16>, vector<16x128xf32> -> vector<16x128xf32>
    %206 = arith.addf %195, %205 : vector<16x128xf32>
    %207 = vector.extract_strided_slice %15 {offsets = [0, 124], sizes = [4, 4], strides = [1, 1]} : vector<4x128xbf16> to vector<4x4xbf16>
    %208 = vector.extract_strided_slice %15 {offsets = [0, 0], sizes = [4, 124], strides = [1, 1]} : vector<4x128xbf16> to vector<4x124xbf16>
    %209 = tpu.concatenate %207, %208 in 1 : vector<4x4xbf16>, vector<4x124xbf16> -> vector<4x128xbf16>
    %c5_131 = arith.constant 5 : index
    %c0_132 = arith.constant 0 : index
    %c0_133 = arith.constant 0 : index
    %210 = vector.load %arg2[%c5_131, %c0_132, %c0_133] : memref<26x1x128xbf16, #tpu.memory_space<vmem>>, vector<1x1x128xbf16>
    %211 = vector.shape_cast %210 : vector<1x1x128xbf16> to vector<1x128xbf16>
    %212 = vector.broadcast %211 : vector<1x128xbf16> to vector<4x128xbf16>
    %213 = arith.mulf %209, %212 : vector<4x128xbf16>
    %c20 = arith.constant 20 : index
    %c0_134 = arith.constant 0 : index
    %c0_135 = arith.constant 0 : index
    %214 = vector.load %arg3[%c20, %c0_134, %c0_135] : memref<27x16x4xbf16, #tpu.memory_space<vmem>>, vector<1x16x4xbf16>
    %215 = vector.shape_cast %214 : vector<1x16x4xbf16> to vector<16x4xbf16>
    %cst_136 = arith.constant dense<0.000000e+00> : vector<16x128xf32>
    %216 = tpu.matmul %215, %213, %cst_136 {dimension_numbers = #tpu.dot_dimension_numbers<[1], [0], [0], [1], [0, 0, 1, 1], [], []>} : vector<16x4xbf16>, vector<4x128xbf16>, vector<16x128xf32> -> vector<16x128xf32>
    %217 = arith.addf %206, %216 : vector<16x128xf32>
    %218 = vector.extract_strided_slice %11 {offsets = [0, 127], sizes = [4, 1], strides = [1, 1]} : vector<4x128xbf16> to vector<4x1xbf16>
    %219 = vector.extract_strided_slice %11 {offsets = [0, 0], sizes = [4, 127], strides = [1, 1]} : vector<4x128xbf16> to vector<4x127xbf16>
    %220 = tpu.concatenate %218, %219 in 1 : vector<4x1xbf16>, vector<4x127xbf16> -> vector<4x128xbf16>
    %c6_137 = arith.constant 6 : index
    %c0_138 = arith.constant 0 : index
    %c0_139 = arith.constant 0 : index
    %221 = vector.load %arg2[%c6_137, %c0_138, %c0_139] : memref<26x1x128xbf16, #tpu.memory_space<vmem>>, vector<1x1x128xbf16>
    %222 = vector.shape_cast %221 : vector<1x1x128xbf16> to vector<1x128xbf16>
    %223 = vector.broadcast %222 : vector<1x128xbf16> to vector<4x128xbf16>
    %224 = arith.mulf %220, %223 : vector<4x128xbf16>
    %c21 = arith.constant 21 : index
    %c0_140 = arith.constant 0 : index
    %c0_141 = arith.constant 0 : index
    %225 = vector.load %arg3[%c21, %c0_140, %c0_141] : memref<27x16x4xbf16, #tpu.memory_space<vmem>>, vector<1x16x4xbf16>
    %226 = vector.shape_cast %225 : vector<1x16x4xbf16> to vector<16x4xbf16>
    %cst_142 = arith.constant dense<0.000000e+00> : vector<16x128xf32>
    %227 = tpu.matmul %226, %224, %cst_142 {dimension_numbers = #tpu.dot_dimension_numbers<[1], [0], [0], [1], [0, 0, 1, 1], [], []>} : vector<16x4xbf16>, vector<4x128xbf16>, vector<16x128xf32> -> vector<16x128xf32>
    %228 = arith.addf %217, %227 : vector<16x128xf32>
    %c22 = arith.constant 22 : index
    %c0_143 = arith.constant 0 : index
    %c0_144 = arith.constant 0 : index
    %229 = vector.load %arg3[%c22, %c0_143, %c0_144] : memref<27x16x4xbf16, #tpu.memory_space<vmem>>, vector<1x16x4xbf16>
    %230 = vector.shape_cast %229 : vector<1x16x4xbf16> to vector<16x4xbf16>
    %cst_145 = arith.constant dense<0.000000e+00> : vector<16x128xf32>
    %231 = tpu.matmul %230, %9, %cst_145 {dimension_numbers = #tpu.dot_dimension_numbers<[1], [0], [0], [1], [0, 0, 1, 1], [], []>} : vector<16x4xbf16>, vector<4x128xbf16>, vector<16x128xf32> -> vector<16x128xf32>
    %232 = arith.addf %228, %231 : vector<16x128xf32>
    %c23 = arith.constant 23 : index
    %c0_146 = arith.constant 0 : index
    %c0_147 = arith.constant 0 : index
    %233 = vector.load %arg3[%c23, %c0_146, %c0_147] : memref<27x16x4xbf16, #tpu.memory_space<vmem>>, vector<1x16x4xbf16>
    %234 = vector.shape_cast %233 : vector<1x16x4xbf16> to vector<16x4xbf16>
    %cst_148 = arith.constant dense<0.000000e+00> : vector<16x128xf32>
    %235 = tpu.matmul %234, %11, %cst_148 {dimension_numbers = #tpu.dot_dimension_numbers<[1], [0], [0], [1], [0, 0, 1, 1], [], []>} : vector<16x4xbf16>, vector<4x128xbf16>, vector<16x128xf32> -> vector<16x128xf32>
    %236 = arith.addf %232, %235 : vector<16x128xf32>
    %237 = vector.extract_strided_slice %15 {offsets = [0, 127], sizes = [4, 1], strides = [1, 1]} : vector<4x128xbf16> to vector<4x1xbf16>
    %238 = vector.extract_strided_slice %15 {offsets = [0, 0], sizes = [4, 127], strides = [1, 1]} : vector<4x128xbf16> to vector<4x127xbf16>
    %239 = tpu.concatenate %237, %238 in 1 : vector<4x1xbf16>, vector<4x127xbf16> -> vector<4x128xbf16>
    %c6_149 = arith.constant 6 : index
    %c0_150 = arith.constant 0 : index
    %c0_151 = arith.constant 0 : index
    %240 = vector.load %arg2[%c6_149, %c0_150, %c0_151] : memref<26x1x128xbf16, #tpu.memory_space<vmem>>, vector<1x1x128xbf16>
    %241 = vector.shape_cast %240 : vector<1x1x128xbf16> to vector<1x128xbf16>
    %242 = vector.broadcast %241 : vector<1x128xbf16> to vector<4x128xbf16>
    %243 = arith.mulf %239, %242 : vector<4x128xbf16>
    %c24 = arith.constant 24 : index
    %c0_152 = arith.constant 0 : index
    %c0_153 = arith.constant 0 : index
    %244 = vector.load %arg3[%c24, %c0_152, %c0_153] : memref<27x16x4xbf16, #tpu.memory_space<vmem>>, vector<1x16x4xbf16>
    %245 = vector.shape_cast %244 : vector<1x16x4xbf16> to vector<16x4xbf16>
    %cst_154 = arith.constant dense<0.000000e+00> : vector<16x128xf32>
    %246 = tpu.matmul %245, %243, %cst_154 {dimension_numbers = #tpu.dot_dimension_numbers<[1], [0], [0], [1], [0, 0, 1, 1], [], []>} : vector<16x4xbf16>, vector<4x128xbf16>, vector<16x128xf32> -> vector<16x128xf32>
    %247 = arith.addf %236, %246 : vector<16x128xf32>
    %c25 = arith.constant 25 : index
    %c0_155 = arith.constant 0 : index
    %c0_156 = arith.constant 0 : index
    %248 = vector.load %arg3[%c25, %c0_155, %c0_156] : memref<27x16x4xbf16, #tpu.memory_space<vmem>>, vector<1x16x4xbf16>
    %249 = vector.shape_cast %248 : vector<1x16x4xbf16> to vector<16x4xbf16>
    %cst_157 = arith.constant dense<0.000000e+00> : vector<16x128xf32>
    %250 = tpu.matmul %249, %13, %cst_157 {dimension_numbers = #tpu.dot_dimension_numbers<[1], [0], [0], [1], [0, 0, 1, 1], [], []>} : vector<16x4xbf16>, vector<4x128xbf16>, vector<16x128xf32> -> vector<16x128xf32>
    %251 = arith.addf %247, %250 : vector<16x128xf32>
    %c26 = arith.constant 26 : index
    %c0_158 = arith.constant 0 : index
    %c0_159 = arith.constant 0 : index
    %252 = vector.load %arg3[%c26, %c0_158, %c0_159] : memref<27x16x4xbf16, #tpu.memory_space<vmem>>, vector<1x16x4xbf16>
    %253 = vector.shape_cast %252 : vector<1x16x4xbf16> to vector<16x4xbf16>
    %cst_160 = arith.constant dense<0.000000e+00> : vector<16x128xf32>
    %254 = tpu.matmul %253, %15, %cst_160 {dimension_numbers = #tpu.dot_dimension_numbers<[1], [0], [0], [1], [0, 0, 1, 1], [], []>} : vector<16x4xbf16>, vector<4x128xbf16>, vector<16x128xf32> -> vector<16x128xf32>
    %255 = arith.addf %251, %254 : vector<16x128xf32>
    %c0_161 = arith.constant 0 : index
    %c0_162 = arith.constant 0 : index
    %256 = vector.load %arg4[%c0_161, %c0_162] : memref<16x1xf32, #tpu.memory_space<vmem>>, vector<16x1xf32>
    %257 = vector.extract_strided_slice %255 {offsets = [0, 0], sizes = [8, 128], strides = [1, 1]} : vector<16x128xf32> to vector<8x128xf32>
    %258 = vector.extract_strided_slice %256 {offsets = [0, 0], sizes = [8, 1], strides = [1, 1]} : vector<16x1xf32> to vector<8x1xf32>
    %259 = vector.broadcast %258 : vector<8x1xf32> to vector<8x128xf32>
    %260 = arith.addf %257, %259 : vector<8x128xf32>
    %261 = vector.extract_strided_slice %255 {offsets = [8, 0], sizes = [8, 128], strides = [1, 1]} : vector<16x128xf32> to vector<8x128xf32>
    %262 = vector.extract_strided_slice %256 {offsets = [8, 0], sizes = [8, 1], strides = [1, 1]} : vector<16x1xf32> to vector<8x1xf32>
    %263 = vector.broadcast %262 : vector<8x1xf32> to vector<8x128xf32>
    %264 = arith.addf %261, %263 : vector<8x128xf32>
    %cst_163 = arith.constant 5.000000e-01 : f32
    %265 = vector.broadcast %cst_163 : f32 to vector<8x128xf32>
    %266 = arith.mulf %265, %260 : vector<8x128xf32>
    %cst_164 = arith.constant 1.41421354 : f32
    %267 = vector.broadcast %cst_164 : f32 to vector<8x128xf32>
    %268 = arith.divf %260, %267 : vector<8x128xf32>
    %269 = math.erf %268 : vector<8x128xf32>
    %cst_165 = arith.constant 1.000000e+00 : f32
    %270 = vector.broadcast %cst_165 : f32 to vector<8x128xf32>
    %271 = arith.addf %270, %269 : vector<8x128xf32>
    %272 = arith.mulf %266, %271 : vector<8x128xf32>
    %c0_166 = arith.constant 0 : index
    %c0_167 = arith.constant 0 : index
    %273 = vector.load %arg5[%c0_166, %c0_167] : memref<8x8xbf16, #tpu.memory_space<vmem>>, vector<8x8xbf16>
    %274 = arith.truncf %272 : vector<8x128xf32> to vector<8x128xbf16>
    %cst_168 = arith.constant dense<0.000000e+00> : vector<8x128xf32>
    %275 = tpu.matmul %273, %274, %cst_168 {dimension_numbers = #tpu.dot_dimension_numbers<[1], [0], [0], [1], [0, 0, 1, 1], [], []>} : vector<8x8xbf16>, vector<8x128xbf16>, vector<8x128xf32> -> vector<8x128xf32>
    %c0_169 = arith.constant 0 : index
    %c0_170 = arith.constant 0 : index
    %276 = vector.load %arg6[%c0_169, %c0_170] : memref<8x1xf32, #tpu.memory_space<vmem>>, vector<8x1xf32>
    %277 = vector.broadcast %276 : vector<8x1xf32> to vector<8x128xf32>
    %278 = arith.addf %275, %277 : vector<8x128xf32>
    %279 = arith.addf %278, %264 : vector<8x128xf32>
    %cst_171 = arith.constant 5.000000e-01 : f32
    %280 = vector.broadcast %cst_171 : f32 to vector<8x128xf32>
    %281 = arith.mulf %280, %279 : vector<8x128xf32>
    %cst_172 = arith.constant 1.41421354 : f32
    %282 = vector.broadcast %cst_172 : f32 to vector<8x128xf32>
    %283 = arith.divf %279, %282 : vector<8x128xf32>
    %284 = math.erf %283 : vector<8x128xf32>
    %cst_173 = arith.constant 1.000000e+00 : f32
    %285 = vector.broadcast %cst_173 : f32 to vector<8x128xf32>
    %286 = arith.addf %285, %284 : vector<8x128xf32>
    %287 = arith.mulf %281, %286 : vector<8x128xf32>
    %288 = arith.truncf %287 : vector<8x128xf32> to vector<8x128xbf16>
    %289 = vector.extract_strided_slice %288 {offsets = [0, 107], sizes = [8, 21], strides = [1, 1]} : vector<8x128xbf16> to vector<8x21xbf16>
    %290 = vector.extract_strided_slice %288 {offsets = [0, 0], sizes = [8, 107], strides = [1, 1]} : vector<8x128xbf16> to vector<8x107xbf16>
    %291 = tpu.concatenate %289, %290 in 1 : vector<8x21xbf16>, vector<8x107xbf16> -> vector<8x128xbf16>
    %c0_174 = arith.constant 0 : index
    %c0_175 = arith.constant 0 : index
    %c0_176 = arith.constant 0 : index
    %292 = vector.load %arg2[%c0_174, %c0_175, %c0_176] : memref<26x1x128xbf16, #tpu.memory_space<vmem>>, vector<1x1x128xbf16>
    %293 = vector.shape_cast %292 : vector<1x1x128xbf16> to vector<1x128xbf16>
    %294 = vector.broadcast %293 : vector<1x128xbf16> to vector<8x128xbf16>
    %295 = arith.mulf %291, %294 : vector<8x128xbf16>
    %c0_177 = arith.constant 0 : index
    %c0_178 = arith.constant 0 : index
    %c0_179 = arith.constant 0 : index
    %296 = vector.load %arg7[%c0_177, %c0_178, %c0_179] : memref<27x8x8xbf16, #tpu.memory_space<vmem>>, vector<1x8x8xbf16>
    %297 = vector.shape_cast %296 : vector<1x8x8xbf16> to vector<8x8xbf16>
    %cst_180 = arith.constant dense<0.000000e+00> : vector<8x128xf32>
    %298 = tpu.matmul %297, %295, %cst_180 {dimension_numbers = #tpu.dot_dimension_numbers<[1], [0], [0], [1], [0, 0, 1, 1], [], []>} : vector<8x8xbf16>, vector<8x128xbf16>, vector<8x128xf32> -> vector<8x128xf32>
    %299 = vector.extract_strided_slice %288 {offsets = [0, 108], sizes = [8, 20], strides = [1, 1]} : vector<8x128xbf16> to vector<8x20xbf16>
    %300 = vector.extract_strided_slice %288 {offsets = [0, 0], sizes = [8, 108], strides = [1, 1]} : vector<8x128xbf16> to vector<8x108xbf16>
    %301 = tpu.concatenate %299, %300 in 1 : vector<8x20xbf16>, vector<8x108xbf16> -> vector<8x128xbf16>
    %c1_181 = arith.constant 1 : index
    %c0_182 = arith.constant 0 : index
    %c0_183 = arith.constant 0 : index
    %302 = vector.load %arg2[%c1_181, %c0_182, %c0_183] : memref<26x1x128xbf16, #tpu.memory_space<vmem>>, vector<1x1x128xbf16>
    %303 = vector.shape_cast %302 : vector<1x1x128xbf16> to vector<1x128xbf16>
    %304 = vector.broadcast %303 : vector<1x128xbf16> to vector<8x128xbf16>
    %305 = arith.mulf %301, %304 : vector<8x128xbf16>
    %c1_184 = arith.constant 1 : index
    %c0_185 = arith.constant 0 : index
    %c0_186 = arith.constant 0 : index
    %306 = vector.load %arg7[%c1_184, %c0_185, %c0_186] : memref<27x8x8xbf16, #tpu.memory_space<vmem>>, vector<1x8x8xbf16>
    %307 = vector.shape_cast %306 : vector<1x8x8xbf16> to vector<8x8xbf16>
    %cst_187 = arith.constant dense<0.000000e+00> : vector<8x128xf32>
    %308 = tpu.matmul %307, %305, %cst_187 {dimension_numbers = #tpu.dot_dimension_numbers<[1], [0], [0], [1], [0, 0, 1, 1], [], []>} : vector<8x8xbf16>, vector<8x128xbf16>, vector<8x128xf32> -> vector<8x128xf32>
    %309 = arith.addf %298, %308 : vector<8x128xf32>
    %310 = vector.extract_strided_slice %288 {offsets = [0, 109], sizes = [8, 19], strides = [1, 1]} : vector<8x128xbf16> to vector<8x19xbf16>
    %311 = vector.extract_strided_slice %288 {offsets = [0, 0], sizes = [8, 109], strides = [1, 1]} : vector<8x128xbf16> to vector<8x109xbf16>
    %312 = tpu.concatenate %310, %311 in 1 : vector<8x19xbf16>, vector<8x109xbf16> -> vector<8x128xbf16>
    %c7_188 = arith.constant 7 : index
    %c0_189 = arith.constant 0 : index
    %c0_190 = arith.constant 0 : index
    %313 = vector.load %arg2[%c7_188, %c0_189, %c0_190] : memref<26x1x128xbf16, #tpu.memory_space<vmem>>, vector<1x1x128xbf16>
    %314 = vector.shape_cast %313 : vector<1x1x128xbf16> to vector<1x128xbf16>
    %315 = vector.broadcast %314 : vector<1x128xbf16> to vector<8x128xbf16>
    %316 = arith.mulf %312, %315 : vector<8x128xbf16>
    %c2_191 = arith.constant 2 : index
    %c0_192 = arith.constant 0 : index
    %c0_193 = arith.constant 0 : index
    %317 = vector.load %arg7[%c2_191, %c0_192, %c0_193] : memref<27x8x8xbf16, #tpu.memory_space<vmem>>, vector<1x8x8xbf16>
    %318 = vector.shape_cast %317 : vector<1x8x8xbf16> to vector<8x8xbf16>
    %cst_194 = arith.constant dense<0.000000e+00> : vector<8x128xf32>
    %319 = tpu.matmul %318, %316, %cst_194 {dimension_numbers = #tpu.dot_dimension_numbers<[1], [0], [0], [1], [0, 0, 1, 1], [], []>} : vector<8x8xbf16>, vector<8x128xbf16>, vector<8x128xf32> -> vector<8x128xf32>
    %320 = arith.addf %309, %319 : vector<8x128xf32>
    %321 = vector.extract_strided_slice %288 {offsets = [0, 111], sizes = [8, 17], strides = [1, 1]} : vector<8x128xbf16> to vector<8x17xbf16>
    %322 = vector.extract_strided_slice %288 {offsets = [0, 0], sizes = [8, 111], strides = [1, 1]} : vector<8x128xbf16> to vector<8x111xbf16>
    %323 = tpu.concatenate %321, %322 in 1 : vector<8x17xbf16>, vector<8x111xbf16> -> vector<8x128xbf16>
    %c2_195 = arith.constant 2 : index
    %c0_196 = arith.constant 0 : index
    %c0_197 = arith.constant 0 : index
    %324 = vector.load %arg2[%c2_195, %c0_196, %c0_197] : memref<26x1x128xbf16, #tpu.memory_space<vmem>>, vector<1x1x128xbf16>
    %325 = vector.shape_cast %324 : vector<1x1x128xbf16> to vector<1x128xbf16>
    %326 = vector.broadcast %325 : vector<1x128xbf16> to vector<8x128xbf16>
    %327 = arith.mulf %323, %326 : vector<8x128xbf16>
    %c3_198 = arith.constant 3 : index
    %c0_199 = arith.constant 0 : index
    %c0_200 = arith.constant 0 : index
    %328 = vector.load %arg7[%c3_198, %c0_199, %c0_200] : memref<27x8x8xbf16, #tpu.memory_space<vmem>>, vector<1x8x8xbf16>
    %329 = vector.shape_cast %328 : vector<1x8x8xbf16> to vector<8x8xbf16>
    %cst_201 = arith.constant dense<0.000000e+00> : vector<8x128xf32>
    %330 = tpu.matmul %329, %327, %cst_201 {dimension_numbers = #tpu.dot_dimension_numbers<[1], [0], [0], [1], [0, 0, 1, 1], [], []>} : vector<8x8xbf16>, vector<8x128xbf16>, vector<8x128xf32> -> vector<8x128xf32>
    %331 = arith.addf %320, %330 : vector<8x128xf32>
    %332 = vector.extract_strided_slice %288 {offsets = [0, 112], sizes = [8, 16], strides = [1, 1]} : vector<8x128xbf16> to vector<8x16xbf16>
    %333 = vector.extract_strided_slice %288 {offsets = [0, 0], sizes = [8, 112], strides = [1, 1]} : vector<8x128xbf16> to vector<8x112xbf16>
    %334 = tpu.concatenate %332, %333 in 1 : vector<8x16xbf16>, vector<8x112xbf16> -> vector<8x128xbf16>
    %c3_202 = arith.constant 3 : index
    %c0_203 = arith.constant 0 : index
    %c0_204 = arith.constant 0 : index
    %335 = vector.load %arg2[%c3_202, %c0_203, %c0_204] : memref<26x1x128xbf16, #tpu.memory_space<vmem>>, vector<1x1x128xbf16>
    %336 = vector.shape_cast %335 : vector<1x1x128xbf16> to vector<1x128xbf16>
    %337 = vector.broadcast %336 : vector<1x128xbf16> to vector<8x128xbf16>
    %338 = arith.mulf %334, %337 : vector<8x128xbf16>
    %c4_205 = arith.constant 4 : index
    %c0_206 = arith.constant 0 : index
    %c0_207 = arith.constant 0 : index
    %339 = vector.load %arg7[%c4_205, %c0_206, %c0_207] : memref<27x8x8xbf16, #tpu.memory_space<vmem>>, vector<1x8x8xbf16>
    %340 = vector.shape_cast %339 : vector<1x8x8xbf16> to vector<8x8xbf16>
    %cst_208 = arith.constant dense<0.000000e+00> : vector<8x128xf32>
    %341 = tpu.matmul %340, %338, %cst_208 {dimension_numbers = #tpu.dot_dimension_numbers<[1], [0], [0], [1], [0, 0, 1, 1], [], []>} : vector<8x8xbf16>, vector<8x128xbf16>, vector<8x128xf32> -> vector<8x128xf32>
    %342 = arith.addf %331, %341 : vector<8x128xf32>
    %343 = vector.extract_strided_slice %288 {offsets = [0, 113], sizes = [8, 15], strides = [1, 1]} : vector<8x128xbf16> to vector<8x15xbf16>
    %344 = vector.extract_strided_slice %288 {offsets = [0, 0], sizes = [8, 113], strides = [1, 1]} : vector<8x128xbf16> to vector<8x113xbf16>
    %345 = tpu.concatenate %343, %344 in 1 : vector<8x15xbf16>, vector<8x113xbf16> -> vector<8x128xbf16>
    %c8_209 = arith.constant 8 : index
    %c0_210 = arith.constant 0 : index
    %c0_211 = arith.constant 0 : index
    %346 = vector.load %arg2[%c8_209, %c0_210, %c0_211] : memref<26x1x128xbf16, #tpu.memory_space<vmem>>, vector<1x1x128xbf16>
    %347 = vector.shape_cast %346 : vector<1x1x128xbf16> to vector<1x128xbf16>
    %348 = vector.broadcast %347 : vector<1x128xbf16> to vector<8x128xbf16>
    %349 = arith.mulf %345, %348 : vector<8x128xbf16>
    %c5_212 = arith.constant 5 : index
    %c0_213 = arith.constant 0 : index
    %c0_214 = arith.constant 0 : index
    %350 = vector.load %arg7[%c5_212, %c0_213, %c0_214] : memref<27x8x8xbf16, #tpu.memory_space<vmem>>, vector<1x8x8xbf16>
    %351 = vector.shape_cast %350 : vector<1x8x8xbf16> to vector<8x8xbf16>
    %cst_215 = arith.constant dense<0.000000e+00> : vector<8x128xf32>
    %352 = tpu.matmul %351, %349, %cst_215 {dimension_numbers = #tpu.dot_dimension_numbers<[1], [0], [0], [1], [0, 0, 1, 1], [], []>} : vector<8x8xbf16>, vector<8x128xbf16>, vector<8x128xf32> -> vector<8x128xf32>
    %353 = arith.addf %342, %352 : vector<8x128xf32>
    %354 = vector.extract_strided_slice %288 {offsets = [0, 115], sizes = [8, 13], strides = [1, 1]} : vector<8x128xbf16> to vector<8x13xbf16>
    %355 = vector.extract_strided_slice %288 {offsets = [0, 0], sizes = [8, 115], strides = [1, 1]} : vector<8x128xbf16> to vector<8x115xbf16>
    %356 = tpu.concatenate %354, %355 in 1 : vector<8x13xbf16>, vector<8x115xbf16> -> vector<8x128xbf16>
    %c9_216 = arith.constant 9 : index
    %c0_217 = arith.constant 0 : index
    %c0_218 = arith.constant 0 : index
    %357 = vector.load %arg2[%c9_216, %c0_217, %c0_218] : memref<26x1x128xbf16, #tpu.memory_space<vmem>>, vector<1x1x128xbf16>
    %358 = vector.shape_cast %357 : vector<1x1x128xbf16> to vector<1x128xbf16>
    %359 = vector.broadcast %358 : vector<1x128xbf16> to vector<8x128xbf16>
    %360 = arith.mulf %356, %359 : vector<8x128xbf16>
    %c6_219 = arith.constant 6 : index
    %c0_220 = arith.constant 0 : index
    %c0_221 = arith.constant 0 : index
    %361 = vector.load %arg7[%c6_219, %c0_220, %c0_221] : memref<27x8x8xbf16, #tpu.memory_space<vmem>>, vector<1x8x8xbf16>
    %362 = vector.shape_cast %361 : vector<1x8x8xbf16> to vector<8x8xbf16>
    %cst_222 = arith.constant dense<0.000000e+00> : vector<8x128xf32>
    %363 = tpu.matmul %362, %360, %cst_222 {dimension_numbers = #tpu.dot_dimension_numbers<[1], [0], [0], [1], [0, 0, 1, 1], [], []>} : vector<8x8xbf16>, vector<8x128xbf16>, vector<8x128xf32> -> vector<8x128xf32>
    %364 = arith.addf %353, %363 : vector<8x128xf32>
    %365 = vector.extract_strided_slice %288 {offsets = [0, 116], sizes = [8, 12], strides = [1, 1]} : vector<8x128xbf16> to vector<8x12xbf16>
    %366 = vector.extract_strided_slice %288 {offsets = [0, 0], sizes = [8, 116], strides = [1, 1]} : vector<8x128xbf16> to vector<8x116xbf16>
    %367 = tpu.concatenate %365, %366 in 1 : vector<8x12xbf16>, vector<8x116xbf16> -> vector<8x128xbf16>
    %c10_223 = arith.constant 10 : index
    %c0_224 = arith.constant 0 : index
    %c0_225 = arith.constant 0 : index
    %368 = vector.load %arg2[%c10_223, %c0_224, %c0_225] : memref<26x1x128xbf16, #tpu.memory_space<vmem>>, vector<1x1x128xbf16>
    %369 = vector.shape_cast %368 : vector<1x1x128xbf16> to vector<1x128xbf16>
    %370 = vector.broadcast %369 : vector<1x128xbf16> to vector<8x128xbf16>
    %371 = arith.mulf %367, %370 : vector<8x128xbf16>
    %c7_226 = arith.constant 7 : index
    %c0_227 = arith.constant 0 : index
    %c0_228 = arith.constant 0 : index
    %372 = vector.load %arg7[%c7_226, %c0_227, %c0_228] : memref<27x8x8xbf16, #tpu.memory_space<vmem>>, vector<1x8x8xbf16>
    %373 = vector.shape_cast %372 : vector<1x8x8xbf16> to vector<8x8xbf16>
    %cst_229 = arith.constant dense<0.000000e+00> : vector<8x128xf32>
    %374 = tpu.matmul %373, %371, %cst_229 {dimension_numbers = #tpu.dot_dimension_numbers<[1], [0], [0], [1], [0, 0, 1, 1], [], []>} : vector<8x8xbf16>, vector<8x128xbf16>, vector<8x128xf32> -> vector<8x128xf32>
    %375 = arith.addf %364, %374 : vector<8x128xf32>
    %376 = vector.extract_strided_slice %288 {offsets = [0, 117], sizes = [8, 11], strides = [1, 1]} : vector<8x128xbf16> to vector<8x11xbf16>
    %377 = vector.extract_strided_slice %288 {offsets = [0, 0], sizes = [8, 117], strides = [1, 1]} : vector<8x128xbf16> to vector<8x117xbf16>
    %378 = tpu.concatenate %376, %377 in 1 : vector<8x11xbf16>, vector<8x117xbf16> -> vector<8x128xbf16>
    %c11_230 = arith.constant 11 : index
    %c0_231 = arith.constant 0 : index
    %c0_232 = arith.constant 0 : index
    %379 = vector.load %arg2[%c11_230, %c0_231, %c0_232] : memref<26x1x128xbf16, #tpu.memory_space<vmem>>, vector<1x1x128xbf16>
    %380 = vector.shape_cast %379 : vector<1x1x128xbf16> to vector<1x128xbf16>
    %381 = vector.broadcast %380 : vector<1x128xbf16> to vector<8x128xbf16>
    %382 = arith.mulf %378, %381 : vector<8x128xbf16>
    %c8_233 = arith.constant 8 : index
    %c0_234 = arith.constant 0 : index
    %c0_235 = arith.constant 0 : index
    %383 = vector.load %arg7[%c8_233, %c0_234, %c0_235] : memref<27x8x8xbf16, #tpu.memory_space<vmem>>, vector<1x8x8xbf16>
    %384 = vector.shape_cast %383 : vector<1x8x8xbf16> to vector<8x8xbf16>
    %cst_236 = arith.constant dense<0.000000e+00> : vector<8x128xf32>
    %385 = tpu.matmul %384, %382, %cst_236 {dimension_numbers = #tpu.dot_dimension_numbers<[1], [0], [0], [1], [0, 0, 1, 1], [], []>} : vector<8x8xbf16>, vector<8x128xbf16>, vector<8x128xf32> -> vector<8x128xf32>
    %386 = arith.addf %375, %385 : vector<8x128xf32>
    %387 = vector.extract_strided_slice %288 {offsets = [0, 123], sizes = [8, 5], strides = [1, 1]} : vector<8x128xbf16> to vector<8x5xbf16>
    %388 = vector.extract_strided_slice %288 {offsets = [0, 0], sizes = [8, 123], strides = [1, 1]} : vector<8x128xbf16> to vector<8x123xbf16>
    %389 = tpu.concatenate %387, %388 in 1 : vector<8x5xbf16>, vector<8x123xbf16> -> vector<8x128xbf16>
    %c4_237 = arith.constant 4 : index
    %c0_238 = arith.constant 0 : index
    %c0_239 = arith.constant 0 : index
    %390 = vector.load %arg2[%c4_237, %c0_238, %c0_239] : memref<26x1x128xbf16, #tpu.memory_space<vmem>>, vector<1x1x128xbf16>
    %391 = vector.shape_cast %390 : vector<1x1x128xbf16> to vector<1x128xbf16>
    %392 = vector.broadcast %391 : vector<1x128xbf16> to vector<8x128xbf16>
    %393 = arith.mulf %389, %392 : vector<8x128xbf16>
    %c9_240 = arith.constant 9 : index
    %c0_241 = arith.constant 0 : index
    %c0_242 = arith.constant 0 : index
    %394 = vector.load %arg7[%c9_240, %c0_241, %c0_242] : memref<27x8x8xbf16, #tpu.memory_space<vmem>>, vector<1x8x8xbf16>
    %395 = vector.shape_cast %394 : vector<1x8x8xbf16> to vector<8x8xbf16>
    %cst_243 = arith.constant dense<0.000000e+00> : vector<8x128xf32>
    %396 = tpu.matmul %395, %393, %cst_243 {dimension_numbers = #tpu.dot_dimension_numbers<[1], [0], [0], [1], [0, 0, 1, 1], [], []>} : vector<8x8xbf16>, vector<8x128xbf16>, vector<8x128xf32> -> vector<8x128xf32>
    %397 = arith.addf %386, %396 : vector<8x128xf32>
    %398 = vector.extract_strided_slice %288 {offsets = [0, 124], sizes = [8, 4], strides = [1, 1]} : vector<8x128xbf16> to vector<8x4xbf16>
    %399 = vector.extract_strided_slice %288 {offsets = [0, 0], sizes = [8, 124], strides = [1, 1]} : vector<8x128xbf16> to vector<8x124xbf16>
    %400 = tpu.concatenate %398, %399 in 1 : vector<8x4xbf16>, vector<8x124xbf16> -> vector<8x128xbf16>
    %c5_244 = arith.constant 5 : index
    %c0_245 = arith.constant 0 : index
    %c0_246 = arith.constant 0 : index
    %401 = vector.load %arg2[%c5_244, %c0_245, %c0_246] : memref<26x1x128xbf16, #tpu.memory_space<vmem>>, vector<1x1x128xbf16>
    %402 = vector.shape_cast %401 : vector<1x1x128xbf16> to vector<1x128xbf16>
    %403 = vector.broadcast %402 : vector<1x128xbf16> to vector<8x128xbf16>
    %404 = arith.mulf %400, %403 : vector<8x128xbf16>
    %c10_247 = arith.constant 10 : index
    %c0_248 = arith.constant 0 : index
    %c0_249 = arith.constant 0 : index
    %405 = vector.load %arg7[%c10_247, %c0_248, %c0_249] : memref<27x8x8xbf16, #tpu.memory_space<vmem>>, vector<1x8x8xbf16>
    %406 = vector.shape_cast %405 : vector<1x8x8xbf16> to vector<8x8xbf16>
    %cst_250 = arith.constant dense<0.000000e+00> : vector<8x128xf32>
    %407 = tpu.matmul %406, %404, %cst_250 {dimension_numbers = #tpu.dot_dimension_numbers<[1], [0], [0], [1], [0, 0, 1, 1], [], []>} : vector<8x8xbf16>, vector<8x128xbf16>, vector<8x128xf32> -> vector<8x128xf32>
    %408 = arith.addf %397, %407 : vector<8x128xf32>
    %409 = vector.extract_strided_slice %288 {offsets = [0, 125], sizes = [8, 3], strides = [1, 1]} : vector<8x128xbf16> to vector<8x3xbf16>
    %410 = vector.extract_strided_slice %288 {offsets = [0, 0], sizes = [8, 125], strides = [1, 1]} : vector<8x128xbf16> to vector<8x125xbf16>
    %411 = tpu.concatenate %409, %410 in 1 : vector<8x3xbf16>, vector<8x125xbf16> -> vector<8x128xbf16>
    %c12_251 = arith.constant 12 : index
    %c0_252 = arith.constant 0 : index
    %c0_253 = arith.constant 0 : index
    %412 = vector.load %arg2[%c12_251, %c0_252, %c0_253] : memref<26x1x128xbf16, #tpu.memory_space<vmem>>, vector<1x1x128xbf16>
    %413 = vector.shape_cast %412 : vector<1x1x128xbf16> to vector<1x128xbf16>
    %414 = vector.broadcast %413 : vector<1x128xbf16> to vector<8x128xbf16>
    %415 = arith.mulf %411, %414 : vector<8x128xbf16>
    %c11_254 = arith.constant 11 : index
    %c0_255 = arith.constant 0 : index
    %c0_256 = arith.constant 0 : index
    %416 = vector.load %arg7[%c11_254, %c0_255, %c0_256] : memref<27x8x8xbf16, #tpu.memory_space<vmem>>, vector<1x8x8xbf16>
    %417 = vector.shape_cast %416 : vector<1x8x8xbf16> to vector<8x8xbf16>
    %cst_257 = arith.constant dense<0.000000e+00> : vector<8x128xf32>
    %418 = tpu.matmul %417, %415, %cst_257 {dimension_numbers = #tpu.dot_dimension_numbers<[1], [0], [0], [1], [0, 0, 1, 1], [], []>} : vector<8x8xbf16>, vector<8x128xbf16>, vector<8x128xf32> -> vector<8x128xf32>
    %419 = arith.addf %408, %418 : vector<8x128xf32>
    %420 = vector.extract_strided_slice %288 {offsets = [0, 127], sizes = [8, 1], strides = [1, 1]} : vector<8x128xbf16> to vector<8x1xbf16>
    %421 = vector.extract_strided_slice %288 {offsets = [0, 0], sizes = [8, 127], strides = [1, 1]} : vector<8x128xbf16> to vector<8x127xbf16>
    %422 = tpu.concatenate %420, %421 in 1 : vector<8x1xbf16>, vector<8x127xbf16> -> vector<8x128xbf16>
    %c6_258 = arith.constant 6 : index
    %c0_259 = arith.constant 0 : index
    %c0_260 = arith.constant 0 : index
    %423 = vector.load %arg2[%c6_258, %c0_259, %c0_260] : memref<26x1x128xbf16, #tpu.memory_space<vmem>>, vector<1x1x128xbf16>
    %424 = vector.shape_cast %423 : vector<1x1x128xbf16> to vector<1x128xbf16>
    %425 = vector.broadcast %424 : vector<1x128xbf16> to vector<8x128xbf16>
    %426 = arith.mulf %422, %425 : vector<8x128xbf16>
    %c12_261 = arith.constant 12 : index
    %c0_262 = arith.constant 0 : index
    %c0_263 = arith.constant 0 : index
    %427 = vector.load %arg7[%c12_261, %c0_262, %c0_263] : memref<27x8x8xbf16, #tpu.memory_space<vmem>>, vector<1x8x8xbf16>
    %428 = vector.shape_cast %427 : vector<1x8x8xbf16> to vector<8x8xbf16>
    %cst_264 = arith.constant dense<0.000000e+00> : vector<8x128xf32>
    %429 = tpu.matmul %428, %426, %cst_264 {dimension_numbers = #tpu.dot_dimension_numbers<[1], [0], [0], [1], [0, 0, 1, 1], [], []>} : vector<8x8xbf16>, vector<8x128xbf16>, vector<8x128xf32> -> vector<8x128xf32>
    %430 = arith.addf %419, %429 : vector<8x128xf32>
    %c13_265 = arith.constant 13 : index
    %c0_266 = arith.constant 0 : index
    %c0_267 = arith.constant 0 : index
    %431 = vector.load %arg7[%c13_265, %c0_266, %c0_267] : memref<27x8x8xbf16, #tpu.memory_space<vmem>>, vector<1x8x8xbf16>
    %432 = vector.shape_cast %431 : vector<1x8x8xbf16> to vector<8x8xbf16>
    %cst_268 = arith.constant dense<0.000000e+00> : vector<8x128xf32>
    %433 = tpu.matmul %432, %288, %cst_268 {dimension_numbers = #tpu.dot_dimension_numbers<[1], [0], [0], [1], [0, 0, 1, 1], [], []>} : vector<8x8xbf16>, vector<8x128xbf16>, vector<8x128xf32> -> vector<8x128xf32>
    %434 = arith.addf %430, %433 : vector<8x128xf32>
    %435 = vector.extract_strided_slice %288 {offsets = [0, 1], sizes = [8, 127], strides = [1, 1]} : vector<8x128xbf16> to vector<8x127xbf16>
    %436 = vector.extract_strided_slice %288 {offsets = [0, 0], sizes = [8, 1], strides = [1, 1]} : vector<8x128xbf16> to vector<8x1xbf16>
    %437 = tpu.concatenate %435, %436 in 1 : vector<8x127xbf16>, vector<8x1xbf16> -> vector<8x128xbf16>
    %c13_269 = arith.constant 13 : index
    %c0_270 = arith.constant 0 : index
    %c0_271 = arith.constant 0 : index
    %438 = vector.load %arg2[%c13_269, %c0_270, %c0_271] : memref<26x1x128xbf16, #tpu.memory_space<vmem>>, vector<1x1x128xbf16>
    %439 = vector.shape_cast %438 : vector<1x1x128xbf16> to vector<1x128xbf16>
    %440 = vector.broadcast %439 : vector<1x128xbf16> to vector<8x128xbf16>
    %441 = arith.mulf %437, %440 : vector<8x128xbf16>
    %c14_272 = arith.constant 14 : index
    %c0_273 = arith.constant 0 : index
    %c0_274 = arith.constant 0 : index
    %442 = vector.load %arg7[%c14_272, %c0_273, %c0_274] : memref<27x8x8xbf16, #tpu.memory_space<vmem>>, vector<1x8x8xbf16>
    %443 = vector.shape_cast %442 : vector<1x8x8xbf16> to vector<8x8xbf16>
    %cst_275 = arith.constant dense<0.000000e+00> : vector<8x128xf32>
    %444 = tpu.matmul %443, %441, %cst_275 {dimension_numbers = #tpu.dot_dimension_numbers<[1], [0], [0], [1], [0, 0, 1, 1], [], []>} : vector<8x8xbf16>, vector<8x128xbf16>, vector<8x128xf32> -> vector<8x128xf32>
    %445 = arith.addf %434, %444 : vector<8x128xf32>
    %446 = vector.extract_strided_slice %288 {offsets = [0, 3], sizes = [8, 125], strides = [1, 1]} : vector<8x128xbf16> to vector<8x125xbf16>
    %447 = vector.extract_strided_slice %288 {offsets = [0, 0], sizes = [8, 3], strides = [1, 1]} : vector<8x128xbf16> to vector<8x3xbf16>
    %448 = tpu.concatenate %446, %447 in 1 : vector<8x125xbf16>, vector<8x3xbf16> -> vector<8x128xbf16>
    %c14_276 = arith.constant 14 : index
    %c0_277 = arith.constant 0 : index
    %c0_278 = arith.constant 0 : index
    %449 = vector.load %arg2[%c14_276, %c0_277, %c0_278] : memref<26x1x128xbf16, #tpu.memory_space<vmem>>, vector<1x1x128xbf16>
    %450 = vector.shape_cast %449 : vector<1x1x128xbf16> to vector<1x128xbf16>
    %451 = vector.broadcast %450 : vector<1x128xbf16> to vector<8x128xbf16>
    %452 = arith.mulf %448, %451 : vector<8x128xbf16>
    %c15_279 = arith.constant 15 : index
    %c0_280 = arith.constant 0 : index
    %c0_281 = arith.constant 0 : index
    %453 = vector.load %arg7[%c15_279, %c0_280, %c0_281] : memref<27x8x8xbf16, #tpu.memory_space<vmem>>, vector<1x8x8xbf16>
    %454 = vector.shape_cast %453 : vector<1x8x8xbf16> to vector<8x8xbf16>
    %cst_282 = arith.constant dense<0.000000e+00> : vector<8x128xf32>
    %455 = tpu.matmul %454, %452, %cst_282 {dimension_numbers = #tpu.dot_dimension_numbers<[1], [0], [0], [1], [0, 0, 1, 1], [], []>} : vector<8x8xbf16>, vector<8x128xbf16>, vector<8x128xf32> -> vector<8x128xf32>
    %456 = arith.addf %445, %455 : vector<8x128xf32>
    %457 = vector.extract_strided_slice %288 {offsets = [0, 4], sizes = [8, 124], strides = [1, 1]} : vector<8x128xbf16> to vector<8x124xbf16>
    %458 = vector.extract_strided_slice %288 {offsets = [0, 0], sizes = [8, 4], strides = [1, 1]} : vector<8x128xbf16> to vector<8x4xbf16>
    %459 = tpu.concatenate %457, %458 in 1 : vector<8x124xbf16>, vector<8x4xbf16> -> vector<8x128xbf16>
    %c15_283 = arith.constant 15 : index
    %c0_284 = arith.constant 0 : index
    %c0_285 = arith.constant 0 : index
    %460 = vector.load %arg2[%c15_283, %c0_284, %c0_285] : memref<26x1x128xbf16, #tpu.memory_space<vmem>>, vector<1x1x128xbf16>
    %461 = vector.shape_cast %460 : vector<1x1x128xbf16> to vector<1x128xbf16>
    %462 = vector.broadcast %461 : vector<1x128xbf16> to vector<8x128xbf16>
    %463 = arith.mulf %459, %462 : vector<8x128xbf16>
    %c16_286 = arith.constant 16 : index
    %c0_287 = arith.constant 0 : index
    %c0_288 = arith.constant 0 : index
    %464 = vector.load %arg7[%c16_286, %c0_287, %c0_288] : memref<27x8x8xbf16, #tpu.memory_space<vmem>>, vector<1x8x8xbf16>
    %465 = vector.shape_cast %464 : vector<1x8x8xbf16> to vector<8x8xbf16>
    %cst_289 = arith.constant dense<0.000000e+00> : vector<8x128xf32>
    %466 = tpu.matmul %465, %463, %cst_289 {dimension_numbers = #tpu.dot_dimension_numbers<[1], [0], [0], [1], [0, 0, 1, 1], [], []>} : vector<8x8xbf16>, vector<8x128xbf16>, vector<8x128xf32> -> vector<8x128xf32>
    %467 = arith.addf %456, %466 : vector<8x128xf32>
    %468 = vector.extract_strided_slice %288 {offsets = [0, 5], sizes = [8, 123], strides = [1, 1]} : vector<8x128xbf16> to vector<8x123xbf16>
    %469 = vector.extract_strided_slice %288 {offsets = [0, 0], sizes = [8, 5], strides = [1, 1]} : vector<8x128xbf16> to vector<8x5xbf16>
    %470 = tpu.concatenate %468, %469 in 1 : vector<8x123xbf16>, vector<8x5xbf16> -> vector<8x128xbf16>
    %c16_290 = arith.constant 16 : index
    %c0_291 = arith.constant 0 : index
    %c0_292 = arith.constant 0 : index
    %471 = vector.load %arg2[%c16_290, %c0_291, %c0_292] : memref<26x1x128xbf16, #tpu.memory_space<vmem>>, vector<1x1x128xbf16>
    %472 = vector.shape_cast %471 : vector<1x1x128xbf16> to vector<1x128xbf16>
    %473 = vector.broadcast %472 : vector<1x128xbf16> to vector<8x128xbf16>
    %474 = arith.mulf %470, %473 : vector<8x128xbf16>
    %c17_293 = arith.constant 17 : index
    %c0_294 = arith.constant 0 : index
    %c0_295 = arith.constant 0 : index
    %475 = vector.load %arg7[%c17_293, %c0_294, %c0_295] : memref<27x8x8xbf16, #tpu.memory_space<vmem>>, vector<1x8x8xbf16>
    %476 = vector.shape_cast %475 : vector<1x8x8xbf16> to vector<8x8xbf16>
    %cst_296 = arith.constant dense<0.000000e+00> : vector<8x128xf32>
    %477 = tpu.matmul %476, %474, %cst_296 {dimension_numbers = #tpu.dot_dimension_numbers<[1], [0], [0], [1], [0, 0, 1, 1], [], []>} : vector<8x8xbf16>, vector<8x128xbf16>, vector<8x128xf32> -> vector<8x128xf32>
    %478 = arith.addf %467, %477 : vector<8x128xf32>
    %479 = vector.extract_strided_slice %288 {offsets = [0, 11], sizes = [8, 117], strides = [1, 1]} : vector<8x128xbf16> to vector<8x117xbf16>
    %480 = vector.extract_strided_slice %288 {offsets = [0, 0], sizes = [8, 11], strides = [1, 1]} : vector<8x128xbf16> to vector<8x11xbf16>
    %481 = tpu.concatenate %479, %480 in 1 : vector<8x117xbf16>, vector<8x11xbf16> -> vector<8x128xbf16>
    %c17_297 = arith.constant 17 : index
    %c0_298 = arith.constant 0 : index
    %c0_299 = arith.constant 0 : index
    %482 = vector.load %arg2[%c17_297, %c0_298, %c0_299] : memref<26x1x128xbf16, #tpu.memory_space<vmem>>, vector<1x1x128xbf16>
    %483 = vector.shape_cast %482 : vector<1x1x128xbf16> to vector<1x128xbf16>
    %484 = vector.broadcast %483 : vector<1x128xbf16> to vector<8x128xbf16>
    %485 = arith.mulf %481, %484 : vector<8x128xbf16>
    %c18_300 = arith.constant 18 : index
    %c0_301 = arith.constant 0 : index
    %c0_302 = arith.constant 0 : index
    %486 = vector.load %arg7[%c18_300, %c0_301, %c0_302] : memref<27x8x8xbf16, #tpu.memory_space<vmem>>, vector<1x8x8xbf16>
    %487 = vector.shape_cast %486 : vector<1x8x8xbf16> to vector<8x8xbf16>
    %cst_303 = arith.constant dense<0.000000e+00> : vector<8x128xf32>
    %488 = tpu.matmul %487, %485, %cst_303 {dimension_numbers = #tpu.dot_dimension_numbers<[1], [0], [0], [1], [0, 0, 1, 1], [], []>} : vector<8x8xbf16>, vector<8x128xbf16>, vector<8x128xf32> -> vector<8x128xf32>
    %489 = arith.addf %478, %488 : vector<8x128xf32>
    %490 = vector.extract_strided_slice %288 {offsets = [0, 12], sizes = [8, 116], strides = [1, 1]} : vector<8x128xbf16> to vector<8x116xbf16>
    %491 = vector.extract_strided_slice %288 {offsets = [0, 0], sizes = [8, 12], strides = [1, 1]} : vector<8x128xbf16> to vector<8x12xbf16>
    %492 = tpu.concatenate %490, %491 in 1 : vector<8x116xbf16>, vector<8x12xbf16> -> vector<8x128xbf16>
    %c18_304 = arith.constant 18 : index
    %c0_305 = arith.constant 0 : index
    %c0_306 = arith.constant 0 : index
    %493 = vector.load %arg2[%c18_304, %c0_305, %c0_306] : memref<26x1x128xbf16, #tpu.memory_space<vmem>>, vector<1x1x128xbf16>
    %494 = vector.shape_cast %493 : vector<1x1x128xbf16> to vector<1x128xbf16>
    %495 = vector.broadcast %494 : vector<1x128xbf16> to vector<8x128xbf16>
    %496 = arith.mulf %492, %495 : vector<8x128xbf16>
    %c19_307 = arith.constant 19 : index
    %c0_308 = arith.constant 0 : index
    %c0_309 = arith.constant 0 : index
    %497 = vector.load %arg7[%c19_307, %c0_308, %c0_309] : memref<27x8x8xbf16, #tpu.memory_space<vmem>>, vector<1x8x8xbf16>
    %498 = vector.shape_cast %497 : vector<1x8x8xbf16> to vector<8x8xbf16>
    %cst_310 = arith.constant dense<0.000000e+00> : vector<8x128xf32>
    %499 = tpu.matmul %498, %496, %cst_310 {dimension_numbers = #tpu.dot_dimension_numbers<[1], [0], [0], [1], [0, 0, 1, 1], [], []>} : vector<8x8xbf16>, vector<8x128xbf16>, vector<8x128xf32> -> vector<8x128xf32>
    %500 = arith.addf %489, %499 : vector<8x128xf32>
    %501 = vector.extract_strided_slice %288 {offsets = [0, 13], sizes = [8, 115], strides = [1, 1]} : vector<8x128xbf16> to vector<8x115xbf16>
    %502 = vector.extract_strided_slice %288 {offsets = [0, 0], sizes = [8, 13], strides = [1, 1]} : vector<8x128xbf16> to vector<8x13xbf16>
    %503 = tpu.concatenate %501, %502 in 1 : vector<8x115xbf16>, vector<8x13xbf16> -> vector<8x128xbf16>
    %c19_311 = arith.constant 19 : index
    %c0_312 = arith.constant 0 : index
    %c0_313 = arith.constant 0 : index
    %504 = vector.load %arg2[%c19_311, %c0_312, %c0_313] : memref<26x1x128xbf16, #tpu.memory_space<vmem>>, vector<1x1x128xbf16>
    %505 = vector.shape_cast %504 : vector<1x1x128xbf16> to vector<1x128xbf16>
    %506 = vector.broadcast %505 : vector<1x128xbf16> to vector<8x128xbf16>
    %507 = arith.mulf %503, %506 : vector<8x128xbf16>
    %c20_314 = arith.constant 20 : index
    %c0_315 = arith.constant 0 : index
    %c0_316 = arith.constant 0 : index
    %508 = vector.load %arg7[%c20_314, %c0_315, %c0_316] : memref<27x8x8xbf16, #tpu.memory_space<vmem>>, vector<1x8x8xbf16>
    %509 = vector.shape_cast %508 : vector<1x8x8xbf16> to vector<8x8xbf16>
    %cst_317 = arith.constant dense<0.000000e+00> : vector<8x128xf32>
    %510 = tpu.matmul %509, %507, %cst_317 {dimension_numbers = #tpu.dot_dimension_numbers<[1], [0], [0], [1], [0, 0, 1, 1], [], []>} : vector<8x8xbf16>, vector<8x128xbf16>, vector<8x128xf32> -> vector<8x128xf32>
    %511 = arith.addf %500, %510 : vector<8x128xf32>
    %512 = vector.extract_strided_slice %288 {offsets = [0, 15], sizes = [8, 113], strides = [1, 1]} : vector<8x128xbf16> to vector<8x113xbf16>
    %513 = vector.extract_strided_slice %288 {offsets = [0, 0], sizes = [8, 15], strides = [1, 1]} : vector<8x128xbf16> to vector<8x15xbf16>
    %514 = tpu.concatenate %512, %513 in 1 : vector<8x113xbf16>, vector<8x15xbf16> -> vector<8x128xbf16>
    %c20_318 = arith.constant 20 : index
    %c0_319 = arith.constant 0 : index
    %c0_320 = arith.constant 0 : index
    %515 = vector.load %arg2[%c20_318, %c0_319, %c0_320] : memref<26x1x128xbf16, #tpu.memory_space<vmem>>, vector<1x1x128xbf16>
    %516 = vector.shape_cast %515 : vector<1x1x128xbf16> to vector<1x128xbf16>
    %517 = vector.broadcast %516 : vector<1x128xbf16> to vector<8x128xbf16>
    %518 = arith.mulf %514, %517 : vector<8x128xbf16>
    %c21_321 = arith.constant 21 : index
    %c0_322 = arith.constant 0 : index
    %c0_323 = arith.constant 0 : index
    %519 = vector.load %arg7[%c21_321, %c0_322, %c0_323] : memref<27x8x8xbf16, #tpu.memory_space<vmem>>, vector<1x8x8xbf16>
    %520 = vector.shape_cast %519 : vector<1x8x8xbf16> to vector<8x8xbf16>
    %cst_324 = arith.constant dense<0.000000e+00> : vector<8x128xf32>
    %521 = tpu.matmul %520, %518, %cst_324 {dimension_numbers = #tpu.dot_dimension_numbers<[1], [0], [0], [1], [0, 0, 1, 1], [], []>} : vector<8x8xbf16>, vector<8x128xbf16>, vector<8x128xf32> -> vector<8x128xf32>
    %522 = arith.addf %511, %521 : vector<8x128xf32>
    %523 = vector.extract_strided_slice %288 {offsets = [0, 16], sizes = [8, 112], strides = [1, 1]} : vector<8x128xbf16> to vector<8x112xbf16>
    %524 = vector.extract_strided_slice %288 {offsets = [0, 0], sizes = [8, 16], strides = [1, 1]} : vector<8x128xbf16> to vector<8x16xbf16>
    %525 = tpu.concatenate %523, %524 in 1 : vector<8x112xbf16>, vector<8x16xbf16> -> vector<8x128xbf16>
    %c21_325 = arith.constant 21 : index
    %c0_326 = arith.constant 0 : index
    %c0_327 = arith.constant 0 : index
    %526 = vector.load %arg2[%c21_325, %c0_326, %c0_327] : memref<26x1x128xbf16, #tpu.memory_space<vmem>>, vector<1x1x128xbf16>
    %527 = vector.shape_cast %526 : vector<1x1x128xbf16> to vector<1x128xbf16>
    %528 = vector.broadcast %527 : vector<1x128xbf16> to vector<8x128xbf16>
    %529 = arith.mulf %525, %528 : vector<8x128xbf16>
    %c22_328 = arith.constant 22 : index
    %c0_329 = arith.constant 0 : index
    %c0_330 = arith.constant 0 : index
    %530 = vector.load %arg7[%c22_328, %c0_329, %c0_330] : memref<27x8x8xbf16, #tpu.memory_space<vmem>>, vector<1x8x8xbf16>
    %531 = vector.shape_cast %530 : vector<1x8x8xbf16> to vector<8x8xbf16>
    %cst_331 = arith.constant dense<0.000000e+00> : vector<8x128xf32>
    %532 = tpu.matmul %531, %529, %cst_331 {dimension_numbers = #tpu.dot_dimension_numbers<[1], [0], [0], [1], [0, 0, 1, 1], [], []>} : vector<8x8xbf16>, vector<8x128xbf16>, vector<8x128xf32> -> vector<8x128xf32>
    %533 = arith.addf %522, %532 : vector<8x128xf32>
    %534 = vector.extract_strided_slice %288 {offsets = [0, 17], sizes = [8, 111], strides = [1, 1]} : vector<8x128xbf16> to vector<8x111xbf16>
    %535 = vector.extract_strided_slice %288 {offsets = [0, 0], sizes = [8, 17], strides = [1, 1]} : vector<8x128xbf16> to vector<8x17xbf16>
    %536 = tpu.concatenate %534, %535 in 1 : vector<8x111xbf16>, vector<8x17xbf16> -> vector<8x128xbf16>
    %c22_332 = arith.constant 22 : index
    %c0_333 = arith.constant 0 : index
    %c0_334 = arith.constant 0 : index
    %537 = vector.load %arg2[%c22_332, %c0_333, %c0_334] : memref<26x1x128xbf16, #tpu.memory_space<vmem>>, vector<1x1x128xbf16>
    %538 = vector.shape_cast %537 : vector<1x1x128xbf16> to vector<1x128xbf16>
    %539 = vector.broadcast %538 : vector<1x128xbf16> to vector<8x128xbf16>
    %540 = arith.mulf %536, %539 : vector<8x128xbf16>
    %c23_335 = arith.constant 23 : index
    %c0_336 = arith.constant 0 : index
    %c0_337 = arith.constant 0 : index
    %541 = vector.load %arg7[%c23_335, %c0_336, %c0_337] : memref<27x8x8xbf16, #tpu.memory_space<vmem>>, vector<1x8x8xbf16>
    %542 = vector.shape_cast %541 : vector<1x8x8xbf16> to vector<8x8xbf16>
    %cst_338 = arith.constant dense<0.000000e+00> : vector<8x128xf32>
    %543 = tpu.matmul %542, %540, %cst_338 {dimension_numbers = #tpu.dot_dimension_numbers<[1], [0], [0], [1], [0, 0, 1, 1], [], []>} : vector<8x8xbf16>, vector<8x128xbf16>, vector<8x128xf32> -> vector<8x128xf32>
    %544 = arith.addf %533, %543 : vector<8x128xf32>
    %545 = vector.extract_strided_slice %288 {offsets = [0, 19], sizes = [8, 109], strides = [1, 1]} : vector<8x128xbf16> to vector<8x109xbf16>
    %546 = vector.extract_strided_slice %288 {offsets = [0, 0], sizes = [8, 19], strides = [1, 1]} : vector<8x128xbf16> to vector<8x19xbf16>
    %547 = tpu.concatenate %545, %546 in 1 : vector<8x109xbf16>, vector<8x19xbf16> -> vector<8x128xbf16>
    %c23_339 = arith.constant 23 : index
    %c0_340 = arith.constant 0 : index
    %c0_341 = arith.constant 0 : index
    %548 = vector.load %arg2[%c23_339, %c0_340, %c0_341] : memref<26x1x128xbf16, #tpu.memory_space<vmem>>, vector<1x1x128xbf16>
    %549 = vector.shape_cast %548 : vector<1x1x128xbf16> to vector<1x128xbf16>
    %550 = vector.broadcast %549 : vector<1x128xbf16> to vector<8x128xbf16>
    %551 = arith.mulf %547, %550 : vector<8x128xbf16>
    %c24_342 = arith.constant 24 : index
    %c0_343 = arith.constant 0 : index
    %c0_344 = arith.constant 0 : index
    %552 = vector.load %arg7[%c24_342, %c0_343, %c0_344] : memref<27x8x8xbf16, #tpu.memory_space<vmem>>, vector<1x8x8xbf16>
    %553 = vector.shape_cast %552 : vector<1x8x8xbf16> to vector<8x8xbf16>
    %cst_345 = arith.constant dense<0.000000e+00> : vector<8x128xf32>
    %554 = tpu.matmul %553, %551, %cst_345 {dimension_numbers = #tpu.dot_dimension_numbers<[1], [0], [0], [1], [0, 0, 1, 1], [], []>} : vector<8x8xbf16>, vector<8x128xbf16>, vector<8x128xf32> -> vector<8x128xf32>
    %555 = arith.addf %544, %554 : vector<8x128xf32>
    %556 = vector.extract_strided_slice %288 {offsets = [0, 20], sizes = [8, 108], strides = [1, 1]} : vector<8x128xbf16> to vector<8x108xbf16>
    %557 = vector.extract_strided_slice %288 {offsets = [0, 0], sizes = [8, 20], strides = [1, 1]} : vector<8x128xbf16> to vector<8x20xbf16>
    %558 = tpu.concatenate %556, %557 in 1 : vector<8x108xbf16>, vector<8x20xbf16> -> vector<8x128xbf16>
    %c24_346 = arith.constant 24 : index
    %c0_347 = arith.constant 0 : index
    %c0_348 = arith.constant 0 : index
    %559 = vector.load %arg2[%c24_346, %c0_347, %c0_348] : memref<26x1x128xbf16, #tpu.memory_space<vmem>>, vector<1x1x128xbf16>
    %560 = vector.shape_cast %559 : vector<1x1x128xbf16> to vector<1x128xbf16>
    %561 = vector.broadcast %560 : vector<1x128xbf16> to vector<8x128xbf16>
    %562 = arith.mulf %558, %561 : vector<8x128xbf16>
    %c25_349 = arith.constant 25 : index
    %c0_350 = arith.constant 0 : index
    %c0_351 = arith.constant 0 : index
    %563 = vector.load %arg7[%c25_349, %c0_350, %c0_351] : memref<27x8x8xbf16, #tpu.memory_space<vmem>>, vector<1x8x8xbf16>
    %564 = vector.shape_cast %563 : vector<1x8x8xbf16> to vector<8x8xbf16>
    %cst_352 = arith.constant dense<0.000000e+00> : vector<8x128xf32>
    %565 = tpu.matmul %564, %562, %cst_352 {dimension_numbers = #tpu.dot_dimension_numbers<[1], [0], [0], [1], [0, 0, 1, 1], [], []>} : vector<8x8xbf16>, vector<8x128xbf16>, vector<8x128xf32> -> vector<8x128xf32>
    %566 = arith.addf %555, %565 : vector<8x128xf32>
    %567 = vector.extract_strided_slice %288 {offsets = [0, 21], sizes = [8, 107], strides = [1, 1]} : vector<8x128xbf16> to vector<8x107xbf16>
    %568 = vector.extract_strided_slice %288 {offsets = [0, 0], sizes = [8, 21], strides = [1, 1]} : vector<8x128xbf16> to vector<8x21xbf16>
    %569 = tpu.concatenate %567, %568 in 1 : vector<8x107xbf16>, vector<8x21xbf16> -> vector<8x128xbf16>
    %c25_353 = arith.constant 25 : index
    %c0_354 = arith.constant 0 : index
    %c0_355 = arith.constant 0 : index
    %570 = vector.load %arg2[%c25_353, %c0_354, %c0_355] : memref<26x1x128xbf16, #tpu.memory_space<vmem>>, vector<1x1x128xbf16>
    %571 = vector.shape_cast %570 : vector<1x1x128xbf16> to vector<1x128xbf16>
    %572 = vector.broadcast %571 : vector<1x128xbf16> to vector<8x128xbf16>
    %573 = arith.mulf %569, %572 : vector<8x128xbf16>
    %c26_356 = arith.constant 26 : index
    %c0_357 = arith.constant 0 : index
    %c0_358 = arith.constant 0 : index
    %574 = vector.load %arg7[%c26_356, %c0_357, %c0_358] : memref<27x8x8xbf16, #tpu.memory_space<vmem>>, vector<1x8x8xbf16>
    %575 = vector.shape_cast %574 : vector<1x8x8xbf16> to vector<8x8xbf16>
    %cst_359 = arith.constant dense<0.000000e+00> : vector<8x128xf32>
    %576 = tpu.matmul %575, %573, %cst_359 {dimension_numbers = #tpu.dot_dimension_numbers<[1], [0], [0], [1], [0, 0, 1, 1], [], []>} : vector<8x8xbf16>, vector<8x128xbf16>, vector<8x128xf32> -> vector<8x128xf32>
    %577 = arith.addf %566, %576 : vector<8x128xf32>
    %c0_360 = arith.constant 0 : index
    %c0_361 = arith.constant 0 : index
    %578 = vector.load %arg8[%c0_360, %c0_361] : memref<8x1xf32, #tpu.memory_space<vmem>>, vector<8x1xf32>
    %579 = vector.broadcast %578 : vector<8x1xf32> to vector<8x128xf32>
    %580 = arith.addf %577, %579 : vector<8x128xf32>
    %cst_362 = arith.constant 5.000000e-01 : f32
    %581 = vector.broadcast %cst_362 : f32 to vector<8x128xf32>
    %582 = arith.mulf %581, %580 : vector<8x128xf32>
    %cst_363 = arith.constant 1.41421354 : f32
    %583 = vector.broadcast %cst_363 : f32 to vector<8x128xf32>
    %584 = arith.divf %580, %583 : vector<8x128xf32>
    %585 = math.erf %584 : vector<8x128xf32>
    %cst_364 = arith.constant 1.000000e+00 : f32
    %586 = vector.broadcast %cst_364 : f32 to vector<8x128xf32>
    %587 = arith.addf %586, %585 : vector<8x128xf32>
    %588 = arith.mulf %582, %587 : vector<8x128xf32>
    %c0_365 = arith.constant 0 : index
    %c0_366 = arith.constant 0 : index
    %589 = vector.load %arg9[%c0_365, %c0_366] : memref<8x8xbf16, #tpu.memory_space<vmem>>, vector<8x8xbf16>
    %590 = arith.truncf %588 : vector<8x128xf32> to vector<8x128xbf16>
    %cst_367 = arith.constant dense<0.000000e+00> : vector<8x128xf32>
    %591 = tpu.matmul %589, %590, %cst_367 {dimension_numbers = #tpu.dot_dimension_numbers<[1], [0], [0], [1], [0, 0, 1, 1], [], []>} : vector<8x8xbf16>, vector<8x128xbf16>, vector<8x128xf32> -> vector<8x128xf32>
    %c0_368 = arith.constant 0 : index
    %c0_369 = arith.constant 0 : index
    %592 = vector.load %arg10[%c0_368, %c0_369] : memref<8x1xf32, #tpu.memory_space<vmem>>, vector<8x1xf32>
    %593 = vector.broadcast %592 : vector<8x1xf32> to vector<8x128xf32>
    %594 = arith.addf %591, %593 : vector<8x128xf32>
    %595 = arith.addf %594, %287 : vector<8x128xf32>
    %cst_370 = arith.constant 5.000000e-01 : f32
    %596 = vector.broadcast %cst_370 : f32 to vector<8x128xf32>
    %597 = arith.mulf %596, %595 : vector<8x128xf32>
    %cst_371 = arith.constant 1.41421354 : f32
    %598 = vector.broadcast %cst_371 : f32 to vector<8x128xf32>
    %599 = arith.divf %595, %598 : vector<8x128xf32>
    %600 = math.erf %599 : vector<8x128xf32>
    %cst_372 = arith.constant 1.000000e+00 : f32
    %601 = vector.broadcast %cst_372 : f32 to vector<8x128xf32>
    %602 = arith.addf %601, %600 : vector<8x128xf32>
    %603 = arith.mulf %597, %602 : vector<8x128xf32>
    %c0_373 = arith.constant 0 : index
    %c0_374 = arith.constant 0 : index
    %604 = vector.load %arg11[%c0_373, %c0_374] : memref<8x128xf32, #tpu.memory_space<vmem>>, vector<8x128xf32>
    tpu.vector_store %arg11[%c0_373, %c0_374], %603 {strides = array<i32>} : memref<8x128xf32, #tpu.memory_space<vmem>>, vector<8x128xf32>,
    return
  }
  func.func @transform_0(%arg0: i32) -> (i32, i32, i32) {
    %c0_i32 = arith.constant 0 : i32
    %c0_i32_0 = arith.constant 0 : i32
    %c0_i32_1 = arith.constant 0 : i32
    %c0_i32_2 = arith.constant 0 : i32
    return %c0_i32, %c0_i32_0, %c0_i32_1 : i32, i32, i32
  }
  func.func @transform_1(%arg0: i32) -> (i32, i32, i32) {
    %c0_i32 = arith.constant 0 : i32
    %c0_i32_0 = arith.constant 0 : i32
    %c0_i32_1 = arith.constant 0 : i32
    %c0_i32_2 = arith.constant 0 : i32
    return %c0_i32, %c0_i32_0, %c0_i32_1 : i32, i32, i32
  }
  func.func @transform_2(%arg0: i32) -> (i32, i32, i32) {
    %c0_i32 = arith.constant 0 : i32
    %c0_i32_0 = arith.constant 0 : i32
    %c0_i32_1 = arith.constant 0 : i32
    %c0_i32_2 = arith.constant 0 : i32
    return %c0_i32, %c0_i32_0, %c0_i32_1 : i32, i32, i32
  }
  func.func @transform_3(%arg0: i32) -> (i32, i32) {
    %c0_i32 = arith.constant 0 : i32
    %c0_i32_0 = arith.constant 0 : i32
    %c0_i32_1 = arith.constant 0 : i32
    return %c0_i32, %c0_i32_0 : i32, i32
  }
  func.func @transform_4(%arg0: i32) -> (i32, i32) {
    %c0_i32 = arith.constant 0 : i32
    %c0_i32_0 = arith.constant 0 : i32
    %c0_i32_1 = arith.constant 0 : i32
    return %c0_i32, %c0_i32_0 : i32, i32
  }
  func.func @transform_5(%arg0: i32) -> (i32, i32) {
    %c0_i32 = arith.constant 0 : i32
    %c0_i32_0 = arith.constant 0 : i32
    %c0_i32_1 = arith.constant 0 : i32
    return %c0_i32, %c0_i32_0 : i32, i32
  }
  func.func @transform_6(%arg0: i32) -> (i32, i32, i32) {
    %c0_i32 = arith.constant 0 : i32
    %c0_i32_0 = arith.constant 0 : i32
    %c0_i32_1 = arith.constant 0 : i32
    %c0_i32_2 = arith.constant 0 : i32
    return %c0_i32, %c0_i32_0, %c0_i32_1 : i32, i32, i32
  }
  func.func @transform_7(%arg0: i32) -> (i32, i32) {
    %c0_i32 = arith.constant 0 : i32
    %c0_i32_0 = arith.constant 0 : i32
    %c0_i32_1 = arith.constant 0 : i32
    return %c0_i32, %c0_i32_0 : i32, i32
  }
  func.func @transform_8(%arg0: i32) -> (i32, i32) {
    %c0_i32 = arith.constant 0 : i32
    %c0_i32_0 = arith.constant 0 : i32
    %c0_i32_1 = arith.constant 0 : i32
    return %c0_i32, %c0_i32_0 : i32, i32
  }
  func.func @transform_9(%arg0: i32) -> (i32, i32) {
    %c0_i32 = arith.constant 0 : i32
    %c0_i32_0 = arith.constant 0 : i32
    %c0_i32_1 = arith.constant 0 : i32
    return %c0_i32, %c0_i32_0 : i32, i32
  }
  func.func @transform_10(%arg0: i32) -> (i32, i32) {
    %c0_i32 = arith.constant 0 : i32
    %c0_i32_0 = arith.constant 0 : i32
    %c0_i32_1 = arith.constant 0 : i32
    return %c0_i32, %c0_i32_0 : i32, i32
  }
}

</mosaic_0001>

<bundles_post_ra>
// kernel: _lambda_.1
= control target key start
LH: loop header
LB: loop body
LE: loop exit
PB: predicated region body
PF: predicated region fallthrough
CT: control target
= control target key end

     0   :  { %v55_v0 = vlaneseq  ;;  %v4290_v1 = vmov 1983009808   ;;  %v4291_v3 = vmov 0.0   ;;  %vm4292_vm0 = vmmov 0   ;;  %s4293_s19 = smov 20   ;;  %s4294_s22 = smov 21   ;;  %s5099_s0 = inlined_call_operand.vmem [shape: bf16[8,4,128], index: 0, kind: input, shape index: {}]   ;;  %s5100_s2 = inlined_call_operand.vmem [shape: bf16[27,16,4], index: 2, kind: input, shape index: {}]   ;;  %s5101_s3 = inlined_call_operand.vmem [shape: f32[16,1], index: 3, kind: input, shape index: {}]   ;;  %s5102_s5 = inlined_call_operand.vmem [shape: f32[8,1], index: 5, kind: input, shape index: {}]   ;;  %s5103_s1 = inlined_call_operand.vmem [shape: bf16[26,1,128], index: 1, kind: input, shape index: {}]   ;;  %s5104_s4 = inlined_call_operand.vmem [shape: bf16[8,8], index: 4, kind: input, shape index: {}]   ;;  %s5105_s9 = inlined_call_operand.vmem [shape: f32[8,1], index: 9, kind: input, shape index: {}]   ;;  %s5106_s7 = inlined_call_operand.vmem [shape: f32[8,1], index: 7, kind: input, shape index: {}]   ;;  %s5107_s6 = inlined_call_operand.vmem [shape: bf16[27,8,8], index: 6, kind: input, shape index: {}]   ;;  %s5108_s8 = inlined_call_operand.vmem [shape: bf16[8,8], index: 8, kind: input, shape index: {}]   ;;  %s5109_s10 = inlined_call_operand.vmem [shape: f32[8,128], index: 10, kind: output, shape index: {}]  }
   0x1   :  { %v53_v2 = vunpack.c.l.s4 %v4290_v1  ;;  %3887 = vmatprep.subr.bf16.mxu0 %v4291_v3  ;;  %3893 = vmatprep.subr.bf16.mxu1 %v4291_v3  ;;  %v4384_v6 = vld [vmem:[%s5099_s0 + $0xc] sm:$0x3]  ;;  %v4389_v7 = vld [vmem:[%s5099_s0 + $0xe] sm:$0x3]  ;;  %v4394_v9 = vld [vmem:[%s5099_s0 + $0xa] sm:$0x3] }
   0x2   :  { %v56_v4 = vshrl.u32 %v55_v0, 7  ;;  %3889 = vmatprep.mubr.msk.bf16.mxu0 %vm4292_vm0, %v4291_v3  ;;  %3895 = vmatprep.mubr.msk.bf16.mxu1 %vm4292_vm0, %v4291_v3  ;;  %v4404_v13 = vld [vmem:[%s5099_s0 + $0x8] sm:$0x3]  ;;  %s4295_s23 = smov 17   ;;  %s4296_s24 = smov 16   ;;  %v4300_v21 = vmov 0  }
   0x3   :  { %v54_v5 = vunpack.c.0.s8 %v53_v2  ;;  %v4414_v15 = vld [vmem:[%s5099_s0 + $0x6] sm:$0x3]  ;;  %v4422_v17 = vld [vmem:[%s5099_s0 + $0x4] sm:$0x3]  ;;  %s4297_s29 = smov 5   ;;  %s4298_s12 = smov 4   ;;  %4253 = vset.pattern.permute.xlu1 %v4300_v21  ;;  %4254 = vset.pattern.permute.xlu0 %v4300_v21 }
   0x4   :  { %v4430_v19 = vld [vmem:[%s5099_s0 + $0x2] sm:$0x3]  ;;  %s4299_s13 = smov 1   ;;  %v1801_v23 = vld [vmem:[%s5101_s3 + $0x8] sm:$0xff]  ;;  %v3589_v25 = vld [vmem:[%s5103_s1 + $0x1] sm:$0x1] }
   0x5   :  { %v57_v8 = vsub.s32 %v54_v5, %v56_v4  ;;  %v1800_v22 = vld [vmem:[%s5101_s3] sm:$0xff]  ;;  %v4454_v26 = vsub.s32 0, %v56_v4  ;;  %v89_v27 = vpack.i.b16 %v3589_v25, %v3589_v25  ;;  %vm108_vm1 = vcmask 1041408   ;;  %v4255_v42 = vld [vmem:[%s5100_s2 + $0x8] sm:$0xff]   ;;  %v4257_v55 = vld [vmem:[%s5100_s2 + $0x10] sm:$0xff]   ;;  %s4302_s14 = smov 15  }
   0x6   :  { %v1822_v24 = vld [vmem:[%s5102_s5] sm:$0xff]  ;;  %vm104_vm2 = vcmask 31744   ;;  %v4258_v59 = vld [vmem:[%s5100_s2 + $0x18] sm:$0xff]   ;;  %vm1832_vm3 = vcmask 1043456   ;;  %vm1828_vm4 = vcmask 64512   ;;  %s4303_s15 = smov 12  }
   0x7   :  { %v81_v10 = vrot.slane %v4384_v6, %v57_v8  ;;  %v58_v11 = vrot.slane %v4389_v7, %v57_v8  ;;  %v274_v12 = vrot.slane %v4394_v9, %v57_v8  ;;  %v353_v14 = vrot.slane %v4404_v13, %v57_v8  ;;  %v63_v28 = vld [vmem:[%s5103_s1] sm:$0x1]  ;;  %v3600_v29 = vld [vmem:[%s5103_s1 + $0x2] sm:$0x1]  ;;  %v3605_v33 = vld [vmem:[%s5103_s1 + $0x3] sm:$0x1] }
   0x8   :  { %v680_v16 = vrot.slane %v4414_v15, %v57_v8  ;;  %v759_v18 = vrot.slane %v4422_v17, %v57_v8  ;;  %v900_v20 = vrot.slane %v4430_v19, %v57_v8  ;;  %v65_v30 = vpack.i.b16 %v63_v28, %v63_v28  ;;  %v4256_v50 = vld [vmem:[%s5100_s2] sm:$0xff]   ;;  %s4304_s16 = smov 13   ;;  %s4311_s17 = smov 123  }
   0x9   :  { %82 = vrot.lane.b32.xlu0 %v81_v10, %s4293_s19  ;;  %205 = vrot.lane.b32.xlu1 %v58_v11, %s4293_s19  ;;  %v4463_v31 = vrot.slane %v89_v27, %v4454_v26  ;;  %v282_v32 = vpack.i.b16 %v3600_v29, %v3600_v29  ;;  %v361_v40 = vpack.i.b16 %v3605_v33, %v3605_v33  ;;  %v3626_v63 = vld [vmem:[%s5103_s1 + $0x4] sm:$0x1]  ;;  %v3631_v8 = vld [vmem:[%s5103_s1 + $0x5] sm:$0x1]  ;;  %s4312_s18 = smov 115   ;;  %s4314_s20 = smov 112  }
   0xa   :  { %v4469_v35 = vrot.slane %v65_v30, %v4454_v26  ;;  %v4259_v0 = vld [vmem:[%s5100_s2 + $0x20] sm:$0xff]   ;;  %v688_v4 = vpack.i.b16 %v3626_v63, %v3626_v63  ;;  %v4262_v27 = vld [vmem:[%s5100_s2 + $0x38] sm:$0xff]   ;;  %v4272_v63 = vld [vmem:[%s5100_s2 + $0x88] sm:$0xff]   ;;  %s4316_s21 = smov 109   ;;  %s4317_s25 = smov 111  }
   0xb   :  { %v4474_v39 = vrot.slane %v282_v32, %v4454_v26  ;;  %v4485_v48 = vrot.slane %v361_v40, %v4454_v26  ;;  %v3640_v25 = vld [vmem:[%s5103_s1 + $0x6] sm:$0x1]  ;;  %v4264_v40 = vld [vmem:[%s5100_s2 + $0x48] sm:$0xff]   ;;  %s4318_s26 = smov 107   ;;  %s4319_s27 = smov 108  }
   0xc   :  { %v908_v30 = vpack.i.b16 %v3640_v25, %v3640_v25  ;;  %v4263_v33 = vld [vmem:[%s5100_s2 + $0x40] sm:$0xff]   ;;  %v1698_v25 = vsel %vm108_vm1, %v4384_v6, 0  ;;  %v4280_v6 = vld [vmem:[%s5100_s2 + $0xc8] sm:$0xff]  }
   0xd   :  { %59 = vrot.lane.b32.xlu0 %v58_v11, %s4294_s22  ;;  %275 = vrot.lane.b32.xlu1 %v274_v12, %s4295_s23 }
  0x11   :  { %354 = vrot.lane.b32.xlu0 %v353_v14, %s4296_s24  ;;  %425 = vrot.lane.b32.xlu1 %v274_v12, %s4296_s24  ;;  %v4541_v14 = vrot.slane %v688_v4, %v4454_v26  ;;  %v4273_v4 = vld [vmem:[%s5100_s2 + $0x90] sm:$0xff]  }
  0x15   :  { %487 = vrot.lane.b32.xlu0 %v58_v11, %s4295_s23  ;;  %549 = vrot.lane.b32.xlu1 %v81_v10, %s4296_s24 }
  0x19   :  { %611 = vrot.lane.b32.xlu0 %v58_v11, %s4296_s24  ;;  %681 = vrot.lane.b32.xlu1 %v680_v16, %s4297_s29 }
  0x1d   :  { %760 = vrot.lane.b32.xlu0 %v759_v18, %s4298_s12  ;;  %831 = vrot.lane.b32.xlu1 %v680_v16, %s4298_s12 }
  0x21   :  { %901 = vrot.lane.b32.xlu0 %v900_v20, %s4299_s13  ;;  %1086 = vrot.lane.b32.xlu1 %v680_v16, %s4299_s13  ;;  %v767_v16 = vpack.i.b16 %v3631_v8, %v3631_v8  ;;  %v4261_v20 = vld [vmem:[%s5100_s2 + $0x30] sm:$0xff]  }
  0x25   :  { %1262 = vrot.lane.b32.xlu0 %v58_v11, %s4297_s29  ;;  %1324 = vrot.lane.b32.xlu1 %v81_v10, %s4298_s12  ;;  %v4260_v10 = vld [vmem:[%s5100_s2 + $0x28] sm:$0xff]  }
  0x29   :  { %1386 = vrot.lane.b32.xlu0 %v58_v11, %s4298_s12  ;;  %1448 = vrot.lane.b32.xlu1 %v274_v12, %s4299_s13 }
  0x2d   :  { %1624 = vrot.lane.b32.xlu0 %v58_v11, %s4299_s13  ;;  %1804 = vperm.xlu1 %4253, %v1800_v22  }
  0x31   :  { %1810 = vperm.xlu0 %4254, %v1801_v23   ;;  %1825 = vperm.xlu1 %4253, %v1822_v24   ;;  %v4553_v23 = vrot.slane %v767_v16, %v4454_v26  ;;  %v1522_v16 = vsel %vm108_vm1, %v4404_v13, 0  ;;  %v4277_v13 = vld [vmem:[%s5100_s2 + $0xb0] sm:$0xff]  }
  0x7b   :  { %v83_v34 = vpop.permute.xlu0 %82  ;;  %v206_v36 = vpop.permute.xlu1 %205 }
  0x7c   :  { %v95_v37 = vmul.bf16 %v4463_v31, %v83_v34  ;;  %v209_v38 = vmul.bf16 %v206_v36, %v4463_v31 }
  0x7e   :  { %v110_v41 = vsel %vm108_vm1, %v95_v37, 0  ;;  %v222_v46 = vsel %vm108_vm1, %v209_v38, 0  ;;  %v4577_v37 = vrot.slane %v908_v30, %v4454_v26 }
  0x7f   :  { %3888 = vmatpush3.bf16.msra.mxu0 %v110_v41  ;;  %v60_v43 = vpop.permute.xlu0 %59  ;;  %v276_v44 = vpop.permute.xlu1 %275 }
  0x80   :  { %v71_v45 = vmul.bf16 %v4469_v35, %v60_v43  ;;  %3899 = vmatprep.subr.bf16.mxu0 %v4291_v3  ;;  %v288_v47 = vmul.bf16 %v4474_v39, %v276_v44  ;;  %v4265_v43 = vld [vmem:[%s5100_s2 + $0x50] sm:$0xff]  }
  0x82   :  { %3890 = vmatmul.mubr.msk.bf16.vlgmr.msra.gmra.mrb[0].mxu0 %vm104_vm2, %v4255_v42  ;;  %v162_v49 = vsel %vm108_vm1, %v71_v45, 0  ;;  %v301_v52 = vsel %vm108_vm1, %v288_v47, 0  ;;  %v36_v45 = vld [vmem:[%s5099_s0] sm:$0x3]  ;;  %s4309_s0 = smov 125  }
  0x83   :  { %3894 = vmatpush3.bf16.msra.mxu1 %v162_v49  ;;  %3900 = vmatpush3.bf16.msra.mxu0 %v222_v46  ;;  %v355_v51 = vpop.permute.xlu0 %354  ;;  %v426_v54 = vpop.permute.xlu1 %425  ;;  %v4266_v46 = vld [vmem:[%s5100_s2 + $0x58] sm:$0xff]   ;;  %v984_v47 = vsel %vm108_vm1, %v36_v45, 0 }
  0x84   :  { %3901 = vmatprep.mubr.msk.bf16.mxu0 %vm4292_vm0, %v4291_v3  ;;  %3905 = vmatprep.subr.bf16.mxu1 %v4291_v3  ;;  %v367_v53 = vmul.bf16 %v4485_v48, %v355_v51  ;;  %v429_v57 = vmul.bf16 %v426_v54, %v4485_v48 }
  0x85   :  { %3911 = vmatprep.subr.bf16.mxu0 %v4291_v3 }
  0x86   :  { %3896 = vmatmul.mubr.msk.bf16.vlgmr.msra.gmra.mrb[0].mxu1 %vm104_vm2, %v4256_v50  ;;  %v380_v56 = vsel %vm108_vm1, %v367_v53, 0  ;;  %v442_v60 = vsel %vm108_vm1, %v429_v57, 0  ;;  %v4267_v50 = vld [vmem:[%s5100_s2 + $0x60] sm:$0xff]   ;;  %v4268_v53 = vld [vmem:[%s5100_s2 + $0x68] sm:$0xff]   ;;  %v4270_v57 = vld [vmem:[%s5100_s2 + $0x78] sm:$0xff]  }
  0x87   :  { %3906 = vmatpush3.bf16.msra.mxu1 %v301_v52  ;;  %3907 = vmatprep.mubr.msk.bf16.mxu1 %vm4292_vm0, %v4291_v3  ;;  %v488_v58 = vpop.permute.xlu0 %487  ;;  %v550_v62 = vpop.permute.xlu1 %549  ;;  %v1041_v52 = vsel %vm108_vm1, %v4430_v19, 0  ;;  %v4269_v19 = vld [vmem:[%s5100_s2 + $0x70] sm:$0xff]  }
  0x88   :  { %3917 = vmatprep.subr.bf16.mxu1 %v4291_v3  ;;  %v491_v61 = vmul.bf16 %v488_v58, %v4474_v39  ;;  %v553_v2 = vmul.bf16 %v550_v62, %v4485_v48 }
  0x8a   :  { %3902 = vmatmul.mubr.msk.bf16.vlgmr.msra.gmra.mrb[4].mxu0 %vm104_vm2, %v4257_v55  ;;  %v504_v1 = vsel %vm108_vm1, %v491_v61, 0  ;;  %v566_v11 = vsel %vm108_vm1, %v553_v2, 0  ;;  %v1160_v55 = vsel %vm108_vm1, %v4422_v17, 0 }
  0x8b   :  { %3912 = vmatpush3.bf16.msra.mxu0 %v380_v56  ;;  %3913 = vmatprep.mubr.msk.bf16.mxu0 %vm4292_vm0, %v4291_v3  ;;  %v612_v5 = vpop.permute.xlu0 %611  ;;  %v682_v18 = vpop.permute.xlu1 %681 }
  0x8c   :  { %3923 = vmatprep.subr.bf16.mxu0 %v4291_v3  ;;  %v615_v12 = vmul.bf16 %v612_v5, %v4485_v48  ;;  %v694_v22 = vmul.bf16 %v4541_v14, %v682_v18 }
  0x8e   :  { %3908 = vmatmul.mubr.msk.bf16.vlgmr.msra.gmra.mrb[4].mxu1 %vm104_vm2, %v4258_v59  ;;  %v628_v21 = vsel %vm108_vm1, %v615_v12, 0  ;;  %v707_v28 = vsel %vm108_vm1, %v694_v22, 0  ;;  %v1217_v59 = vsel %vm108_vm1, %v4414_v15, 0  ;;  %v4275_v12 = vld [vmem:[%s5100_s2 + $0xa0] sm:$0xff]   ;;  %v1579_v22 = vsel %vm108_vm1, %v4394_v9, 0  ;;  %v4278_v9 = vld [vmem:[%s5100_s2 + $0xb8] sm:$0xff]  }
  0x8f   :  { %3918 = vmatpush3.bf16.msra.mxu1 %v442_v60  ;;  %3919 = vmatprep.mubr.msk.bf16.mxu1 %vm4292_vm0, %v4291_v3  ;;  %v761_v24 = vpop.permute.xlu0 %760  ;;  %v832_v32 = vpop.permute.xlu1 %831  ;;  %v4271_v60 = vld [vmem:[%s5100_s2 + $0x80] sm:$0xff]  }
  0x90   :  { %3929 = vmatprep.subr.bf16.mxu1 %v4291_v3  ;;  %v773_v29 = vmul.bf16 %v4553_v23, %v761_v24  ;;  %v835_v36 = vmul.bf16 %v832_v32, %v4553_v23 }
  0x92   :  { %3914 = vmatmul.mubr.msk.bf16.vlgmr.msra.gmra.mrb[8].mxu0 %vm104_vm2, %v4259_v0  ;;  %v786_v34 = vsel %vm108_vm1, %v773_v29, 0  ;;  %v848_v41 = vsel %vm108_vm1, %v835_v36, 0 }
  0x93   :  { %3924 = vmatpush3.bf16.msra.mxu0 %v504_v1  ;;  %3925 = vmatprep.mubr.msk.bf16.mxu0 %vm4292_vm0, %v4291_v3  ;;  %v902_v38 = vpop.permute.xlu0 %901  ;;  %v1087_v49 = vpop.permute.xlu1 %1086 }
  0x94   :  { %3935 = vmatprep.subr.bf16.mxu0 %v4291_v3  ;;  %v914_v42 = vmul.bf16 %v4577_v37, %v902_v38  ;;  %v1090_v51 = vmul.bf16 %v1087_v49, %v4577_v37 }
  0x96   :  { %3920 = vmatmul.mubr.msk.bf16.vlgmr.msra.gmra.mrb[8].mxu1 %vm104_vm2, %v4260_v10  ;;  %v927_v44 = vsel %vm108_vm1, %v914_v42, 0  ;;  %v1103_v54 = vsel %vm108_vm1, %v1090_v51, 0  ;;  %v4274_v10 = vld [vmem:[%s5100_s2 + $0x98] sm:$0xff]  }
  0x97   :  { %3930 = vmatpush3.bf16.msra.mxu1 %v566_v11  ;;  %3931 = vmatprep.mubr.msk.bf16.mxu1 %vm4292_vm0, %v4291_v3  ;;  %v1263_v56 = vpop.permute.xlu0 %1262  ;;  %v1325_v17 = vpop.permute.xlu1 %1324 }
  0x98   :  { %3941 = vmatprep.subr.bf16.mxu1 %v4291_v3  ;;  %v1266_v58 = vmul.bf16 %v1263_v56, %v4541_v14  ;;  %v1328_v62 = vmul.bf16 %v1325_v17, %v4553_v23 }
  0x9a   :  { %3926 = vmatmul.mubr.msk.bf16.vlgmr.msra.gmra.mrb[12].mxu0 %vm104_vm2, %v4261_v20  ;;  %v1279_v61 = vsel %vm108_vm1, %v1266_v58, 0  ;;  %v1341_v0 = vsel %vm108_vm1, %v1328_v62, 0  ;;  %v4276_v20 = vld [vmem:[%s5100_s2 + $0xa8] sm:$0xff]  }
  0x9b   :  { %3936 = vmatpush3.bf16.msra.mxu0 %v628_v21  ;;  %3937 = vmatprep.mubr.msk.bf16.mxu0 %vm4292_vm0, %v4291_v3  ;;  %v1387_v15 = vpop.permute.xlu0 %1386  ;;  %v1449_v2 = vpop.permute.xlu1 %1448 }
  0x9c   :  { %3947 = vmatprep.subr.bf16.mxu0 %v4291_v3  ;;  %v1390_v1 = vmul.bf16 %v1387_v15, %v4553_v23  ;;  %v1452_v8 = vmul.bf16 %v1449_v2, %v4577_v37 }
  0x9e   :  { %3932 = vmatmul.mubr.msk.bf16.vlgmr.msra.gmra.mrb[12].mxu1 %vm104_vm2, %v4262_v27  ;;  %v1403_v5 = vsel %vm108_vm1, %v1390_v1, 0  ;;  %v1465_v11 = vsel %vm108_vm1, %v1452_v8, 0  ;;  %v4279_v27 = vld [vmem:[%s5100_s2 + $0xc0] sm:$0xff]  }
  0x9f   :  { %3942 = vmatpush3.bf16.msra.mxu1 %v707_v28  ;;  %3943 = vmatprep.mubr.msk.bf16.mxu1 %vm4292_vm0, %v4291_v3  ;;  %v1625_v18 = vpop.permute.xlu0 %1624  ;;  %v1755_v28 = vsel %vm108_vm1, %v4389_v7, 0  ;;  %v4281_v7 = vld [vmem:[%s5100_s2 + $0xd0] sm:$0xff]  }
  0xa0   :  { %3953 = vmatprep.subr.bf16.mxu1 %v4291_v3  ;;  %v1628_v21 = vmul.bf16 %v1625_v18, %v4577_v37 }
  0xa2   :  { %3938 = vmatmul.mubr.msk.bf16.vlgmr.msra.gmra.mrb[16].mxu0 %vm104_vm2, %v4263_v33  ;;  %v1641_v24 = vsel %vm108_vm1, %v1628_v21, 0 }
  0xa3   :  { %3948 = vmatpush3.bf16.msra.mxu0 %v786_v34  ;;  %3949 = vmatprep.mubr.msk.bf16.mxu0 %vm4292_vm0, %v4291_v3 }
  0xa4   :  { %3959 = vmatprep.subr.bf16.mxu0 %v4291_v3 }
  0xa6   :  { %3944 = vmatmul.mubr.msk.bf16.vlgmr.msra.gmra.mrb[16].mxu1 %vm104_vm2, %v4264_v40 }
  0xa7   :  { %3954 = vmatpush3.bf16.msra.mxu1 %v848_v41  ;;  %3955 = vmatprep.mubr.msk.bf16.mxu1 %vm4292_vm0, %v4291_v3 }
  0xa8   :  { %3965 = vmatprep.subr.bf16.mxu1 %v4291_v3 }
  0xaa   :  { %3950 = vmatmul.mubr.msk.bf16.vlgmr.msra.gmra.mrb[20].mxu0 %vm104_vm2, %v4265_v43 }
  0xab   :  { %3960 = vmatpush3.bf16.msra.mxu0 %v927_v44  ;;  %3961 = vmatprep.mubr.msk.bf16.mxu0 %vm4292_vm0, %v4291_v3 }
  0xac   :  { %3971 = vmatprep.subr.bf16.mxu0 %v4291_v3 }
  0xae   :  { %3956 = vmatmul.mubr.msk.bf16.vlgmr.msra.gmra.mrb[20].mxu1 %vm104_vm2, %v4266_v46 }
  0xaf   :  { %3966 = vmatpush3.bf16.msra.mxu1 %v984_v47  ;;  %3967 = vmatprep.mubr.msk.bf16.mxu1 %vm4292_vm0, %v4291_v3 }
  0xb0   :  { %3977 = vmatprep.subr.bf16.mxu1 %v4291_v3 }
  0xb2   :  { %3962 = vmatmul.mubr.msk.bf16.vlgmr.msra.gmra.mrb[24].mxu0 %vm104_vm2, %v4267_v50 }
  0xb3   :  { %3972 = vmatpush3.bf16.msra.mxu0 %v1041_v52  ;;  %3973 = vmatprep.mubr.msk.bf16.mxu0 %vm4292_vm0, %v4291_v3 }
  0xb4   :  { %3983 = vmatprep.subr.bf16.mxu0 %v4291_v3 }
  0xb6   :  { %3968 = vmatmul.mubr.msk.bf16.vlgmr.msra.gmra.mrb[24].mxu1 %vm104_vm2, %v4268_v53 }
  0xb7   :  { %3978 = vmatpush3.bf16.msra.mxu1 %v1103_v54  ;;  %3979 = vmatprep.mubr.msk.bf16.mxu1 %vm4292_vm0, %v4291_v3 }
  0xb8   :  { %3989 = vmatprep.subr.bf16.mxu1 %v4291_v3 }
  0xba   :  { %3974 = vmatmul.mubr.msk.bf16.vlgmr.msra.gmra.mrb[28].mxu0 %vm104_vm2, %v4269_v19 }
  0xbb   :  { %3984 = vmatpush3.bf16.msra.mxu0 %v1160_v55  ;;  %3985 = vmatprep.mubr.msk.bf16.mxu0 %vm4292_vm0, %v4291_v3 }
  0xbc   :  { %3995 = vmatprep.subr.bf16.mxu0 %v4291_v3 }
  0xbe   :  { %3980 = vmatmul.mubr.msk.bf16.vlgmr.msra.gmra.mrb[28].mxu1 %vm104_vm2, %v4270_v57 }
  0xbf   :  { %3990 = vmatpush3.bf16.msra.mxu1 %v1217_v59  ;;  %3991 = vmatprep.mubr.msk.bf16.mxu1 %vm4292_vm0, %v4291_v3 }
  0xc0   :  { %4001 = vmatprep.subr.bf16.mxu1 %v4291_v3 }
  0xc2   :  { %3986 = vmatmul.mubr.msk.bf16.vlgmr.msra.gmra.mrb[32].mxu0 %vm104_vm2, %v4271_v60 }
  0xc3   :  { %3996 = vmatpush3.bf16.msra.mxu0 %v1279_v61  ;;  %3997 = vmatprep.mubr.msk.bf16.mxu0 %vm4292_vm0, %v4291_v3 }
  0xc4   :  { %4007 = vmatprep.subr.bf16.mxu0 %v4291_v3 }
  0xc6   :  { %3992 = vmatmul.mubr.msk.bf16.vlgmr.msra.gmra.mrb[32].mxu1 %vm104_vm2, %v4272_v63 }
  0xc7   :  { %4002 = vmatpush3.bf16.msra.mxu1 %v1341_v0  ;;  %4003 = vmatprep.mubr.msk.bf16.mxu1 %vm4292_vm0, %v4291_v3 }
  0xc8   :  { %4013 = vmatprep.subr.bf16.mxu1 %v4291_v3 }
  0xca   :  { %3998 = vmatmul.mubr.msk.bf16.vlgmr.msra.gmra.mrb[36].mxu0 %vm104_vm2, %v4273_v4 }
  0xcb   :  { %4008 = vmatpush3.bf16.msra.mxu0 %v1403_v5  ;;  %4009 = vmatprep.mubr.msk.bf16.mxu0 %vm4292_vm0, %v4291_v3 }
  0xcc   :  { %4019 = vmatprep.subr.bf16.mxu0 %v4291_v3 }
  0xce   :  { %4004 = vmatmul.mubr.msk.bf16.vlgmr.msra.gmra.mrb[36].mxu1 %vm104_vm2, %v4274_v10 }
  0xcf   :  { %4014 = vmatpush3.bf16.msra.mxu1 %v1465_v11  ;;  %4015 = vmatprep.mubr.msk.bf16.mxu1 %vm4292_vm0, %v4291_v3 }
  0xd0   :  { %4025 = vmatprep.subr.bf16.mxu1 %v4291_v3 }
  0xd2   :  { %4010 = vmatmul.mubr.msk.bf16.vlgmr.msra.gmra.mrb[40].mxu0 %vm104_vm2, %v4275_v12 }
  0xd3   :  { %4020 = vmatpush3.bf16.msra.mxu0 %v1522_v16  ;;  %4021 = vmatprep.mubr.msk.bf16.mxu0 %vm4292_vm0, %v4291_v3 }
  0xd4   :  { %4031 = vmatprep.subr.bf16.mxu0 %v4291_v3 }
  0xd6   :  { %4016 = vmatmul.mubr.msk.bf16.vlgmr.msra.gmra.mrb[40].mxu1 %vm104_vm2, %v4276_v20 }
  0xd7   :  { %4026 = vmatpush3.bf16.msra.mxu1 %v1579_v22  ;;  %4027 = vmatprep.mubr.msk.bf16.mxu1 %vm4292_vm0, %v4291_v3 }
  0xd8   :  { %4037 = vmatprep.subr.bf16.mxu1 %v4291_v3 }
  0xda   :  { %4022 = vmatmul.mubr.msk.bf16.vlgmr.msra.gmra.mrb[44].mxu0 %vm104_vm2, %v4277_v13 }
  0xdb   :  { %4032 = vmatpush3.bf16.msra.mxu0 %v1641_v24  ;;  %4033 = vmatprep.mubr.msk.bf16.mxu0 %vm4292_vm0, %v4291_v3 }
  0xdc   :  { %4043 = vmatprep.subr.bf16.mxu0 %v4291_v3 }
  0xde   :  { %4028 = vmatmul.mubr.msk.bf16.vlgmr.msra.gmra.mrb[44].mxu1 %vm104_vm2, %v4278_v9 }
  0xdf   :  { %4038 = vmatpush3.bf16.msra.mxu1 %v1698_v25  ;;  %4039 = vmatprep.mubr.msk.bf16.mxu1 %vm4292_vm0, %v4291_v3 }
  0xe0   :  { %4049 = vmatprep.subr.bf16.mxu1 %v4291_v3 }
  0xe2   :  { %4034 = vmatmul.mubr.msk.bf16.vlgmr.msra.gmra.mrb[48].mxu0 %vm104_vm2, %v4279_v27 }
  0xe3   :  { %4044 = vmatpush3.bf16.msra.mxu0 %v1755_v28  ;;  %4045 = vmatprep.mubr.msk.bf16.mxu0 %vm4292_vm0, %v4291_v3 }
  0xe4   :  { %4055 = vmatprep.subr.bf16.mxu0 %v4291_v3 }
  0xe6   :  { %4040 = vmatmul.mubr.msk.bf16.vlgmr.msra.gmra.mrb[48].mxu1 %vm104_vm2, %v4280_v6 }
  0xe7   :  { %4051 = vmatprep.mubr.msk.bf16.mxu1 %vm4292_vm0, %v4291_v3 }
  0xea   :  { %4046 = vmatmul.mubr.msk.bf16.vlgmr.msra.gmra.mrb[52].mxu0 %vm104_vm2, %v4281_v7 }
  0xeb   :  { %4057 = vmatprep.mubr.msk.bf16.mxu0 %vm4292_vm0, %v4291_v3 }
 0x155   :  { %v146_v29 = vpop.f32.mrb[0].mxu0 }
 0x156   :  { %v3891_v30 = vpop.f32.mrb[1].mxu0 }
 0x157   :  { %v149_v32 = vpop.f32.mrb[2].mxu0 }
 0x158   :  { %v3892_v33 = vpop.f32.mrb[3].mxu0 }
 0x159   :  { %v198_v34 = vpop.f32.mrb[0].mxu1 }
 0x15a   :  { %v199_v36 = vadd.f32 %v198_v34, %v146_v29  ;;  %v3897_v38 = vpop.f32.mrb[1].mxu1 }
 0x15b   :  { %v201_v40 = vpop.f32.mrb[2].mxu1 }
 0x15c   :  { %v202_v41 = vadd.f32 %v201_v40, %v149_v32  ;;  %v3898_v42 = vpop.f32.mrb[3].mxu1 }
 0x15d   :  { %v258_v43 = vpop.f32.mrb[4].mxu0 }
 0x15e   :  { %v265_v44 = vadd.f32 %v258_v43, %v199_v36  ;;  %v3903_v45 = vpop.f32.mrb[5].mxu0 }
 0x15f   :  { %v261_v46 = vpop.f32.mrb[6].mxu0 }
 0x160   :  { %v266_v47 = vadd.f32 %v261_v46, %v202_v41  ;;  %v3904_v49 = vpop.f32.mrb[7].mxu0 }
 0x161   :  { %v337_v50 = vpop.f32.mrb[4].mxu1 }
 0x162   :  { %v344_v51 = vadd.f32 %v337_v50, %v265_v44  ;;  %v3909_v52 = vpop.f32.mrb[5].mxu1 }
 0x163   :  { %v340_v53 = vpop.f32.mrb[6].mxu1 }
 0x164   :  { %v345_v54 = vadd.f32 %v340_v53, %v266_v47  ;;  %v3910_v19 = vpop.f32.mrb[7].mxu1 }
 0x165   :  { %v416_v55 = vpop.f32.mrb[8].mxu0 }
 0x166   :  { %v423_v56 = vadd.f32 %v416_v55, %v344_v51  ;;  %v3915_v57 = vpop.f32.mrb[9].mxu0 }
 0x167   :  { %v419_v58 = vpop.f32.mrb[10].mxu0 }
 0x168   :  { %v424_v59 = vadd.f32 %v419_v58, %v345_v54  ;;  %v3916_v17 = vpop.f32.mrb[11].mxu0 }
 0x169   :  { %v478_v60 = vpop.f32.mrb[8].mxu1 }
 0x16a   :  { %v485_v61 = vadd.f32 %v478_v60, %v423_v56  ;;  %v3921_v62 = vpop.f32.mrb[9].mxu1 }
 0x16b   :  { %v481_v15 = vpop.f32.mrb[10].mxu1 }
 0x16c   :  { %v486_v63 = vadd.f32 %v481_v15, %v424_v59  ;;  %v3922_v0 = vpop.f32.mrb[11].mxu1 }
 0x16d   :  { %v540_v1 = vpop.f32.mrb[12].mxu0 }
 0x16e   :  { %v547_v2 = vadd.f32 %v540_v1, %v485_v61  ;;  %v3927_v4 = vpop.f32.mrb[13].mxu0 }
 0x16f   :  { %v543_v5 = vpop.f32.mrb[14].mxu0 }
 0x170   :  { %v548_v8 = vadd.f32 %v543_v5, %v486_v63  ;;  %v3928_v10 = vpop.f32.mrb[15].mxu0 }
 0x171   :  { %v602_v11 = vpop.f32.mrb[12].mxu1 }
 0x172   :  { %v609_v12 = vadd.f32 %v602_v11, %v547_v2  ;;  %v3933_v16 = vpop.f32.mrb[13].mxu1 }
 0x173   :  { %v605_v18 = vpop.f32.mrb[14].mxu1 }
 0x174   :  { %v610_v20 = vadd.f32 %v605_v18, %v548_v8  ;;  %v3934_v21 = vpop.f32.mrb[15].mxu1 }
 0x175   :  { %v664_v22 = vpop.f32.mrb[16].mxu0 }
 0x176   :  { %v671_v13 = vadd.f32 %v664_v22, %v609_v12  ;;  %v3939_v24 = vpop.f32.mrb[17].mxu0 }
 0x177   :  { %v667_v9 = vpop.f32.mrb[18].mxu0 }
 0x178   :  { %v672_v25 = vadd.f32 %v667_v9, %v610_v20  ;;  %v3940_v27 = vpop.f32.mrb[19].mxu0 }
 0x179   :  { %v743_v28 = vpop.f32.mrb[16].mxu1 }
 0x17a   :  { %v750_v6 = vadd.f32 %v743_v28, %v671_v13  ;;  %v3945_v7 = vpop.f32.mrb[17].mxu1 }
 0x17b   :  { %v746_v29 = vpop.f32.mrb[18].mxu1 }
 0x17c   :  { %v751_v30 = vadd.f32 %v746_v29, %v672_v25  ;;  %v3946_v32 = vpop.f32.mrb[19].mxu1 }
 0x17d   :  { %v822_v33 = vpop.f32.mrb[20].mxu0 }
 0x17e   :  { %v829_v34 = vadd.f32 %v822_v33, %v750_v6  ;;  %v3951_v36 = vpop.f32.mrb[21].mxu0 }
 0x17f   :  { %v825_v38 = vpop.f32.mrb[22].mxu0 }
 0x180   :  { %v830_v40 = vadd.f32 %v825_v38, %v751_v30  ;;  %v3952_v41 = vpop.f32.mrb[23].mxu0 }
 0x181   :  { %v884_v42 = vpop.f32.mrb[20].mxu1 }
 0x182   :  { %v891_v43 = vadd.f32 %v884_v42, %v829_v34  ;;  %v3957_v44 = vpop.f32.mrb[21].mxu1 }
 0x183   :  { %v887_v45 = vpop.f32.mrb[22].mxu1 }
 0x184   :  { %v892_v46 = vadd.f32 %v887_v45, %v830_v40  ;;  %v3958_v47 = vpop.f32.mrb[23].mxu1 }
 0x185   :  { %v963_v49 = vpop.f32.mrb[24].mxu0 }
 0x186   :  { %v970_v50 = vadd.f32 %v963_v49, %v891_v43  ;;  %v3963_v51 = vpop.f32.mrb[25].mxu0 }
 0x187   :  { %v966_v52 = vpop.f32.mrb[26].mxu0 }
 0x188   :  { %v971_v53 = vadd.f32 %v966_v52, %v892_v46  ;;  %v3964_v54 = vpop.f32.mrb[27].mxu0 }
 0x189   :  { %v1020_v19 = vpop.f32.mrb[24].mxu1 }
 0x18a   :  { %v1027_v55 = vadd.f32 %v1020_v19, %v970_v50  ;;  %v3969_v56 = vpop.f32.mrb[25].mxu1 }
 0x18b   :  { %v1023_v57 = vpop.f32.mrb[26].mxu1 }
 0x18c   :  { %v1028_v58 = vadd.f32 %v1023_v57, %v971_v53  ;;  %v3970_v59 = vpop.f32.mrb[27].mxu1 }
 0x18d   :  { %v1077_v17 = vpop.f32.mrb[28].mxu0 }
 0x18e   :  { %v1084_v60 = vadd.f32 %v1077_v17, %v1027_v55  ;;  %v3975_v61 = vpop.f32.mrb[29].mxu0 }
 0x18f   :  { %v1080_v62 = vpop.f32.mrb[30].mxu0 }
 0x190   :  { %v1085_v15 = vadd.f32 %v1080_v62, %v1028_v58  ;;  %v3976_v63 = vpop.f32.mrb[31].mxu0 }
 0x191   :  { %v1139_v0 = vpop.f32.mrb[28].mxu1 }
 0x192   :  { %v1146_v1 = vadd.f32 %v1139_v0, %v1084_v60  ;;  %v3981_v2 = vpop.f32.mrb[29].mxu1 }
 0x193   :  { %v1142_v4 = vpop.f32.mrb[30].mxu1 }
 0x194   :  { %v1147_v5 = vadd.f32 %v1142_v4, %v1085_v15  ;;  %v3982_v8 = vpop.f32.mrb[31].mxu1 }
 0x195   :  { %v1196_v10 = vpop.f32.mrb[32].mxu0 }
 0x196   :  { %v1203_v11 = vadd.f32 %v1196_v10, %v1146_v1  ;;  %v3987_v12 = vpop.f32.mrb[33].mxu0 }
 0x197   :  { %v1199_v16 = vpop.f32.mrb[34].mxu0 }
 0x198   :  { %v1204_v18 = vadd.f32 %v1199_v16, %v1147_v5  ;;  %v3988_v20 = vpop.f32.mrb[35].mxu0 }
 0x199   :  { %v1253_v21 = vpop.f32.mrb[32].mxu1 }
 0x19a   :  { %v1260_v22 = vadd.f32 %v1253_v21, %v1203_v11  ;;  %v3993_v13 = vpop.f32.mrb[33].mxu1 }
 0x19b   :  { %v1256_v24 = vpop.f32.mrb[34].mxu1  ;;  %v1805_v13 = vpop.permute.xlu1 %1804 }
 0x19c   :  { %v1261_v9 = vadd.f32 %v1256_v24, %v1204_v18  ;;  %v3994_v25 = vpop.f32.mrb[35].mxu1 }
 0x19d   :  { %v1315_v27 = vpop.f32.mrb[36].mxu0 }
 0x19e   :  { %v1322_v28 = vadd.f32 %v1315_v27, %v1260_v22  ;;  %v3999_v6 = vpop.f32.mrb[37].mxu0 }
 0x19f   :  { %v1318_v7 = vpop.f32.mrb[38].mxu0 }
 0x1a0   :  { %v1323_v29 = vadd.f32 %v1318_v7, %v1261_v9  ;;  %v4000_v30 = vpop.f32.mrb[39].mxu0 }
 0x1a1   :  { %v1377_v32 = vpop.f32.mrb[36].mxu1 }
 0x1a2   :  { %v1384_v33 = vadd.f32 %v1377_v32, %v1322_v28  ;;  %v4005_v34 = vpop.f32.mrb[37].mxu1 }
 0x1a3   :  { %v1380_v36 = vpop.f32.mrb[38].mxu1  ;;  %v1820_v34 = vld [vmem:[%s5104_s4] sm:$0xf]  ;;  %s4301_s4 = smov 19  }
 0x1a4   :  { %v1385_v38 = vadd.f32 %v1380_v36, %v1323_v29  ;;  %v4006_v40 = vpop.f32.mrb[39].mxu1  ;;  %v1811_v36 = vpop.permute.xlu0 %1810 }
 0x1a5   :  { %v1439_v41 = vpop.f32.mrb[40].mxu0 }
 0x1a6   :  { %v1446_v42 = vadd.f32 %v1439_v41, %v1384_v33  ;;  %v4011_v43 = vpop.f32.mrb[41].mxu0 }
 0x1a7   :  { %v1442_v44 = vpop.f32.mrb[42].mxu0 }
 0x1a8   :  { %v1447_v45 = vadd.f32 %v1442_v44, %v1385_v38  ;;  %v4012_v46 = vpop.f32.mrb[43].mxu0  ;;  %v1826_v38 = vpop.permute.xlu1 %1825 }
 0x1a9   :  { %v1501_v47 = vpop.f32.mrb[40].mxu1 }
 0x1aa   :  { %v1508_v49 = vadd.f32 %v1501_v47, %v1446_v42  ;;  %v4017_v50 = vpop.f32.mrb[41].mxu1 }
 0x1ab   :  { %v1504_v51 = vpop.f32.mrb[42].mxu1 }
 0x1ac   :  { %v1509_v52 = vadd.f32 %v1504_v51, %v1447_v45  ;;  %v4018_v53 = vpop.f32.mrb[43].mxu1 }
 0x1ad   :  { %v1558_v54 = vpop.f32.mrb[44].mxu0 }
 0x1ae   :  { %v1565_v19 = vadd.f32 %v1558_v54, %v1508_v49  ;;  %v4023_v55 = vpop.f32.mrb[45].mxu0  ;;  %v3519_v54 = vld [vmem:[%s5105_s9] sm:$0xff] }
 0x1af   :  { %v1561_v56 = vpop.f32.mrb[46].mxu0  ;;  %v3705_v55 = vld [vmem:[%s5103_s1 + $0x7] sm:$0x1] }
 0x1b0   :  { %v1566_v57 = vadd.f32 %v1561_v56, %v1509_v52  ;;  %v4024_v58 = vpop.f32.mrb[47].mxu0  ;;  %v1996_v56 = vpack.i.b16 %v3705_v55, %v3705_v55 }
 0x1b1   :  { %v1615_v59 = vpop.f32.mrb[44].mxu1 }
 0x1b2   :  { %v1622_v17 = vadd.f32 %v1615_v59, %v1565_v19  ;;  %v4029_v60 = vpop.f32.mrb[45].mxu1  ;;  %v3505_v19 = vld [vmem:[%s5106_s7] sm:$0xff]  ;;  %v3712_v59 = vld [vmem:[%s5103_s1 + $0x8] sm:$0x1] }
 0x1b3   :  { %v1618_v61 = vpop.f32.mrb[46].mxu1 }
 0x1b4   :  { %v1623_v62 = vadd.f32 %v1618_v61, %v1566_v57  ;;  %v4030_v15 = vpop.f32.mrb[47].mxu1  ;;  %v2001_v61 = vrot.slane %v1996_v56, %v4454_v26 }
 0x1b5   :  { %v1677_v63 = vpop.f32.mrb[48].mxu0 }
 0x1b6   :  { %v1684_v0 = vadd.f32 %v1677_v63, %v1622_v17  ;;  %v4035_v1 = vpop.f32.mrb[49].mxu0  ;;  %v2167_v63 = vpack.i.b16 %v3712_v59, %v3712_v59 }
 0x1b7   :  { %v1680_v2 = vpop.f32.mrb[50].mxu0 }
 0x1b8   :  { %v1685_v4 = vadd.f32 %v1680_v2, %v1623_v62  ;;  %v4036_v5 = vpop.f32.mrb[51].mxu0  ;;  %v3702_v2 = vld [vmem:[%s5107_s6 + $0x4] sm:$0xf] }
 0x1b9   :  { %v1734_v8 = vpop.f32.mrb[48].mxu1 }
 0x1ba   :  { %v1741_v10 = vadd.f32 %v1734_v8, %v1684_v0  ;;  %v4041_v11 = vpop.f32.mrb[49].mxu1 }
 0x1bb   :  { %v1737_v12 = vpop.f32.mrb[50].mxu1 }
 0x1bc   :  { %v1742_v16 = vadd.f32 %v1737_v12, %v1685_v4  ;;  %v4042_v18 = vpop.f32.mrb[51].mxu1 }
 0x1bd   :  { %v1791_v20 = vpop.f32.mrb[52].mxu0 }
 0x1be   :  { %v1798_v21 = vadd.f32 %v1791_v20, %v1741_v10  ;;  %v4047_v22 = vpop.f32.mrb[53].mxu0  ;;  %v2172_v10 = vrot.slane %v2167_v63, %v4454_v26 }
 0x1bf   :  { %v1794_v24 = vpop.f32.mrb[54].mxu0 }
 0x1c0   :  { %v1807_v9 = vadd.f32 %v1805_v13, %v1798_v21  ;;  %v1799_v25 = vadd.f32 %v1794_v24, %v1742_v16  ;;  %v4048_v27 = vpop.f32.mrb[55].mxu0  ;;  %v3715_v16 = vld [vmem:[%s5103_s1 + $0x9] sm:$0x1]  ;;  %v3708_v24 = vld [vmem:[%s5107_s6 + $0xc] sm:$0xf] }
 0x1c1   :  { %v2230_v22 = vpack.i.b16 %v3715_v16, %v3715_v16  ;;  %v3706_v13 = vld [vmem:[%s5107_s6 + $0x8] sm:$0xf]  ;;  %v3731_v16 = vld [vmem:[%s5107_s6 + $0x30] sm:$0xf] }
 0x1c2   :  { %v1816_v28 = vmul.f32 0.70710677, %v1807_v9  ;;  %v1814_v7 = vmul.f32 0.5, %v1807_v9  ;;  %v1813_v41 = vadd.f32 %v1811_v36, %v1799_v25 }
 0x1c4   :  { %4282 = verf.f32 %v1816_v28  ;;  %v2235_v28 = vrot.slane %v2230_v22, %v4454_v26 }
 0x1ce   :  { %v4283_v6 = vpop.eup %4282 }
 0x1cf   :  { %v1818_v29 = vadd.f32 1.0, %v4283_v6 }
 0x1d1   :  { %v1819_v30 = vmul.f32 %v1818_v29, %v1814_v7  ;;  %v3721_v7 = vld [vmem:[%s5103_s1 + $0xb] sm:$0x1] }
 0x1d3   :  { %v1821_v32 = vpack.c.bf16 %v1819_v30, %v1819_v30 }
 0x1d5   :  { %v1834_v33 = vsel %vm1832_vm3, %v1821_v32, 0  ;;  %v2356_v32 = vpack.i.b16 %v3721_v7, %v3721_v7 }
 0x1d6   :  { %4050 = vmatpush3.bf16.msra.mxu1 %v1834_v33  ;;  %v3710_v33 = vld [vmem:[%s5107_s6 + $0x10] sm:$0xf] }
 0x1d7   :  { %4061 = vmatprep.subr.bf16.mxu1 %v4291_v3 }
 0x1d9   :  { %4052 = vmatmul.mubr.msk.bf16.vlgmr.msra.gmra.mrb[52].mxu1 %vm1828_vm4, %v1820_v34  ;;  %v3713_v34 = vld [vmem:[%s5107_s6 + $0x14] sm:$0xf] }
 0x1da   :  { %4063 = vmatprep.mubr.msk.bf16.mxu1 %vm4292_vm0, %v4291_v3 }
 0x2ac   :  { %v1870_v40 = vpop.f32.mrb[52].mxu1 }
 0x2ad   :  { %v1871_v42 = vadd.f32 %v1870_v40, %v1826_v38  ;;  %v4053_v43 = vpop.f32.mrb[53].mxu1  ;;  %v2361_v40 = vrot.slane %v2356_v32, %v4454_v26 }
 0x2ae   :  { %v1873_v44 = vpop.f32.mrb[54].mxu1  ;;  %v3728_v43 = vld [vmem:[%s5103_s1 + $0xc] sm:$0x1] }
 0x2af   :  { %v1876_v45 = vadd.f32 %v1871_v42, %v1813_v41  ;;  %v4054_v46 = vpop.f32.mrb[55].mxu1 }
 0x2b0   :  { %v2527_v46 = vpack.i.b16 %v3728_v43, %v3728_v43 }
 0x2b1   :  { %v1878_v47 = vmul.f32 0.70710677, %v1876_v45  ;;  %v1877_v50 = vmul.f32 0.5, %v1876_v45 }
 0x2b3   :  { %4284 = verf.f32 %v1878_v47  ;;  %v3716_v47 = vld [vmem:[%s5107_s6 + $0x18] sm:$0xf] }
 0x2bd   :  { %v4285_v49 = vpop.eup %4284 }
 0x2be   :  { %v1880_v51 = vadd.f32 1.0, %v4285_v49  ;;  %v3719_v49 = vld [vmem:[%s5107_s6 + $0x1c] sm:$0xf] }
 0x2c0   :  { %v4748_v52 = vmul.f32 %v1880_v51, %v1877_v50 }
 0x2c2   :  { %v4752_v53 = vpack.c.bf16 %v4748_v52, %v4748_v52 }
 0x2c4   :  { %1884 = vrot.lane.b32.xlu0 %v4752_v53, %s4294_s22  ;;  %1890 = vrot.lane.b32.xlu1 %v4752_v53, %s4293_s19  ;;  %s4305_s19 = smov 11   ;;  %s4306_s22 = smov 3  }
 0x2c8   :  { %2052 = vrot.lane.b32.xlu0 %v4752_v53, %s4295_s23  ;;  %1989 = vrot.lane.b32.xlu1 %v4752_v53, %s4301_s4  ;;  %s4307_s23 = smov 127  }
 0x2cc   :  { %2160 = vrot.lane.b32.xlu0 %v4752_v53, %s4302_s14  ;;  %2106 = vrot.lane.b32.xlu1 %v4752_v53, %s4296_s24  ;;  %s4308_s24 = smov 124  }
 0x2d0   :  { %2286 = vrot.lane.b32.xlu0 %v4752_v53, %s4303_s15  ;;  %2223 = vrot.lane.b32.xlu1 %v4752_v53, %s4304_s16 }
 0x2d4   :  { %2412 = vrot.lane.b32.xlu0 %v4752_v53, %s4297_s29  ;;  %2349 = vrot.lane.b32.xlu1 %v4752_v53, %s4305_s19  ;;  %s4310_s29 = smov 117  }
 0x2d8   :  { %2520 = vrot.lane.b32.xlu0 %v4752_v53, %s4306_s22  ;;  %2466 = vrot.lane.b32.xlu1 %v4752_v53, %s4298_s12  ;;  %s4313_s12 = smov 116  }
 0x2dc   :  { %2686 = vrot.lane.b32.xlu0 %v4752_v53, %s4307_s23  ;;  %2583 = vrot.lane.b32.xlu1 %v4752_v53, %s4299_s13  ;;  %s4315_s13 = smov 113  }
 0x2e0   :  { %2812 = vrot.lane.b32.xlu0 %v4752_v53, %s4308_s24  ;;  %2749 = vrot.lane.b32.xlu1 %v4752_v53, %s4309_s0 }
 0x2e4   :  { %2938 = vrot.lane.b32.xlu0 %v4752_v53, %s4310_s29  ;;  %2875 = vrot.lane.b32.xlu1 %v4752_v53, %s4311_s17 }
 0x2e8   :  { %3064 = vrot.lane.b32.xlu0 %v4752_v53, %s4312_s18  ;;  %3001 = vrot.lane.b32.xlu1 %v4752_v53, %s4313_s12 }
 0x2ec   :  { %3190 = vrot.lane.b32.xlu0 %v4752_v53, %s4314_s20  ;;  %3127 = vrot.lane.b32.xlu1 %v4752_v53, %s4315_s13 }
 0x2f0   :  { %3316 = vrot.lane.b32.xlu0 %v4752_v53, %s4316_s21  ;;  %3253 = vrot.lane.b32.xlu1 %v4752_v53, %s4317_s25 }
 0x2f4   :  { %3442 = vrot.lane.b32.xlu0 %v4752_v53, %s4318_s26  ;;  %3379 = vrot.lane.b32.xlu1 %v4752_v53, %s4319_s27 }
 0x2f8   :  { %3522 = vperm.xlu0 %4254, %v3519_v54   ;;  %3508 = vperm.xlu1 %4253, %v3505_v19   ;;  %v2532_v54 = vrot.slane %v2527_v46, %v4454_v26 }
 0x336   :  { %v1885_v57 = vpop.permute.xlu0 %1884  ;;  %v1891_v58 = vpop.permute.xlu1 %1890 }
 0x337   :  { %v1888_v17 = vmul.bf16 %v1885_v57, %v4469_v35  ;;  %v1894_v60 = vmul.bf16 %v1891_v58, %v4463_v31  ;;  %v1889_v35 = vld [vmem:[%s5107_s6] sm:$0xf]  ;;  %v3724_v58 = vld [vmem:[%s5107_s6 + $0x24] sm:$0xf] }
 0x338   :  { %v3722_v57 = vld [vmem:[%s5107_s6 + $0x20] sm:$0xf] }
 0x339   :  { %v1947_v62 = vsel %vm1832_vm3, %v1888_v17, 0  ;;  %v1901_v15 = vsel %vm1832_vm3, %v1894_v60, 0 }
 0x33a   :  { %4062 = vmatpush3.bf16.msra.mxu1 %v1947_v62  ;;  %v2053_v0 = vpop.permute.xlu0 %2052  ;;  %4056 = vmatpush3.bf16.msra.mxu0 %v1901_v15  ;;  %v1990_v1 = vpop.permute.xlu1 %1989 }
 0x33b   :  { %v2056_v31 = vmul.bf16 %v2053_v0, %v4474_v39  ;;  %v2002_v4 = vmul.bf16 %v2001_v61, %v1990_v1  ;;  %4067 = vmatprep.subr.bf16.mxu0 %v4291_v3  ;;  %4073 = vmatprep.subr.bf16.mxu1 %v4291_v3  ;;  %v3718_v39 = vld [vmem:[%s5103_s1 + $0xa] sm:$0x1]  ;;  %v3738_v61 = vld [vmem:[%s5103_s1 + $0xe] sm:$0x1] }
 0x33c   :  { %v2293_v21 = vpack.i.b16 %v3718_v39, %v3718_v39  ;;  %v2756_v63 = vpack.i.b16 %v3738_v61, %v3738_v61  ;;  %v3726_v0 = vld [vmem:[%s5107_s6 + $0x28] sm:$0xf]  ;;  %v3729_v1 = vld [vmem:[%s5107_s6 + $0x2c] sm:$0xf] }
 0x33d   :  { %v2063_v5 = vsel %vm1832_vm3, %v2056_v31, 0  ;;  %v2009_v8 = vsel %vm1832_vm3, %v2002_v4, 0  ;;  %4058 = vmatmul.mubr.msk.bf16.vlgmr.msra.gmra.mrb[56].mxu0 %vm1828_vm4, %v3702_v2  ;;  %4064 = vmatmul.mubr.msk.bf16.vlgmr.msra.gmra.mrb[56].mxu1 %vm1828_vm4, %v1889_v35  ;;  %v3751_v61 = vld [vmem:[%s5107_s6 + $0x4c] sm:$0xf] }
 0x33e   :  { %4074 = vmatpush3.bf16.msra.mxu1 %v2063_v5  ;;  %v2161_v11 = vpop.permute.xlu0 %2160  ;;  %4068 = vmatpush3.bf16.msra.mxu0 %v2009_v8  ;;  %v2107_v12 = vpop.permute.xlu1 %2106  ;;  %v2298_v27 = vrot.slane %v2293_v21, %v4454_v26  ;;  %v2761_v31 = vrot.slane %v2756_v63, %v4454_v26  ;;  %v3741_v5 = vld [vmem:[%s5103_s1 + $0xf] sm:$0x1] }
 0x33f   :  { %4069 = vmatprep.mubr.msk.bf16.mxu0 %vm4292_vm0, %v4291_v3  ;;  %4075 = vmatprep.mubr.msk.bf16.mxu1 %vm4292_vm0, %v4291_v3  ;;  %v2173_v18 = vmul.bf16 %v2172_v10, %v2161_v11  ;;  %v2110_v20 = vmul.bf16 %v2107_v12, %v4485_v48  ;;  %v3744_v10 = vld [vmem:[%s5103_s1 + $0x10] sm:$0x1]  ;;  %v2819_v11 = vpack.i.b16 %v3741_v5, %v3741_v5 }
 0x340   :  { %4079 = vmatprep.subr.bf16.mxu0 %v4291_v3  ;;  %4085 = vmatprep.subr.bf16.mxu1 %v4291_v3  ;;  %v2882_v39 = vpack.i.b16 %v3744_v10, %v3744_v10  ;;  %v3754_v10 = vld [vmem:[%s5107_s6 + $0x50] sm:$0xf] }
 0x341   :  { %v2180_v9 = vsel %vm1832_vm3, %v2173_v18, 0  ;;  %v2117_v25 = vsel %vm1832_vm3, %v2110_v20, 0  ;;  %v3733_v18 = vld [vmem:[%s5107_s6 + $0x34] sm:$0xf]  ;;  %v2824_v21 = vrot.slane %v2819_v11, %v4454_v26 }
 0x342   :  { %v2287_v48 = vpop.permute.xlu0 %2286  ;;  %v2224_v6 = vpop.permute.xlu1 %2223 }
 0x343   :  { %v2299_v29 = vmul.bf16 %v2298_v27, %v2287_v48  ;;  %v2236_v30 = vmul.bf16 %v2235_v28, %v2224_v6  ;;  %v3750_v27 = vld [vmem:[%s5103_s1 + $0x12] sm:$0x1] }
 0x344   :  { %v3008_v7 = vpack.i.b16 %v3750_v27, %v3750_v27 }
 0x345   :  { %4070 = vmatmul.mubr.msk.bf16.vlgmr.msra.gmra.mrb[60].mxu0 %vm1828_vm4, %v3706_v13  ;;  %4076 = vmatmul.mubr.msk.bf16.vlgmr.msra.gmra.mrb[60].mxu1 %vm1828_vm4, %v3708_v24  ;;  %v2306_v36 = vsel %vm1832_vm3, %v2299_v29, 0  ;;  %v2243_v38 = vsel %vm1832_vm3, %v2236_v30, 0  ;;  %v2887_v13 = vrot.slane %v2882_v39, %v4454_v26  ;;  %v3736_v29 = vld [vmem:[%s5107_s6 + $0x38] sm:$0xf]  ;;  %v3739_v30 = vld [vmem:[%s5107_s6 + $0x3c] sm:$0xf] }
 0x346   :  { %4080 = vmatpush3.bf16.msra.mxu0 %v2117_v25  ;;  %4086 = vmatpush3.bf16.msra.mxu1 %v2180_v9  ;;  %v2413_v41 = vpop.permute.xlu0 %2412  ;;  %v2350_v42 = vpop.permute.xlu1 %2349  ;;  %v3747_v9 = vld [vmem:[%s5103_s1 + $0x11] sm:$0x1] }
 0x347   :  { %4081 = vmatprep.mubr.msk.bf16.mxu0 %vm4292_vm0, %v4291_v3  ;;  %4087 = vmatprep.mubr.msk.bf16.mxu1 %vm4292_vm0, %v4291_v3  ;;  %v2416_v44 = vmul.bf16 %v2413_v41, %v4541_v14  ;;  %v2362_v45 = vmul.bf16 %v2361_v40, %v2350_v42  ;;  %v2945_v48 = vpack.i.b16 %v3747_v9, %v3747_v9  ;;  %v3753_v40 = vld [vmem:[%s5103_s1 + $0x13] sm:$0x1]  ;;  %v3756_v42 = vld [vmem:[%s5103_s1 + $0x14] sm:$0x1]  ;;  %v3760_v9 = vld [vmem:[%s5107_s6 + $0x58] sm:$0xf] }
 0x348   :  { %4091 = vmatprep.subr.bf16.mxu0 %v4291_v3  ;;  %4097 = vmatprep.subr.bf16.mxu1 %v4291_v3  ;;  %v3134_v46 = vpack.i.b16 %v3756_v42, %v3756_v42 }
 0x349   :  { %v2423_v50 = vsel %vm1832_vm3, %v2416_v44, 0  ;;  %v2369_v51 = vsel %vm1832_vm3, %v2362_v45, 0  ;;  %v3071_v44 = vpack.i.b16 %v3753_v40, %v3753_v40 }
 0x34a   :  { %v2521_v14 = vpop.permute.xlu0 %2520  ;;  %v2467_v19 = vpop.permute.xlu1 %2466 }
 0x34b   :  { %v2533_v55 = vmul.bf16 %v2532_v54, %v2521_v14  ;;  %v2470_v56 = vmul.bf16 %v2467_v19, %v4553_v23  ;;  %v3735_v23 = vld [vmem:[%s5103_s1 + $0xd] sm:$0x1]  ;;  %v3139_v14 = vrot.slane %v3134_v46, %v4454_v26 }
 0x34c   :  { %v2693_v62 = vpack.i.b16 %v3735_v23, %v3735_v23 }
 0x34d   :  { %4082 = vmatmul.mubr.msk.bf16.vlgmr.msra.gmra.mrb[64].mxu0 %vm1828_vm4, %v3710_v33  ;;  %4088 = vmatmul.mubr.msk.bf16.vlgmr.msra.gmra.mrb[64].mxu1 %vm1828_vm4, %v3713_v34  ;;  %v2540_v59 = vsel %vm1832_vm3, %v2533_v55, 0  ;;  %v2477_v17 = vsel %vm1832_vm3, %v2470_v56, 0  ;;  %v2950_v33 = vrot.slane %v2945_v48, %v4454_v26  ;;  %v3759_v55 = vld [vmem:[%s5103_s1 + $0x15] sm:$0x1] }
 0x34e   :  { %4092 = vmatpush3.bf16.msra.mxu0 %v2243_v38  ;;  %4098 = vmatpush3.bf16.msra.mxu1 %v2306_v36  ;;  %v2584_v60 = vpop.permute.xlu1 %2583  ;;  %v2698_v2 = vrot.slane %v2693_v62, %v4454_v26  ;;  %v2687_v4 = vpop.permute.xlu0 %2686  ;;  %v3013_v36 = vrot.slane %v3008_v7, %v4454_v26  ;;  %v3766_v7 = vld [vmem:[%s5107_s6 + $0x60] sm:$0xf] }
 0x34f   :  { %4093 = vmatprep.mubr.msk.bf16.mxu0 %vm4292_vm0, %v4291_v3  ;;  %4099 = vmatprep.mubr.msk.bf16.mxu1 %vm4292_vm0, %v4291_v3  ;;  %v2587_v15 = vmul.bf16 %v2584_v60, %v4577_v37  ;;  %v2643_v37 = vsel %vm1832_vm3, %v4752_v53, 0  ;;  %v3748_v60 = vld [vmem:[%s5107_s6 + $0x48] sm:$0xf] }
 0x350   :  { %4103 = vmatprep.subr.bf16.mxu0 %v4291_v3  ;;  %4109 = vmatprep.subr.bf16.mxu1 %v4291_v3  ;;  %v2699_v53 = vmul.bf16 %v2698_v2, %v2687_v4  ;;  %v3765_v2 = vld [vmem:[%s5103_s1 + $0x17] sm:$0x1] }
 0x351   :  { %v2594_v35 = vsel %vm1832_vm3, %v2587_v15, 0  ;;  %v3323_v4 = vpack.i.b16 %v3765_v2, %v3765_v2 }
 0x352   :  { %v2750_v8 = vpop.permute.xlu1 %2749  ;;  %v2706_v20 = vsel %vm1832_vm3, %v2699_v53, 0  ;;  %v2813_v24 = vpop.permute.xlu0 %2812  ;;  %v3757_v53 = vld [vmem:[%s5107_s6 + $0x54] sm:$0xf] }
 0x353   :  { %v2762_v12 = vmul.bf16 %v2761_v31, %v2750_v8  ;;  %v2825_v28 = vmul.bf16 %v2824_v21, %v2813_v24  ;;  %v3768_v31 = vld [vmem:[%s5103_s1 + $0x18] sm:$0x1] }
 0x354   :  { %v3386_v8 = vpack.i.b16 %v3768_v31, %v3768_v31 }
 0x355   :  { %4094 = vmatmul.mubr.msk.bf16.vlgmr.msra.gmra.mrb[68].mxu0 %vm1828_vm4, %v3716_v47  ;;  %4100 = vmatmul.mubr.msk.bf16.vlgmr.msra.gmra.mrb[68].mxu1 %vm1828_vm4, %v3719_v49  ;;  %v2769_v22 = vsel %vm1832_vm3, %v2762_v12, 0  ;;  %v2832_v32 = vsel %vm1832_vm3, %v2825_v28, 0  ;;  %v3742_v47 = vld [vmem:[%s5107_s6 + $0x40] sm:$0xf]  ;;  %v3745_v49 = vld [vmem:[%s5107_s6 + $0x44] sm:$0xf]  ;;  %v3328_v12 = vrot.slane %v3323_v4, %v4454_v26 }
 0x356   :  { %4104 = vmatpush3.bf16.msra.mxu0 %v2369_v51  ;;  %4110 = vmatpush3.bf16.msra.mxu1 %v2423_v50  ;;  %v2876_v25 = vpop.permute.xlu1 %2875  ;;  %v2939_v38 = vpop.permute.xlu0 %2938  ;;  %v3076_v51 = vrot.slane %v3071_v44, %v4454_v26 }
 0x357   :  { %4105 = vmatprep.mubr.msk.bf16.mxu0 %vm4292_vm0, %v4291_v3  ;;  %4111 = vmatprep.mubr.msk.bf16.mxu1 %vm4292_vm0, %v4291_v3  ;;  %v2888_v6 = vmul.bf16 %v2887_v13, %v2876_v25  ;;  %v2951_v43 = vmul.bf16 %v2950_v33, %v2939_v38  ;;  %v3763_v25 = vld [vmem:[%s5107_s6 + $0x5c] sm:$0xf] }
 0x358   :  { %4115 = vmatprep.subr.bf16.mxu0 %v4291_v3  ;;  %4121 = vmatprep.subr.bf16.mxu1 %v4291_v3 }
 0x359   :  { %v2895_v34 = vsel %vm1832_vm3, %v2888_v6, 0  ;;  %v2958_v50 = vsel %vm1832_vm3, %v2951_v43, 0 }
 0x35a   :  { %v3002_v41 = vpop.permute.xlu1 %3001  ;;  %v3065_v19 = vpop.permute.xlu0 %3064 }
 0x35b   :  { %v3014_v45 = vmul.bf16 %v3013_v36, %v3002_v41 }
 0x35d   :  { %4106 = vmatmul.mubr.msk.bf16.vlgmr.msra.gmra.mrb[72].mxu0 %vm1828_vm4, %v3722_v57  ;;  %4112 = vmatmul.mubr.msk.bf16.vlgmr.msra.gmra.mrb[72].mxu1 %vm1828_vm4, %v3724_v58  ;;  %v3021_v54 = vsel %vm1832_vm3, %v3014_v45, 0  ;;  %v3762_v57 = vld [vmem:[%s5103_s1 + $0x16] sm:$0x1]  ;;  %v3077_v58 = vmul.bf16 %v3076_v51, %v3065_v19 }
 0x35e   :  { %4116 = vmatpush3.bf16.msra.mxu0 %v2477_v17  ;;  %4122 = vmatpush3.bf16.msra.mxu1 %v2540_v59  ;;  %v3128_v56 = vpop.permute.xlu1 %3127  ;;  %v3197_v59 = vpack.i.b16 %v3759_v55, %v3759_v55  ;;  %v3260_v23 = vpack.i.b16 %v3762_v57, %v3762_v57 }
 0x35f   :  { %4117 = vmatprep.mubr.msk.bf16.mxu0 %vm4292_vm0, %v4291_v3  ;;  %4123 = vmatprep.mubr.msk.bf16.mxu1 %vm4292_vm0, %v4291_v3  ;;  %v3140_v17 = vmul.bf16 %v3139_v14, %v3128_v56  ;;  %v3084_v62 = vsel %vm1832_vm3, %v3077_v58, 0 }
 0x360   :  { %4127 = vmatprep.subr.bf16.mxu0 %v4291_v3  ;;  %4133 = vmatprep.subr.bf16.mxu1 %v4291_v3  ;;  %v3202_v15 = vrot.slane %v3197_v59, %v4454_v26 }
 0x361   :  { %v3147_v63 = vsel %vm1832_vm3, %v3140_v17, 0 }
 0x365   :  { %4118 = vmatmul.mubr.msk.bf16.vlgmr.msra.gmra.mrb[76].mxu0 %vm1828_vm4, %v3726_v0  ;;  %4124 = vmatmul.mubr.msk.bf16.vlgmr.msra.gmra.mrb[76].mxu1 %vm1828_vm4, %v3729_v1  ;;  %v3265_v0 = vrot.slane %v3260_v23, %v4454_v26  ;;  %v3191_v1 = vpop.permute.xlu0 %3190 }
 0x366   :  { %4128 = vmatpush3.bf16.msra.mxu0 %v2594_v35  ;;  %4134 = vmatpush3.bf16.msra.mxu1 %v2643_v37  ;;  %v3254_v35 = vpop.permute.xlu1 %3253  ;;  %v3203_v37 = vmul.bf16 %v3202_v15, %v3191_v1 }
 0x367   :  { %4129 = vmatprep.mubr.msk.bf16.mxu0 %vm4292_vm0, %v4291_v3  ;;  %4135 = vmatprep.mubr.msk.bf16.mxu1 %vm4292_vm0, %v4291_v3  ;;  %v3266_v5 = vmul.bf16 %v3265_v0, %v3254_v35 }
 0x368   :  { %4139 = vmatprep.subr.bf16.mxu0 %v4291_v3  ;;  %4145 = vmatprep.subr.bf16.mxu1 %v4291_v3  ;;  %v3210_v11 = vsel %vm1832_vm3, %v3203_v37, 0 }
 0x369   :  { %v3273_v39 = vsel %vm1832_vm3, %v3266_v5, 0 }
 0x36a   :  { %v3380_v21 = vpop.permute.xlu1 %3379 }
 0x36d   :  { %4130 = vmatmul.mubr.msk.bf16.vlgmr.msra.gmra.mrb[80].mxu0 %vm1828_vm4, %v3731_v16  ;;  %4136 = vmatmul.mubr.msk.bf16.vlgmr.msra.gmra.mrb[80].mxu1 %vm1828_vm4, %v3733_v18  ;;  %v3391_v16 = vrot.slane %v3386_v8, %v4454_v26  ;;  %v3317_v18 = vpop.permute.xlu0 %3316 }
 0x36e   :  { %4140 = vmatpush3.bf16.msra.mxu0 %v2706_v20  ;;  %4146 = vmatpush3.bf16.msra.mxu1 %v2769_v22  ;;  %v3771_v20 = vld [vmem:[%s5103_s1 + $0x19] sm:$0x1]  ;;  %v3329_v22 = vmul.bf16 %v3328_v12, %v3317_v18 }
 0x36f   :  { %4141 = vmatprep.mubr.msk.bf16.mxu0 %vm4292_vm0, %v4291_v3  ;;  %4147 = vmatprep.mubr.msk.bf16.mxu1 %vm4292_vm0, %v4291_v3  ;;  %v3449_v13 = vpack.i.b16 %v3771_v20, %v3771_v20  ;;  %v3392_v24 = vmul.bf16 %v3391_v16, %v3380_v21 }
 0x370   :  { %4151 = vmatprep.subr.bf16.mxu0 %v4291_v3  ;;  %4157 = vmatprep.subr.bf16.mxu1 %v4291_v3  ;;  %v3336_v27 = vsel %vm1832_vm3, %v3329_v22, 0 }
 0x371   :  { %v3454_v28 = vrot.slane %v3449_v13, %v4454_v26  ;;  %v3399_v48 = vsel %vm1832_vm3, %v3392_v24, 0  ;;  %v3443_v6 = vpop.permute.xlu0 %3442 }
 0x373   :  { %v3455_v26 = vmul.bf16 %v3454_v28, %v3443_v6 }
 0x375   :  { %4142 = vmatmul.mubr.msk.bf16.vlgmr.msra.gmra.mrb[84].mxu0 %vm1828_vm4, %v3736_v29  ;;  %4148 = vmatmul.mubr.msk.bf16.vlgmr.msra.gmra.mrb[84].mxu1 %vm1828_vm4, %v3739_v30  ;;  %v3769_v29 = vld [vmem:[%s5107_s6 + $0x64] sm:$0xf]  ;;  %v3462_v30 = vsel %vm1832_vm3, %v3455_v26, 0 }
 0x376   :  { %4152 = vmatpush3.bf16.msra.mxu0 %v2832_v32  ;;  %4158 = vmatpush3.bf16.msra.mxu1 %v2895_v34  ;;  %v3772_v32 = vld [vmem:[%s5107_s6 + $0x68] sm:$0xf] }
 0x377   :  { %4153 = vmatprep.mubr.msk.bf16.mxu0 %vm4292_vm0, %v4291_v3  ;;  %4159 = vmatprep.mubr.msk.bf16.mxu1 %vm4292_vm0, %v4291_v3 }
 0x378   :  { %4163 = vmatprep.subr.bf16.mxu0 %v4291_v3  ;;  %4169 = vmatprep.subr.bf16.mxu1 %v4291_v3 }
 0x37d   :  { %4154 = vmatmul.mubr.msk.bf16.vlgmr.msra.gmra.mrb[88].mxu0 %vm1828_vm4, %v3742_v47  ;;  %4160 = vmatmul.mubr.msk.bf16.vlgmr.msra.gmra.mrb[88].mxu1 %vm1828_vm4, %v3745_v49 }
 0x37e   :  { %4164 = vmatpush3.bf16.msra.mxu0 %v2958_v50  ;;  %4170 = vmatpush3.bf16.msra.mxu1 %v3021_v54 }
 0x37f   :  { %4165 = vmatprep.mubr.msk.bf16.mxu0 %vm4292_vm0, %v4291_v3  ;;  %4171 = vmatprep.mubr.msk.bf16.mxu1 %vm4292_vm0, %v4291_v3 }
 0x380   :  { %4175 = vmatprep.subr.bf16.mxu0 %v4291_v3  ;;  %4181 = vmatprep.subr.bf16.mxu1 %v4291_v3 }
 0x385   :  { %4166 = vmatmul.mubr.msk.bf16.vlgmr.msra.gmra.mrb[92].mxu0 %vm1828_vm4, %v3748_v60  ;;  %4172 = vmatmul.mubr.msk.bf16.vlgmr.msra.gmra.mrb[92].mxu1 %vm1828_vm4, %v3751_v61 }
 0x386   :  { %4176 = vmatpush3.bf16.msra.mxu0 %v3084_v62  ;;  %4182 = vmatpush3.bf16.msra.mxu1 %v3147_v63 }
 0x387   :  { %4177 = vmatprep.mubr.msk.bf16.mxu0 %vm4292_vm0, %v4291_v3  ;;  %4183 = vmatprep.mubr.msk.bf16.mxu1 %vm4292_vm0, %v4291_v3 }
 0x388   :  { %4187 = vmatprep.subr.bf16.mxu0 %v4291_v3  ;;  %4193 = vmatprep.subr.bf16.mxu1 %v4291_v3 }
 0x38d   :  { %4178 = vmatmul.mubr.msk.bf16.vlgmr.msra.gmra.mrb[96].mxu0 %vm1828_vm4, %v3754_v10  ;;  %4184 = vmatmul.mubr.msk.bf16.vlgmr.msra.gmra.mrb[96].mxu1 %vm1828_vm4, %v3757_v53 }
 0x38e   :  { %4188 = vmatpush3.bf16.msra.mxu0 %v3210_v11  ;;  %4194 = vmatpush3.bf16.msra.mxu1 %v3273_v39 }
 0x38f   :  { %4189 = vmatprep.mubr.msk.bf16.mxu0 %vm4292_vm0, %v4291_v3  ;;  %4195 = vmatprep.mubr.msk.bf16.mxu1 %vm4292_vm0, %v4291_v3 }
 0x390   :  { %4199 = vmatprep.subr.bf16.mxu0 %v4291_v3  ;;  %4205 = vmatprep.subr.bf16.mxu1 %v4291_v3 }
 0x395   :  { %4190 = vmatmul.mubr.msk.bf16.vlgmr.msra.gmra.mrb[100].mxu0 %vm1828_vm4, %v3760_v9  ;;  %4196 = vmatmul.mubr.msk.bf16.vlgmr.msra.gmra.mrb[100].mxu1 %vm1828_vm4, %v3763_v25 }
 0x396   :  { %4200 = vmatpush3.bf16.msra.mxu0 %v3336_v27  ;;  %4206 = vmatpush3.bf16.msra.mxu1 %v3399_v48 }
 0x397   :  { %4201 = vmatprep.mubr.msk.bf16.mxu0 %vm4292_vm0, %v4291_v3  ;;  %4211 = vmatprep.subr.bf16.mxu0 %v4291_v3 }
 0x398   :  { %4207 = vmatprep.mubr.msk.bf16.mxu1 %vm4292_vm0, %v4291_v3  ;;  %4217 = vmatprep.subr.bf16.mxu1 %v4291_v3 }
 0x39d   :  { %4202 = vmatmul.mubr.msk.bf16.vlgmr.msra.gmra.mrb[104].mxu0 %vm1828_vm4, %v3766_v7  ;;  %4208 = vmatmul.mubr.msk.bf16.vlgmr.msra.gmra.mrb[104].mxu1 %vm1828_vm4, %v3769_v29 }
 0x39e   :  { %4212 = vmatpush3.bf16.msra.mxu0 %v3462_v30  ;;  %4213 = vmatprep.mubr.msk.bf16.mxu0 %vm4292_vm0, %v4291_v3 }
 0x39f   :  { %4219 = vmatprep.mubr.msk.bf16.mxu1 %vm4292_vm0, %v4291_v3 }
 0x3a5   :  { %4214 = vmatmul.mubr.msk.bf16.vlgmr.msra.gmra.mrb[108].mxu0 %vm1828_vm4, %v3772_v32 }
 0x410   :  { %v1937_v33 = vpop.f32.mrb[56].mxu0  ;;  %v1983_v34 = vpop.f32.mrb[56].mxu1 }
 0x411   :  { %v1984_v36 = vadd.f32 %v1983_v34, %v1937_v33  ;;  %v4059_v38 = vpop.f32.mrb[57].mxu0  ;;  %v4065_v40 = vpop.f32.mrb[57].mxu1 }
 0x412   :  { %v1940_v41 = vpop.f32.mrb[58].mxu0  ;;  %v1986_v42 = vpop.f32.mrb[58].mxu1 }
 0x413   :  { %v4060_v43 = vpop.f32.mrb[59].mxu0  ;;  %v4066_v44 = vpop.f32.mrb[59].mxu1 }
 0x418   :  { %v2045_v45 = vpop.f32.mrb[60].mxu0  ;;  %v2099_v46 = vpop.f32.mrb[60].mxu1 }
 0x419   :  { %v2051_v47 = vadd.f32 %v2045_v45, %v1984_v36  ;;  %v4071_v49 = vpop.f32.mrb[61].mxu0  ;;  %v4077_v3 = vpop.f32.mrb[61].mxu1 }
 0x41a   :  { %v2048_v50 = vpop.f32.mrb[62].mxu0  ;;  %v2102_v51 = vpop.f32.mrb[62].mxu1 }
 0x41b   :  { %v2105_v54 = vadd.f32 %v2099_v46, %v2051_v47  ;;  %v4072_v14 = vpop.f32.mrb[63].mxu0  ;;  %v4078_v19 = vpop.f32.mrb[63].mxu1 }
 0x420   :  { %v2153_v55 = vpop.f32.mrb[64].mxu0  ;;  %v2216_v56 = vpop.f32.mrb[64].mxu1 }
 0x421   :  { %v2159_v57 = vadd.f32 %v2153_v55, %v2105_v54  ;;  %v4083_v58 = vpop.f32.mrb[65].mxu0  ;;  %v4089_v59 = vpop.f32.mrb[65].mxu1 }
 0x422   :  { %v2156_v17 = vpop.f32.mrb[66].mxu0  ;;  %v2219_v23 = vpop.f32.mrb[66].mxu1 }
 0x423   :  { %v2222_v60 = vadd.f32 %v2216_v56, %v2159_v57  ;;  %v4084_v61 = vpop.f32.mrb[67].mxu0  ;;  %v4090_v62 = vpop.f32.mrb[67].mxu1 }
 0x428   :  { %v2279_v15 = vpop.f32.mrb[68].mxu0  ;;  %v2342_v63 = vpop.f32.mrb[68].mxu1 }
 0x429   :  { %v2285_v0 = vadd.f32 %v2279_v15, %v2222_v60  ;;  %v4095_v1 = vpop.f32.mrb[69].mxu0  ;;  %v4101_v2 = vpop.f32.mrb[69].mxu1 }
 0x42a   :  { %v2282_v35 = vpop.f32.mrb[70].mxu0  ;;  %v2345_v31 = vpop.f32.mrb[70].mxu1 }
 0x42b   :  { %v2348_v37 = vadd.f32 %v2342_v63, %v2285_v0  ;;  %v4096_v4 = vpop.f32.mrb[71].mxu0  ;;  %v4102_v5 = vpop.f32.mrb[71].mxu1 }
 0x430   :  { %v2405_v8 = vpop.f32.mrb[72].mxu0  ;;  %v2459_v10 = vpop.f32.mrb[72].mxu1 }
 0x431   :  { %v2411_v53 = vadd.f32 %v2405_v8, %v2348_v37  ;;  %v4107_v11 = vpop.f32.mrb[73].mxu0  ;;  %v4113_v12 = vpop.f32.mrb[73].mxu1 }
 0x432   :  { %v2408_v39 = vpop.f32.mrb[74].mxu0  ;;  %v2462_v16 = vpop.f32.mrb[74].mxu1 }
 0x433   :  { %v2465_v18 = vadd.f32 %v2459_v10, %v2411_v53  ;;  %v4108_v20 = vpop.f32.mrb[75].mxu0  ;;  %v4114_v21 = vpop.f32.mrb[75].mxu1 }
 0x438   :  { %v2513_v22 = vpop.f32.mrb[76].mxu0  ;;  %v2576_v13 = vpop.f32.mrb[76].mxu1 }
 0x439   :  { %v2519_v24 = vadd.f32 %v2513_v22, %v2465_v18  ;;  %v4119_v9 = vpop.f32.mrb[77].mxu0  ;;  %v4125_v25 = vpop.f32.mrb[77].mxu1 }
 0x43a   :  { %v2516_v27 = vpop.f32.mrb[78].mxu0  ;;  %v2579_v28 = vpop.f32.mrb[78].mxu1 }
 0x43b   :  { %v2582_v48 = vadd.f32 %v2576_v13, %v2519_v24  ;;  %v4120_v6 = vpop.f32.mrb[79].mxu0  ;;  %v4126_v26 = vpop.f32.mrb[79].mxu1 }
 0x440   :  { %v2630_v7 = vpop.f32.mrb[80].mxu0  ;;  %v2679_v29 = vpop.f32.mrb[80].mxu1 }
 0x441   :  { %v2636_v30 = vadd.f32 %v2630_v7, %v2582_v48  ;;  %v4131_v32 = vpop.f32.mrb[81].mxu0  ;;  %v4137_v33 = vpop.f32.mrb[81].mxu1 }
 0x442   :  { %v2633_v34 = vpop.f32.mrb[82].mxu0  ;;  %v2682_v36 = vpop.f32.mrb[82].mxu1 }
 0x443   :  { %v2685_v38 = vadd.f32 %v2679_v29, %v2636_v30  ;;  %v4132_v40 = vpop.f32.mrb[83].mxu0  ;;  %v4138_v41 = vpop.f32.mrb[83].mxu1 }
 0x448   :  { %v2742_v42 = vpop.f32.mrb[84].mxu0  ;;  %v2805_v43 = vpop.f32.mrb[84].mxu1 }
 0x449   :  { %v2748_v44 = vadd.f32 %v2742_v42, %v2685_v38  ;;  %v4143_v45 = vpop.f32.mrb[85].mxu0  ;;  %v4149_v46 = vpop.f32.mrb[85].mxu1 }
 0x44a   :  { %v2745_v47 = vpop.f32.mrb[86].mxu0  ;;  %v2808_v49 = vpop.f32.mrb[86].mxu1 }
 0x44b   :  { %v2811_v3 = vadd.f32 %v2805_v43, %v2748_v44  ;;  %v4144_v50 = vpop.f32.mrb[87].mxu0  ;;  %v4150_v51 = vpop.f32.mrb[87].mxu1 }
 0x44c   :  { %v3509_v42 = vpop.permute.xlu1 %3508 }
 0x450   :  { %v2868_v54 = vpop.f32.mrb[88].mxu0  ;;  %v2931_v14 = vpop.f32.mrb[88].mxu1 }
 0x451   :  { %v2874_v19 = vadd.f32 %v2868_v54, %v2811_v3  ;;  %v4155_v55 = vpop.f32.mrb[89].mxu0  ;;  %v4161_v56 = vpop.f32.mrb[89].mxu1 }
 0x452   :  { %v2871_v57 = vpop.f32.mrb[90].mxu0  ;;  %v2934_v58 = vpop.f32.mrb[90].mxu1 }
 0x453   :  { %v2937_v59 = vadd.f32 %v2931_v14, %v2874_v19  ;;  %v4156_v17 = vpop.f32.mrb[91].mxu0  ;;  %v4162_v23 = vpop.f32.mrb[91].mxu1  ;;  %v3517_v14 = vld [vmem:[%s5108_s8] sm:$0xf] }
 0x454   :  { %v3523_v19 = vpop.permute.xlu0 %3522 }
 0x458   :  { %v2994_v60 = vpop.f32.mrb[92].mxu0  ;;  %v3057_v61 = vpop.f32.mrb[92].mxu1 }
 0x459   :  { %v3000_v62 = vadd.f32 %v2994_v60, %v2937_v59  ;;  %v4167_v15 = vpop.f32.mrb[93].mxu0  ;;  %v4173_v63 = vpop.f32.mrb[93].mxu1 }
 0x45a   :  { %v2997_v0 = vpop.f32.mrb[94].mxu0  ;;  %v3060_v1 = vpop.f32.mrb[94].mxu1 }
 0x45b   :  { %v3063_v2 = vadd.f32 %v3057_v61, %v3000_v62  ;;  %v4168_v35 = vpop.f32.mrb[95].mxu0  ;;  %v4174_v31 = vpop.f32.mrb[95].mxu1 }
 0x460   :  { %v3120_v37 = vpop.f32.mrb[96].mxu0  ;;  %v3183_v4 = vpop.f32.mrb[96].mxu1 }
 0x461   :  { %v3126_v5 = vadd.f32 %v3120_v37, %v3063_v2  ;;  %v4179_v8 = vpop.f32.mrb[97].mxu0  ;;  %v4185_v10 = vpop.f32.mrb[97].mxu1 }
 0x462   :  { %v3123_v53 = vpop.f32.mrb[98].mxu0  ;;  %v3186_v11 = vpop.f32.mrb[98].mxu1 }
 0x463   :  { %v3189_v12 = vadd.f32 %v3183_v4, %v3126_v5  ;;  %v4180_v39 = vpop.f32.mrb[99].mxu0  ;;  %v4186_v16 = vpop.f32.mrb[99].mxu1 }
 0x468   :  { %v3246_v18 = vpop.f32.mrb[100].mxu0  ;;  %v3309_v20 = vpop.f32.mrb[100].mxu1 }
 0x469   :  { %v3252_v21 = vadd.f32 %v3246_v18, %v3189_v12  ;;  %v4191_v22 = vpop.f32.mrb[101].mxu0  ;;  %v4197_v13 = vpop.f32.mrb[101].mxu1 }
 0x46a   :  { %v3249_v24 = vpop.f32.mrb[102].mxu0  ;;  %v3312_v9 = vpop.f32.mrb[102].mxu1 }
 0x46b   :  { %v3315_v25 = vadd.f32 %v3309_v20, %v3252_v21  ;;  %v4192_v27 = vpop.f32.mrb[103].mxu0  ;;  %v4198_v28 = vpop.f32.mrb[103].mxu1 }
 0x470   :  { %v3372_v48 = vpop.f32.mrb[104].mxu0  ;;  %v3435_v6 = vpop.f32.mrb[104].mxu1 }
 0x471   :  { %v3378_v26 = vadd.f32 %v3372_v48, %v3315_v25  ;;  %v4203_v7 = vpop.f32.mrb[105].mxu0  ;;  %v4209_v29 = vpop.f32.mrb[105].mxu1 }
 0x472   :  { %v3375_v30 = vpop.f32.mrb[106].mxu0  ;;  %v3438_v32 = vpop.f32.mrb[106].mxu1 }
 0x473   :  { %v3441_v33 = vadd.f32 %v3435_v6, %v3378_v26  ;;  %v4204_v34 = vpop.f32.mrb[107].mxu0  ;;  %v4210_v36 = vpop.f32.mrb[107].mxu1 }
 0x478   :  { %v3498_v38 = vpop.f32.mrb[108].mxu0 }
 0x479   :  { %v3504_v40 = vadd.f32 %v3498_v38, %v3441_v33  ;;  %v4215_v41 = vpop.f32.mrb[109].mxu0 }
 0x47a   :  { %v3501_v43 = vpop.f32.mrb[110].mxu0 }
 0x47b   :  { %v3511_v44 = vadd.f32 %v3509_v42, %v3504_v40  ;;  %v4216_v45 = vpop.f32.mrb[111].mxu0 }
 0x47d   :  { %v3513_v46 = vmul.f32 0.70710677, %v3511_v44  ;;  %v3512_v49 = vmul.f32 0.5, %v3511_v44 }
 0x47f   :  { %4286 = verf.f32 %v3513_v46 }
 0x489   :  { %v4287_v47 = vpop.eup %4286 }
 0x48a   :  { %v3515_v3 = vadd.f32 1.0, %v4287_v47 }
 0x48c   :  { %v3516_v50 = vmul.f32 %v3515_v3, %v3512_v49 }
 0x48e   :  { %v3518_v51 = vpack.c.bf16 %v3516_v50, %v3516_v50 }
 0x490   :  { %v3529_v54 = vsel %vm1832_vm3, %v3518_v51, 0 }
 0x491   :  { %4218 = vmatpush3.bf16.msra.mxu1 %v3529_v54 }
 0x494   :  { %4220 = vmatmul.mubr.msk.bf16.vlgmr.msra.gmra.mrb[108].mxu1 %vm1828_vm4, %v3517_v14 }
 0x567   :  { %v3565_v55 = vpop.f32.mrb[108].mxu1 }
 0x568   :  { %v3566_v56 = vadd.f32 %v3565_v55, %v3523_v19  ;;  %v4221_v57 = vpop.f32.mrb[109].mxu1 }
 0x569   :  { %v3568_v58 = vpop.f32.mrb[110].mxu1 }
 0x56a   :  { %v3571_v59 = vadd.f32 %v3566_v56, %v4748_v52  ;;  %v4222_v17 = vpop.f32.mrb[111].mxu1 }
 0x56c   :  { %v3573_v23 = vmul.f32 0.70710677, %v3571_v59  ;;  %v3572_v61 = vmul.f32 0.5, %v3571_v59 }
 0x56e   :  { %4288 = verf.f32 %v3573_v23 }
 0x578   :  { %v4289_v60 = vpop.eup %4288 }
 0x579   :  { %v3575_v62 = vadd.f32 1.0, %v4289_v60 }
 0x57b   :  { %v3576_v15 = vmul.f32 %v3575_v62, %v3572_v61 }
 0x57d   :  { %3577 = vst [vmem:[%s5109_s10] sm:$0xff] %v3576_v15 }

</bundles_post_ra>
